<compile_context>
chip_gen: v6e
topology: v6e:2x2x1
jax: 0.10.0
libtpu: 0.0.40
codegen_flags: <defaults>
</compile_context>

<pallas_src>
import functools

import jax
import jax.numpy as jnp
from jax import lax
from jax.experimental import pallas as pl
from jax.experimental.pallas import tpu as pltpu


# --------------------------------------------------------------------------
# Fused kernel (one batch element per grid step)
# --------------------------------------------------------------------------
def _fused_kernel(x_ref, s1_ref, b1_ref, w1_ref, b2_ref, w2_ref,
                  b3_ref, w3_ref, *rest,
                  H, W, Cin, P, C4, stride, has_sc):
    it = iter(rest)
    wsc_ref = next(it) if has_sc else None
    out_ref = next(it)
    pad_ref = next(it)
    hs_ref = next(it) if (has_sc and stride > 1) else None

    Ho = (H - 1) // stride + 1
    Wo = (W - 1) // stride + 1
    M, Mo = H * W, Ho * Wo
    f32 = jnp.float32

    # ---- bn1 + relu (f32 elementwise; x arrives bf16) ----------------------
    x2 = x_ref[0].astype(f32).reshape(M, Cin)
    h = jnp.maximum(x2 * s1_ref[...] + b1_ref[...], 0.0)          # (M, Cin)
    hb = h.astype(jnp.bfloat16)

    # ---- shortcut (computed early so h/hb die right after conv1) ----------
    if has_sc:
        if stride == 1:
            hs = hb                                               # (Mo, Cin)
        else:
            # Stage bn1(x) in an f32 scratch; one strided (sublane) load picks
            # the (stride*i, stride*j) pixels the 1x1/stride shortcut needs.
            hs_ref[...] = h.reshape(H, W, Cin)
            hs = hs_ref[pl.ds(0, Ho, stride=stride),
                        pl.ds(0, Wo, stride=stride), :]
            hs = hs.reshape(Mo, Cin).astype(jnp.bfloat16)
        sc = jnp.dot(hs, wsc_ref[...], preferred_element_type=f32)  # (Mo, C4)
    # identity shortcut: x_ref is re-read at the final add (shorter live range)

    # ---- conv1 (1x1); bn2 scale pre-folded into w1 columns -> add + relu ---
    o1 = jnp.dot(hb, w1_ref[...], preferred_element_type=f32)       # (M, P)
    a2 = jnp.maximum(o1 + b2_ref[...], 0.0)                         # f32

    # ---- zero-pad a2 into the persistent VMEM scratch -----------------------
    # Border only (interior fully overwritten); re-zeroed every step so it is
    # correct under any "parallel" partitioning of the grid across cores.
    zr = jnp.zeros((1, W + 2, P), f32)
    zc = jnp.zeros((H + 2, 1, P), f32)
    pad_ref[0:1, :, :] = zr
    pad_ref[H + 1:H + 2, :, :] = zr
    pad_ref[:, 0:1, :] = zc
    pad_ref[:, W + 1:W + 2, :] = zc
    pad_ref[1:H + 1, 1:W + 1, :] = a2.reshape(H, W, P)

    # ---- conv2 (3x3, stride, pad=1): 9 accumulated MXU matmuls -------------
    # bn3 scale is pre-folded into w2's output columns.
    if stride > 1:
        # Pre-stride once: stride*stride parity grids via strided-ds loads;
        # every tap below is then a unit-stride static slice of these values.
        grids = {}
        for pr in sorted({k % stride for k in range(3)}):
            nr = max(k for k in range(3) if k % stride == pr) // stride + Ho
            for pc in sorted({k % stride for k in range(3)}):
                nc = max(k for k in range(3) if k % stride == pc) // stride + Wo
                grids[(pr, pc)] = pad_ref[pl.ds(pr, nr, stride=stride),
                                          pl.ds(pc, nc, stride=stride), :]

    def tap(kh, kw):
        if stride == 1:
            win = pad_ref[kh:kh + Ho, kw:kw + Wo, :]
        else:
            g = grids[(kh % stride, kw % stride)]
            r0, c0 = kh // stride, kw // stride
            win = g[r0:r0 + Ho, c0:c0 + Wo, :]
        return win.reshape(Mo, P).astype(jnp.bfloat16)

    o2 = jnp.dot(tap(0, 0), w2_ref[0], preferred_element_type=f32)   # (Mo, P)
    for t in range(1, 9):
        kh, kw = divmod(t, 3)
        o2 = o2 + jnp.dot(tap(kh, kw), w2_ref[t], preferred_element_type=f32)

    # ---- bn3 shift + relu + conv3 (1x1) -------------------------------------
    a3 = jnp.maximum(o2 + b3_ref[...], 0.0).astype(jnp.bfloat16)
    o3 = jnp.dot(a3, w3_ref[...], preferred_element_type=f32)        # (Mo, C4)

    # ---- residual add + store -----------------------------------------------
    if not has_sc:
        # identity shortcut (wrapper guarantees stride == 1 and Cin == C4)
        sc = x_ref[0].astype(f32).reshape(Mo, C4)
    out_ref[0] = (o3 + sc).reshape(Ho, Wo, C4).astype(out_ref.dtype)


# --------------------------------------------------------------------------
# Wrapper (NHWC, bf16 I/O)
# --------------------------------------------------------------------------
def _fold_bn(bn, eps=1e-5):
    gamma, beta, mean, var = bn
    scale = gamma / jnp.sqrt(var + eps)
    shift = beta - mean * scale
    return scale, shift


def preact_bottleneck_nhwc(x_nhwc, params, *, stride=1,
                           out_dtype=jnp.bfloat16):
    w1, w2, w3 = params["w1"], params["w2"], params["w3"]   # (Cin,P)(3,3,P,P)(P,4P)
    wsc = params.get("wsc")                                 # (Cin, 4P) or None
    N, H, W, Cin = x_nhwc.shape
    P, C4 = w1.shape[1], w3.shape[1]
    Ho = (H - 1) // stride + 1
    Wo = (W - 1) // stride + 1
    has_sc = wsc is not None
    if not has_sc:
        assert stride == 1 and Cin == C4, (
            "identity shortcut requires stride == 1 and in_planes == 4*planes")

    s1, b1 = _fold_bn(params["bn1"])
    s2, b2 = _fold_bn(params["bn2"])
    s3, b3 = _fold_bn(params["bn3"])
    row = lambda v: v.reshape(1, -1).astype(jnp.float32)

    # Fold bn2 scale into conv1's output columns and bn3 scale into conv2's
    # output columns (f32 fold -> bf16 cast); kernel then does only add+relu.
    w1f = (w1.astype(jnp.float32) * s2[None, :]).astype(jnp.bfloat16)
    w2f = (w2.astype(jnp.float32) * s3[None, None, None, :]
           ).reshape(9, P, P).astype(jnp.bfloat16)
    w3b = w3.astype(jnp.bfloat16)

    x = x_nhwc.astype(jnp.bfloat16)          # bf16 I/O halves HBM traffic

    const = lambda shape: pl.BlockSpec(shape, lambda n, s=shape: (0,) * len(s))
    in_specs = [
        pl.BlockSpec((1, H, W, Cin), lambda n: (n, 0, 0, 0)),
        const((1, Cin)), const((1, Cin)), const((Cin, P)),
        const((1, P)), const((9, P, P)),
        const((1, P)), const((P, C4)),
    ]
    args = [x, row(s1), row(b1), w1f, row(b2), w2f, row(b3), w3b]
    if has_sc:
        in_specs.append(const((Cin, C4)))
        args.append(wsc.astype(jnp.bfloat16))

    scratch = [pltpu.VMEM((H + 2, W + 2, P), jnp.float32)]
    if has_sc and stride > 1:
        scratch.append(pltpu.VMEM((H, W, Cin), jnp.float32))

    kernel = functools.partial(_fused_kernel, H=H, W=W, Cin=Cin, P=P, C4=C4,
                               stride=stride, has_sc=has_sc)

    Mo = Ho * Wo
    flops = 2 * N * (H * W * Cin * P + 9 * Mo * P * P + Mo * P * C4
                     + (Mo * Cin * C4 if has_sc else 0))
    bytes_accessed = (int(x.size) * x.dtype.itemsize
                      + N * Mo * C4 * jnp.dtype(out_dtype).itemsize
                      + sum(int(a.size) * a.dtype.itemsize for a in args[1:]))
    cost = pl.CostEstimate(flops=int(flops), transcendentals=0,
                           bytes_accessed=int(bytes_accessed))

    # Raise the scoped-VMEM cap (v5e/v6e have 128 MiB physical), but never
    # above 3/4 of physical so the same code is safe on v7x (64 MiB / TC).
    try:
        phys = pltpu.get_tpu_info().vmem_capacity_bytes
        vmem_limit = int(min(96 * 1024 * 1024, phys * 3 // 4))
    except Exception:
        vmem_limit = 48 * 1024 * 1024

    out = pl.pallas_call(
        kernel,
        out_shape=jax.ShapeDtypeStruct((N, Ho, Wo, C4), out_dtype),
        grid=(N,),
        in_specs=in_specs,
        out_specs=pl.BlockSpec((1, Ho, Wo, C4), lambda n: (n, 0, 0, 0)),
        scratch_shapes=scratch,
        compiler_params=pltpu.CompilerParams(
            dimension_semantics=("parallel",),      # megacore: image per core
            vmem_limit_bytes=vmem_limit),
        cost_estimate=cost,
    )(*args)
    return out


def preact_bottleneck(x_nchw, params, *, stride=1, out_dtype=jnp.bfloat16):
    """NCHW compatibility wrapper (matches the torch module's layout).

    For real networks keep activations NHWC end-to-end and call
    preact_bottleneck_nhwc directly: these transposes are full-tensor HBM
    round trips and should happen only once at model entry/exit.
    """
    x = jnp.transpose(x_nchw, (0, 2, 3, 1))
    out = preact_bottleneck_nhwc(x, params, stride=stride, out_dtype=out_dtype)
    return jnp.transpose(out, (0, 3, 1, 2))


# --------------------------------------------------------------------------
# Pure-JAX reference (true module semantics, f32, NHWC)
# --------------------------------------------------------------------------
def preact_bottleneck_ref_nhwc(x, params, *, stride=1, eps=1e-5):
    x = x.astype(jnp.float32)
    dn = ("NHWC", "HWIO", "NHWC")

    def bn_relu(v, bn):
        g, b, m, var = bn
        return jnp.maximum((v - m) / jnp.sqrt(var + eps) * g + b, 0.0)

    h = bn_relu(x, params["bn1"])
    if params.get("wsc") is not None:
        wsc = params["wsc"].reshape(1, 1, *params["wsc"].shape)
        sc = lax.conv_general_dilated(h, wsc, (stride, stride), "VALID",
                                      dimension_numbers=dn)
    else:
        sc = x
    w1 = params["w1"].reshape(1, 1, *params["w1"].shape)
    o1 = lax.conv_general_dilated(h, w1, (1, 1), "VALID", dimension_numbers=dn)
    a2 = bn_relu(o1, params["bn2"])
    o2 = lax.conv_general_dilated(a2, params["w2"], (stride, stride),
                                  ((1, 1), (1, 1)), dimension_numbers=dn)
    a3 = bn_relu(o2, params["bn3"])
    w3 = params["w3"].reshape(1, 1, *params["w3"].shape)
    o3 = lax.conv_general_dilated(a3, w3, (1, 1), "VALID", dimension_numbers=dn)
    return o3 + sc


# --------------------------------------------------------------------------
# Main
# --------------------------------------------------------------------------
if __name__ == "__main__":
    def bn_params(k, c):
        k1, k2, k3, k4 = jax.random.split(k, 4)
        return (jax.random.uniform(k1, (c,), jnp.float32, 0.5, 1.5),
                0.1 * jax.random.normal(k2, (c,), jnp.float32),
                0.1 * jax.random.normal(k3, (c,), jnp.float32),
                jax.random.uniform(k4, (c,), jnp.float32, 0.5, 1.5))

    def make_params(k, cin, p, with_sc):
        ks = jax.random.split(k, 7)
        c4 = 4 * p
        prm = {
            "bn1": bn_params(ks[0], cin),
            "bn2": bn_params(ks[1], p),
            "bn3": bn_params(ks[2], p),
            "w1": 0.2 * jax.random.normal(ks[3], (cin, p), jnp.float32),
            "w2": 0.2 * jax.random.normal(ks[4], (3, 3, p, p), jnp.float32),
            "w3": 0.2 * jax.random.normal(ks[5], (p, c4), jnp.float32),
        }
        if with_sc:
            prm["wsc"] = 0.2 * jax.random.normal(ks[6], (cin, c4), jnp.float32)
        return prm

    def check(name, n, cin, p, h, w, stride, with_sc, key, use_nchw=False):
        kp, kx = jax.random.split(key)
        prm = make_params(kp, cin, p, with_sc)
        ho, wo = (h - 1) // stride + 1, (w - 1) // stride + 1
        if use_nchw:
            x_nchw = jax.random.normal(kx, (n, cin, h, w), jnp.float32)
            out = jax.block_until_ready(
                preact_bottleneck(x_nchw, prm, stride=stride))
            assert out.shape == (n, 4 * p, ho, wo), (name, out.shape)
            out_nhwc = jnp.transpose(out, (0, 2, 3, 1)).astype(jnp.float32)
            x_nhwc = jnp.transpose(x_nchw, (0, 2, 3, 1))
        else:
            x_nhwc = jax.random.normal(kx, (n, h, w, cin), jnp.float32)
            out_nhwc = jax.block_until_ready(
                preact_bottleneck_nhwc(x_nhwc, prm, stride=stride))
            assert out_nhwc.shape == (n, ho, wo, 4 * p), (name, out_nhwc.shape)
            out_nhwc = out_nhwc.astype(jnp.float32)
        ref = preact_bottleneck_ref_nhwc(x_nhwc, prm, stride=stride)
        err = float(jnp.max(jnp.abs(out_nhwc - ref)))
        # bf16 x/weights/output with f32 accumulation -> bf16-level tolerance
        ok = bool(jnp.allclose(out_nhwc, ref, atol=1e-1, rtol=5e-2))
        assert ok, (name, err)

    key = jax.random.PRNGKey(0)
    k1, k2, k3, k4 = jax.random.split(key, 4)
    # PreActBottleneck(in_planes=8, planes=4, stride=1): 1x1-conv shortcut
    check("conv_shortcut_s1", 2, 8, 4, 16, 16, 1, True, k1)
    # PreActBottleneck(in_planes=16, planes=4, stride=1): identity shortcut
    check("identity_shortcut", 2, 16, 4, 16, 16, 1, False, k2)
    # PreActBottleneck(in_planes=8, planes=4, stride=2): strided conv path
    check("conv_shortcut_s2", 2, 8, 4, 16, 16, 2, True, k3)
    # NCHW compatibility wrapper (layout conversion at model entry/exit)
    check("nchw_wrapper", 2, 16, 4, 16, 16, 1, False, k4, use_nchw=True)

    print("KERNEL_OK")
</pallas_src>

<mosaic_0001>
module attributes {stable_mosaic.version = 11 : i64} {
  func.func @_fused_kernel(%arg0: i32, %arg1: memref<1x16x16x8xbf16, #tpu.memory_space<vmem>>, %arg2: memref<1x8xf32, #tpu.memory_space<vmem>>, %arg3: memref<1x8xf32, #tpu.memory_space<vmem>>, %arg4: memref<8x4xbf16, #tpu.memory_space<vmem>>, %arg5: memref<1x4xf32, #tpu.memory_space<vmem>>, %arg6: memref<9x4x4xbf16, #tpu.memory_space<vmem>>, %arg7: memref<1x4xf32, #tpu.memory_space<vmem>>, %arg8: memref<4x16xbf16, #tpu.memory_space<vmem>>, %arg9: memref<8x16xbf16, #tpu.memory_space<vmem>>, %arg10: memref<1x16x16x16xbf16, #tpu.memory_space<vmem>>, %arg11: memref<18x18x4xf32, #tpu.memory_space<vmem>>) attributes {dimension_semantics = [#tpu.dimension_semantics<parallel>], iteration_bounds = array<i64: 2>, scalar_prefetch = 0 : i64, scratch_operands = 1 : i64, tpu.core_type = #tpu.core_type<tc>, window_params = [{transform_indices = @transform_0, window_bounds = array<i64: 1, 16, 16, 8>}, {pipeline_mode = #tpu.pipeline_mode<synchronous>, transform_indices = @transform_1, window_bounds = array<i64: 1, 8>}, {pipeline_mode = #tpu.pipeline_mode<synchronous>, transform_indices = @transform_2, window_bounds = array<i64: 1, 8>}, {pipeline_mode = #tpu.pipeline_mode<synchronous>, transform_indices = @transform_3, window_bounds = array<i64: 8, 4>}, {pipeline_mode = #tpu.pipeline_mode<synchronous>, transform_indices = @transform_4, window_bounds = array<i64: 1, 4>}, {pipeline_mode = #tpu.pipeline_mode<synchronous>, transform_indices = @transform_5, window_bounds = array<i64: 9, 4, 4>}, {pipeline_mode = #tpu.pipeline_mode<synchronous>, transform_indices = @transform_6, window_bounds = array<i64: 1, 4>}, {pipeline_mode = #tpu.pipeline_mode<synchronous>, transform_indices = @transform_7, window_bounds = array<i64: 4, 16>}, {pipeline_mode = #tpu.pipeline_mode<synchronous>, transform_indices = @transform_8, window_bounds = array<i64: 8, 16>}, {transform_indices = @transform_9, window_bounds = array<i64: 1, 16, 16, 16>}]} {
    %c0 = arith.constant 0 : index
    %c0_0 = arith.constant 0 : index
    %c0_1 = arith.constant 0 : index
    %c0_2 = arith.constant 0 : index
    %0 = vector.load %arg1[%c0, %c0_0, %c0_1, %c0_2] : memref<1x16x16x8xbf16, #tpu.memory_space<vmem>>, vector<1x16x16x8xbf16>
    %1 = vector.shape_cast %0 : vector<1x16x16x8xbf16> to vector<16x16x8xbf16>
    %2 = arith.extf %1 : vector<16x16x8xbf16> to vector<16x16x8xf32>
    %3 = vector.shape_cast %2 : vector<16x16x8xf32> to vector<256x8xf32>
    %c0_3 = arith.constant 0 : index
    %c0_4 = arith.constant 0 : index
    %4 = vector.load %arg2[%c0_3, %c0_4] : memref<1x8xf32, #tpu.memory_space<vmem>>, vector<1x8xf32>
    %5 = vector.broadcast %4 : vector<1x8xf32> to vector<256x8xf32>
    %6 = arith.mulf %3, %5 : vector<256x8xf32>
    %c0_5 = arith.constant 0 : index
    %c0_6 = arith.constant 0 : index
    %7 = vector.load %arg3[%c0_5, %c0_6] : memref<1x8xf32, #tpu.memory_space<vmem>>, vector<1x8xf32>
    %8 = vector.broadcast %7 : vector<1x8xf32> to vector<256x8xf32>
    %9 = arith.addf %6, %8 : vector<256x8xf32>
    %cst = arith.constant 0.000000e+00 : f32
    %10 = vector.broadcast %cst : f32 to vector<256x8xf32>
    %11 = arith.maximumf %9, %10 : vector<256x8xf32>
    %12 = arith.truncf %11 : vector<256x8xf32> to vector<256x8xbf16>
    %c0_7 = arith.constant 0 : index
    %c0_8 = arith.constant 0 : index
    %13 = vector.load %arg9[%c0_7, %c0_8] : memref<8x16xbf16, #tpu.memory_space<vmem>>, vector<8x16xbf16>
    %cst_9 = arith.constant dense<0.000000e+00> : vector<256x16xf32>
    %14 = tpu.matmul %12, %13, %cst_9 {dimension_numbers = #tpu.dot_dimension_numbers<[1], [0], [0], [1], [0, 0, 1, 1], [], []>} : vector<256x8xbf16>, vector<8x16xbf16>, vector<256x16xf32> -> vector<256x16xf32>
    %c0_10 = arith.constant 0 : index
    %c0_11 = arith.constant 0 : index
    %15 = vector.load %arg4[%c0_10, %c0_11] : memref<8x4xbf16, #tpu.memory_space<vmem>>, vector<8x4xbf16>
    %cst_12 = arith.constant dense<0.000000e+00> : vector<256x4xf32>
    %16 = tpu.matmul %12, %15, %cst_12 {dimension_numbers = #tpu.dot_dimension_numbers<[1], [0], [0], [1], [0, 0, 1, 1], [], []>} : vector<256x8xbf16>, vector<8x4xbf16>, vector<256x4xf32> -> vector<256x4xf32>
    %c0_13 = arith.constant 0 : index
    %c0_14 = arith.constant 0 : index
    %17 = vector.load %arg5[%c0_13, %c0_14] : memref<1x4xf32, #tpu.memory_space<vmem>>, vector<1x4xf32>
    %18 = vector.broadcast %17 : vector<1x4xf32> to vector<256x4xf32>
    %19 = arith.addf %16, %18 : vector<256x4xf32>
    %cst_15 = arith.constant 0.000000e+00 : f32
    %20 = vector.broadcast %cst_15 : f32 to vector<256x4xf32>
    %21 = arith.maximumf %19, %20 : vector<256x4xf32>
    %cst_16 = arith.constant 0.000000e+00 : f32
    %22 = vector.broadcast %cst_16 : f32 to vector<1x18x4xf32>
    %cst_17 = arith.constant 0.000000e+00 : f32
    %23 = vector.broadcast %cst_17 : f32 to vector<18x1x4xf32>
    %c0_18 = arith.constant 0 : index
    %c0_19 = arith.constant 0 : index
    %c0_20 = arith.constant 0 : index
    %24 = vector.load %arg11[%c0_18, %c0_19, %c0_20] : memref<18x18x4xf32, #tpu.memory_space<vmem>>, vector<1x18x4xf32>
    tpu.vector_store %arg11[%c0_18, %c0_19, %c0_20], %22 {strides = array<i32>} : memref<18x18x4xf32, #tpu.memory_space<vmem>>, vector<1x18x4xf32>,
    %c17 = arith.constant 17 : index
    %c0_21 = arith.constant 0 : index
    %c0_22 = arith.constant 0 : index
    %25 = vector.load %arg11[%c17, %c0_21, %c0_22] : memref<18x18x4xf32, #tpu.memory_space<vmem>>, vector<1x18x4xf32>
    tpu.vector_store %arg11[%c17, %c0_21, %c0_22], %22 {strides = array<i32>} : memref<18x18x4xf32, #tpu.memory_space<vmem>>, vector<1x18x4xf32>,
    %c0_23 = arith.constant 0 : index
    %c0_24 = arith.constant 0 : index
    %c0_25 = arith.constant 0 : index
    %26 = vector.load %arg11[%c0_23, %c0_24, %c0_25] : memref<18x18x4xf32, #tpu.memory_space<vmem>>, vector<18x1x4xf32>
    tpu.vector_store %arg11[%c0_23, %c0_24, %c0_25], %23 {strides = array<i32>} : memref<18x18x4xf32, #tpu.memory_space<vmem>>, vector<18x1x4xf32>,
    %c0_26 = arith.constant 0 : index
    %c17_27 = arith.constant 17 : index
    %c0_28 = arith.constant 0 : index
    %27 = vector.load %arg11[%c0_26, %c17_27, %c0_28] : memref<18x18x4xf32, #tpu.memory_space<vmem>>, vector<18x1x4xf32>
    tpu.vector_store %arg11[%c0_26, %c17_27, %c0_28], %23 {strides = array<i32>} : memref<18x18x4xf32, #tpu.memory_space<vmem>>, vector<18x1x4xf32>,
    %28 = vector.shape_cast %21 : vector<256x4xf32> to vector<16x16x4xf32>
    %c1 = arith.constant 1 : index
    %c1_29 = arith.constant 1 : index
    %c0_30 = arith.constant 0 : index
    %29 = vector.load %arg11[%c1, %c1_29, %c0_30] : memref<18x18x4xf32, #tpu.memory_space<vmem>>, vector<16x16x4xf32>
    tpu.vector_store %arg11[%c1, %c1_29, %c0_30], %28 {strides = array<i32>} : memref<18x18x4xf32, #tpu.memory_space<vmem>>, vector<16x16x4xf32>,
    %c0_31 = arith.constant 0 : index
    %c0_32 = arith.constant 0 : index
    %c0_33 = arith.constant 0 : index
    %30 = vector.load %arg11[%c0_31, %c0_32, %c0_33] : memref<18x18x4xf32, #tpu.memory_space<vmem>>, vector<16x16x4xf32>
    %31 = vector.shape_cast %30 : vector<16x16x4xf32> to vector<256x4xf32>
    %32 = arith.truncf %31 : vector<256x4xf32> to vector<256x4xbf16>
    %c0_34 = arith.constant 0 : index
    %c0_35 = arith.constant 0 : index
    %c0_36 = arith.constant 0 : index
    %33 = vector.load %arg6[%c0_34, %c0_35, %c0_36] : memref<9x4x4xbf16, #tpu.memory_space<vmem>>, vector<1x4x4xbf16>
    %34 = vector.shape_cast %33 : vector<1x4x4xbf16> to vector<4x4xbf16>
    %cst_37 = arith.constant dense<0.000000e+00> : vector<256x4xf32>
    %35 = tpu.matmul %32, %34, %cst_37 {dimension_numbers = #tpu.dot_dimension_numbers<[1], [0], [0], [1], [0, 0, 1, 1], [], []>} : vector<256x4xbf16>, vector<4x4xbf16>, vector<256x4xf32> -> vector<256x4xf32>
    %c0_38 = arith.constant 0 : index
    %c1_39 = arith.constant 1 : index
    %c0_40 = arith.constant 0 : index
    %36 = vector.load %arg11[%c0_38, %c1_39, %c0_40] : memref<18x18x4xf32, #tpu.memory_space<vmem>>, vector<16x16x4xf32>
    %37 = vector.shape_cast %36 : vector<16x16x4xf32> to vector<256x4xf32>
    %38 = arith.truncf %37 : vector<256x4xf32> to vector<256x4xbf16>
    %c1_41 = arith.constant 1 : index
    %c0_42 = arith.constant 0 : index
    %c0_43 = arith.constant 0 : index
    %39 = vector.load %arg6[%c1_41, %c0_42, %c0_43] : memref<9x4x4xbf16, #tpu.memory_space<vmem>>, vector<1x4x4xbf16>
    %40 = vector.shape_cast %39 : vector<1x4x4xbf16> to vector<4x4xbf16>
    %cst_44 = arith.constant dense<0.000000e+00> : vector<256x4xf32>
    %41 = tpu.matmul %38, %40, %cst_44 {dimension_numbers = #tpu.dot_dimension_numbers<[1], [0], [0], [1], [0, 0, 1, 1], [], []>} : vector<256x4xbf16>, vector<4x4xbf16>, vector<256x4xf32> -> vector<256x4xf32>
    %42 = arith.addf %35, %41 : vector<256x4xf32>
    %c0_45 = arith.constant 0 : index
    %c2 = arith.constant 2 : index
    %c0_46 = arith.constant 0 : index
    %43 = vector.load %arg11[%c0_45, %c2, %c0_46] : memref<18x18x4xf32, #tpu.memory_space<vmem>>, vector<16x16x4xf32>
    %44 = vector.shape_cast %43 : vector<16x16x4xf32> to vector<256x4xf32>
    %45 = arith.truncf %44 : vector<256x4xf32> to vector<256x4xbf16>
    %c2_47 = arith.constant 2 : index
    %c0_48 = arith.constant 0 : index
    %c0_49 = arith.constant 0 : index
    %46 = vector.load %arg6[%c2_47, %c0_48, %c0_49] : memref<9x4x4xbf16, #tpu.memory_space<vmem>>, vector<1x4x4xbf16>
    %47 = vector.shape_cast %46 : vector<1x4x4xbf16> to vector<4x4xbf16>
    %cst_50 = arith.constant dense<0.000000e+00> : vector<256x4xf32>
    %48 = tpu.matmul %45, %47, %cst_50 {dimension_numbers = #tpu.dot_dimension_numbers<[1], [0], [0], [1], [0, 0, 1, 1], [], []>} : vector<256x4xbf16>, vector<4x4xbf16>, vector<256x4xf32> -> vector<256x4xf32>
    %49 = arith.addf %42, %48 : vector<256x4xf32>
    %c1_51 = arith.constant 1 : index
    %c0_52 = arith.constant 0 : index
    %c0_53 = arith.constant 0 : index
    %50 = vector.load %arg11[%c1_51, %c0_52, %c0_53] : memref<18x18x4xf32, #tpu.memory_space<vmem>>, vector<16x16x4xf32>
    %51 = vector.shape_cast %50 : vector<16x16x4xf32> to vector<256x4xf32>
    %52 = arith.truncf %51 : vector<256x4xf32> to vector<256x4xbf16>
    %c3 = arith.constant 3 : index
    %c0_54 = arith.constant 0 : index
    %c0_55 = arith.constant 0 : index
    %53 = vector.load %arg6[%c3, %c0_54, %c0_55] : memref<9x4x4xbf16, #tpu.memory_space<vmem>>, vector<1x4x4xbf16>
    %54 = vector.shape_cast %53 : vector<1x4x4xbf16> to vector<4x4xbf16>
    %cst_56 = arith.constant dense<0.000000e+00> : vector<256x4xf32>
    %55 = tpu.matmul %52, %54, %cst_56 {dimension_numbers = #tpu.dot_dimension_numbers<[1], [0], [0], [1], [0, 0, 1, 1], [], []>} : vector<256x4xbf16>, vector<4x4xbf16>, vector<256x4xf32> -> vector<256x4xf32>
    %56 = arith.addf %49, %55 : vector<256x4xf32>
    %c1_57 = arith.constant 1 : index
    %c1_58 = arith.constant 1 : index
    %c0_59 = arith.constant 0 : index
    %57 = vector.load %arg11[%c1_57, %c1_58, %c0_59] : memref<18x18x4xf32, #tpu.memory_space<vmem>>, vector<16x16x4xf32>
    %58 = vector.shape_cast %57 : vector<16x16x4xf32> to vector<256x4xf32>
    %59 = arith.truncf %58 : vector<256x4xf32> to vector<256x4xbf16>
    %c4 = arith.constant 4 : index
    %c0_60 = arith.constant 0 : index
    %c0_61 = arith.constant 0 : index
    %60 = vector.load %arg6[%c4, %c0_60, %c0_61] : memref<9x4x4xbf16, #tpu.memory_space<vmem>>, vector<1x4x4xbf16>
    %61 = vector.shape_cast %60 : vector<1x4x4xbf16> to vector<4x4xbf16>
    %cst_62 = arith.constant dense<0.000000e+00> : vector<256x4xf32>
    %62 = tpu.matmul %59, %61, %cst_62 {dimension_numbers = #tpu.dot_dimension_numbers<[1], [0], [0], [1], [0, 0, 1, 1], [], []>} : vector<256x4xbf16>, vector<4x4xbf16>, vector<256x4xf32> -> vector<256x4xf32>
    %63 = arith.addf %56, %62 : vector<256x4xf32>
    %c1_63 = arith.constant 1 : index
    %c2_64 = arith.constant 2 : index
    %c0_65 = arith.constant 0 : index
    %64 = vector.load %arg11[%c1_63, %c2_64, %c0_65] : memref<18x18x4xf32, #tpu.memory_space<vmem>>, vector<16x16x4xf32>
    %65 = vector.shape_cast %64 : vector<16x16x4xf32> to vector<256x4xf32>
    %66 = arith.truncf %65 : vector<256x4xf32> to vector<256x4xbf16>
    %c5 = arith.constant 5 : index
    %c0_66 = arith.constant 0 : index
    %c0_67 = arith.constant 0 : index
    %67 = vector.load %arg6[%c5, %c0_66, %c0_67] : memref<9x4x4xbf16, #tpu.memory_space<vmem>>, vector<1x4x4xbf16>
    %68 = vector.shape_cast %67 : vector<1x4x4xbf16> to vector<4x4xbf16>
    %cst_68 = arith.constant dense<0.000000e+00> : vector<256x4xf32>
    %69 = tpu.matmul %66, %68, %cst_68 {dimension_numbers = #tpu.dot_dimension_numbers<[1], [0], [0], [1], [0, 0, 1, 1], [], []>} : vector<256x4xbf16>, vector<4x4xbf16>, vector<256x4xf32> -> vector<256x4xf32>
    %70 = arith.addf %63, %69 : vector<256x4xf32>
    %c2_69 = arith.constant 2 : index
    %c0_70 = arith.constant 0 : index
    %c0_71 = arith.constant 0 : index
    %71 = vector.load %arg11[%c2_69, %c0_70, %c0_71] : memref<18x18x4xf32, #tpu.memory_space<vmem>>, vector<16x16x4xf32>
    %72 = vector.shape_cast %71 : vector<16x16x4xf32> to vector<256x4xf32>
    %73 = arith.truncf %72 : vector<256x4xf32> to vector<256x4xbf16>
    %c6 = arith.constant 6 : index
    %c0_72 = arith.constant 0 : index
    %c0_73 = arith.constant 0 : index
    %74 = vector.load %arg6[%c6, %c0_72, %c0_73] : memref<9x4x4xbf16, #tpu.memory_space<vmem>>, vector<1x4x4xbf16>
    %75 = vector.shape_cast %74 : vector<1x4x4xbf16> to vector<4x4xbf16>
    %cst_74 = arith.constant dense<0.000000e+00> : vector<256x4xf32>
    %76 = tpu.matmul %73, %75, %cst_74 {dimension_numbers = #tpu.dot_dimension_numbers<[1], [0], [0], [1], [0, 0, 1, 1], [], []>} : vector<256x4xbf16>, vector<4x4xbf16>, vector<256x4xf32> -> vector<256x4xf32>
    %77 = arith.addf %70, %76 : vector<256x4xf32>
    %c2_75 = arith.constant 2 : index
    %c1_76 = arith.constant 1 : index
    %c0_77 = arith.constant 0 : index
    %78 = vector.load %arg11[%c2_75, %c1_76, %c0_77] : memref<18x18x4xf32, #tpu.memory_space<vmem>>, vector<16x16x4xf32>
    %79 = vector.shape_cast %78 : vector<16x16x4xf32> to vector<256x4xf32>
    %80 = arith.truncf %79 : vector<256x4xf32> to vector<256x4xbf16>
    %c7 = arith.constant 7 : index
    %c0_78 = arith.constant 0 : index
    %c0_79 = arith.constant 0 : index
    %81 = vector.load %arg6[%c7, %c0_78, %c0_79] : memref<9x4x4xbf16, #tpu.memory_space<vmem>>, vector<1x4x4xbf16>
    %82 = vector.shape_cast %81 : vector<1x4x4xbf16> to vector<4x4xbf16>
    %cst_80 = arith.constant dense<0.000000e+00> : vector<256x4xf32>
    %83 = tpu.matmul %80, %82, %cst_80 {dimension_numbers = #tpu.dot_dimension_numbers<[1], [0], [0], [1], [0, 0, 1, 1], [], []>} : vector<256x4xbf16>, vector<4x4xbf16>, vector<256x4xf32> -> vector<256x4xf32>
    %84 = arith.addf %77, %83 : vector<256x4xf32>
    %c2_81 = arith.constant 2 : index
    %c2_82 = arith.constant 2 : index
    %c0_83 = arith.constant 0 : index
    %85 = vector.load %arg11[%c2_81, %c2_82, %c0_83] : memref<18x18x4xf32, #tpu.memory_space<vmem>>, vector<16x16x4xf32>
    %86 = vector.shape_cast %85 : vector<16x16x4xf32> to vector<256x4xf32>
    %87 = arith.truncf %86 : vector<256x4xf32> to vector<256x4xbf16>
    %c8 = arith.constant 8 : index
    %c0_84 = arith.constant 0 : index
    %c0_85 = arith.constant 0 : index
    %88 = vector.load %arg6[%c8, %c0_84, %c0_85] : memref<9x4x4xbf16, #tpu.memory_space<vmem>>, vector<1x4x4xbf16>
    %89 = vector.shape_cast %88 : vector<1x4x4xbf16> to vector<4x4xbf16>
    %cst_86 = arith.constant dense<0.000000e+00> : vector<256x4xf32>
    %90 = tpu.matmul %87, %89, %cst_86 {dimension_numbers = #tpu.dot_dimension_numbers<[1], [0], [0], [1], [0, 0, 1, 1], [], []>} : vector<256x4xbf16>, vector<4x4xbf16>, vector<256x4xf32> -> vector<256x4xf32>
    %91 = arith.addf %84, %90 : vector<256x4xf32>
    %c0_87 = arith.constant 0 : index
    %c0_88 = arith.constant 0 : index
    %92 = vector.load %arg7[%c0_87, %c0_88] : memref<1x4xf32, #tpu.memory_space<vmem>>, vector<1x4xf32>
    %93 = vector.broadcast %92 : vector<1x4xf32> to vector<256x4xf32>
    %94 = arith.addf %91, %93 : vector<256x4xf32>
    %cst_89 = arith.constant 0.000000e+00 : f32
    %95 = vector.broadcast %cst_89 : f32 to vector<256x4xf32>
    %96 = arith.maximumf %94, %95 : vector<256x4xf32>
    %97 = arith.truncf %96 : vector<256x4xf32> to vector<256x4xbf16>
    %c0_90 = arith.constant 0 : index
    %c0_91 = arith.constant 0 : index
    %98 = vector.load %arg8[%c0_90, %c0_91] : memref<4x16xbf16, #tpu.memory_space<vmem>>, vector<4x16xbf16>
    %cst_92 = arith.constant dense<0.000000e+00> : vector<256x16xf32>
    %99 = tpu.matmul %97, %98, %cst_92 {dimension_numbers = #tpu.dot_dimension_numbers<[1], [0], [0], [1], [0, 0, 1, 1], [], []>} : vector<256x4xbf16>, vector<4x16xbf16>, vector<256x16xf32> -> vector<256x16xf32>
    %100 = arith.addf %99, %14 : vector<256x16xf32>
    %101 = vector.shape_cast %100 : vector<256x16xf32> to vector<16x16x16xf32>
    %102 = arith.truncf %101 : vector<16x16x16xf32> to vector<16x16x16xbf16>
    %c0_93 = arith.constant 0 : index
    %c0_94 = arith.constant 0 : index
    %c0_95 = arith.constant 0 : index
    %c0_96 = arith.constant 0 : index
    %103 = vector.load %arg10[%c0_93, %c0_94, %c0_95, %c0_96] : memref<1x16x16x16xbf16, #tpu.memory_space<vmem>>, vector<1x16x16x16xbf16>
    %104 = vector.shape_cast %103 : vector<1x16x16x16xbf16> to vector<16x16x16xbf16>
    %105 = vector.shape_cast %102 : vector<16x16x16xbf16> to vector<1x16x16x16xbf16>
    tpu.vector_store %arg10[%c0_93, %c0_94, %c0_95, %c0_96], %105 {strides = array<i32>} : memref<1x16x16x16xbf16, #tpu.memory_space<vmem>>, vector<1x16x16x16xbf16>,
    return
  }
  func.func @transform_0(%arg0: i32) -> (i32, i32, i32, i32) {
    %c0_i32 = arith.constant 0 : i32
    %c0_i32_0 = arith.constant 0 : i32
    %c0_i32_1 = arith.constant 0 : i32
    %c0_i32_2 = arith.constant 0 : i32
    return %arg0, %c0_i32, %c0_i32_0, %c0_i32_1 : i32, i32, i32, i32
  }
  func.func @transform_1(%arg0: i32) -> (i32, i32) {
    %c0_i32 = arith.constant 0 : i32
    %c0_i32_0 = arith.constant 0 : i32
    %c0_i32_1 = arith.constant 0 : i32
    return %c0_i32, %c0_i32_0 : i32, i32
  }
  func.func @transform_2(%arg0: i32) -> (i32, i32) {
    %c0_i32 = arith.constant 0 : i32
    %c0_i32_0 = arith.constant 0 : i32
    %c0_i32_1 = arith.constant 0 : i32
    return %c0_i32, %c0_i32_0 : i32, i32
  }
  func.func @transform_3(%arg0: i32) -> (i32, i32) {
    %c0_i32 = arith.constant 0 : i32
    %c0_i32_0 = arith.constant 0 : i32
    %c0_i32_1 = arith.constant 0 : i32
    return %c0_i32, %c0_i32_0 : i32, i32
  }
  func.func @transform_4(%arg0: i32) -> (i32, i32) {
    %c0_i32 = arith.constant 0 : i32
    %c0_i32_0 = arith.constant 0 : i32
    %c0_i32_1 = arith.constant 0 : i32
    return %c0_i32, %c0_i32_0 : i32, i32
  }
  func.func @transform_5(%arg0: i32) -> (i32, i32, i32) {
    %c0_i32 = arith.constant 0 : i32
    %c0_i32_0 = arith.constant 0 : i32
    %c0_i32_1 = arith.constant 0 : i32
    %c0_i32_2 = arith.constant 0 : i32
    return %c0_i32, %c0_i32_0, %c0_i32_1 : i32, i32, i32
  }
  func.func @transform_6(%arg0: i32) -> (i32, i32) {
    %c0_i32 = arith.constant 0 : i32
    %c0_i32_0 = arith.constant 0 : i32
    %c0_i32_1 = arith.constant 0 : i32
    return %c0_i32, %c0_i32_0 : i32, i32
  }
  func.func @transform_7(%arg0: i32) -> (i32, i32) {
    %c0_i32 = arith.constant 0 : i32
    %c0_i32_0 = arith.constant 0 : i32
    %c0_i32_1 = arith.constant 0 : i32
    return %c0_i32, %c0_i32_0 : i32, i32
  }
  func.func @transform_8(%arg0: i32) -> (i32, i32) {
    %c0_i32 = arith.constant 0 : i32
    %c0_i32_0 = arith.constant 0 : i32
    %c0_i32_1 = arith.constant 0 : i32
    return %c0_i32, %c0_i32_0 : i32, i32
  }
  func.func @transform_9(%arg0: i32) -> (i32, i32, i32, i32) {
    %c0_i32 = arith.constant 0 : i32
    %c0_i32_0 = arith.constant 0 : i32
    %c0_i32_1 = arith.constant 0 : i32
    %c0_i32_2 = arith.constant 0 : i32
    return %arg0, %c0_i32, %c0_i32_0, %c0_i32_1 : i32, i32, i32, i32
  }
}

</mosaic_0001>

<bundles_post_ra>
// kernel: tpu_custom_call.1
= control target key start
LH: loop header
LB: loop body
LE: loop exit
PB: predicated region body
PF: predicated region fallthrough
CT: control target
= control target key end

     0   :  { %14 = vsyncpa [#allocation4], 0  ;;  %s6787_s0 = inlined_call_operand.vmem [shape: bf16[2,16,16,8], index: 0, kind: input, shape index: {}]   ;;  %s6788_s1 = inlined_call_operand.vmem [shape: f32[1,8], index: 1, kind: input, shape index: {}]   ;;  %s6789_s2 = inlined_call_operand.vmem [shape: f32[1,8], index: 2, kind: input, shape index: {}]   ;;  %s6790_s3 = inlined_call_operand.vmem [shape: bf16[8,4], index: 3, kind: input, shape index: {}]   ;;  %s6791_s4 = inlined_call_operand.vmem [shape: f32[1,4], index: 4, kind: input, shape index: {}]   ;;  %s6792_s5 = inlined_call_operand.vmem [shape: bf16[9,4,4], index: 5, kind: input, shape index: {}]   ;;  %s6793_s6 = inlined_call_operand.vmem [shape: f32[1,4], index: 6, kind: input, shape index: {}]   ;;  %s6794_s7 = inlined_call_operand.vmem [shape: bf16[4,16], index: 7, kind: input, shape index: {}]   ;;  %s6795_s8 = inlined_call_operand.vmem [shape: bf16[8,16], index: 8, kind: input, shape index: {}]   ;;  %s6796_s9 = inlined_call_operand.hbm [shape: bf16[2,16,16,16], index: 9, kind: output, shape index: {}]  }
   0x1   :  { %16 = vsyncpa [#allocation4 + $0x1], 0  ;;  %s5283_s30 = smov 0   ;;  %s5285_s10 = smov 0  }
   0x2   :  { %s5287_s11 = smov 0   ;;  %s5289_s12 = smov 0  }
   0x3 LB: > { %s5304_s13 = sadd.s32 4294967295, %s5227_s12   ;;  %s4140_s14 = sadd.s32 4294967294, %s5227_s12   ;;  %s5227_s12 = sphi %s5289_s12, %s6916_s12   ;;  %s5223_s11 = sphi %s5287_s11, %s6915_s11   ;;  %s5219_s10 = sphi %s5285_s10, %s6914_s10   ;;  %s5215_s30 = sphi %s5283_s30, %s6913_s30  }
   0x4   : > { %s5308_s15 = sadd.s32 1, %s5227_s12   ;;  %s223_s16 = sadd.s32 1, %s5223_s11 }
   0x5   : > { %s220_s17 = ssub.s32 %s5227_s12, %s5308_s15  ;;  %p233_p0 = scmp.ne.s32.totalorder %s5223_s11, %s5219_s10 }
   0x6   : > { %p221_p1 = scmp.eq.s32.totalorder %s220_s17, 0  ;;  %p234_p2 = scmp.eq.s32.totalorder %s5304_s13, 1 }
   0x7   : > { %p239_p3 = scmp.ne.s32.totalorder %s5219_s10, %s5215_s30  ;;  %p240_p4 = scmp.eq.s32.totalorder %s4140_s14, 1 }
   0x8   : > { %s5319_s18 = scalar_select %p221_p1, %s5223_s11, %s223_s16  }
   0x9   : > { %p5321_p5 = por %p234_p2, %p233_p0  ;;  %p5325_p6 = por %p240_p4, %p239_p3 }
   0xa   : > { %p4143_p7 = scmp.ge.s32.totalorder %s5227_s12, 1  ;;  %p290_p8 = scmp.lt.s32.totalorder %s5227_s12, 3 }
   0xc   : > { %p291_p9 = pnand %p4143_p7, %p290_p8 }
   0xe   : > { %294 = sbr.rel (%p291_p9) target bundleno = 987 (0x3db), region = 56 }
  0x13   : > { %vm572_vm0 = vcmask 1043456   ;;  %v737_v0 = vld [vmem:[%s6790_s3] sm:$0xf]  ;;  %p326_p10 = scmp.lt.s32.totalorder %s5304_s13, 1  ;;  %vm1167_vm1 = vcmask 1041408   ;;  %vm523_vm2 = vcmask 64512  }
  0x14   : > { %5114 = vmatprep.subr.msk.bf16.mxu1 %vm572_vm0, %v737_v0  ;;  %v746_v1 = vsel %vm572_vm0, %v737_v0, 0  ;;  %v522_v2 = vld [vmem:[%s6795_s8] sm:$0xf]  ;;  %vm941_vm3 = vcmask 31744   ;;  %vm950_vm4 = vcmask 24576   ;;  %vm944_vm5 = vcmask 25600  }
  0x15   : > { %4740 = vmatpush3.bf16.msra.mxu1 %v746_v1  ;;  %s327_s25 = scalar_select %p326_p10, %s5304_s13, 1  ;;  %5113 = vmatprep.subr.msk.bf16.mxu0 %vm572_vm0, %v522_v2  ;;  %v574_v3 = vsel %vm572_vm0, %v522_v2, 0  ;;  %v4182_v4 = vld [vmem:[%s6792_s5 + $0x2] sm:$0x3]  ;;  %v5351_v5 = vld [vmem:[%s6788_s1] ss:$0 sm:$0xff] }
  0x16   : > { %4706 = vmatpush3.bf16.msra.mxu0 %v574_v3  ;;  %v5360_v14 = vld [vmem:[%s6789_s2] ss:$0 sm:$0xff]  ;;  %v1169_v51 = vsel %vm1167_vm1, %v4182_v4, 0  ;;  %s323_s22 = sand.u32 1, %s5219_s10   ;;  %vm4031_vm6 = vcmask 125952  }
  0x17   : > { %s4388_s28 = sshll.u32 %s327_s25, 7  ;;  %5115 = vmatprep.subr.msk.bf16.mxu0 %vm1167_vm1, %v4182_v4  ;;  %s4144_s23 = sshll.u32 %s323_s22, 7 }
  0x18   : > { %s5346_s16 = scalar_lea.vmem %s6787_s0, %s4388_s28  ;;  %s6640_s24 = scalar_lea.vmem [#allocation3], %s4144_s23 }
  0x19   : > { %v4423_v6 = vld [vmem:[%s5346_s16] sm:$0xff]   ;;  %v4486_v7 = vld [vmem:[%s5346_s16 + $0x8] sm:$0xff]   ;;  %v4487_v8 = vld [vmem:[%s5346_s16 + $0x10] sm:$0xff]   ;;  %s4421_s25 = sshll.u32 %s5304_s13, 11  ;;  %s4078_s26 = sshll.u32 %s6640_s24, 4  ;;  %s6739_s26 = int_to_ptr.vmem [resolvable:$true] %s4078_s26 }
  0x1a   : > { %v4424_v9 = vunpack.c.l.bf16 %v4423_v6  ;;  %v4425_v10 = vunpack.c.h.bf16 %v4423_v6  ;;  %v4428_v11 = vunpack.c.l.bf16 %v4486_v7  ;;  %v4429_v12 = vunpack.c.h.bf16 %v4486_v7  ;;  %v4488_v13 = vld [vmem:[%s5346_s16 + $0x18] sm:$0xff]   ;;  %v4489_v33 = vld [vmem:[%s5346_s16 + $0x20] sm:$0xff]   ;;  %v4490_v38 = vld [vmem:[%s5346_s16 + $0x28] sm:$0xff]   ;;  %s6737_s29 = scalar_lea.hbm %s6796_s9, %s4421_s25  ;;  %s6747_s13 = scalar_lea.sflag [#allocation4], %s323_s22 }
  0x1b   : > { %v4432_v15 = vunpack.c.l.bf16 %v4487_v8  ;;  %v4433_v16 = vunpack.c.h.bf16 %v4487_v8  ;;  %v4436_v17 = vunpack.c.l.bf16 %v4488_v13  ;;  %v4437_v18 = vunpack.c.h.bf16 %v4488_v13  ;;  %v4491_v43 = vld [vmem:[%s5346_s16 + $0x30] sm:$0xff]   ;;  %v4492_v60 = vld [vmem:[%s5346_s16 + $0x38] sm:$0xff]   ;;  %v4493_v1 = vld [vmem:[%s5346_s16 + $0x40] sm:$0xff]   ;;  %s5167_s14 = scalar_lea.vmem %s6739_s26, 2048 }
  0x1c   : > { %v403_v19 = vmul.f32 %v4424_v9, %v5351_v5  ;;  %v404_v20 = vmul.f32 %v4425_v10, %v5351_v5  ;;  %v405_v21 = vmul.f32 %v4428_v11, %v5351_v5  ;;  %v406_v22 = vmul.f32 %v4429_v12, %v5351_v5  ;;  %p5168_p11 = scmp.ne.s32.totalorder %s6739_s26, %s5167_s14 }
  0x1d   : > { %v407_v23 = vmul.f32 %v4432_v15, %v5351_v5  ;;  %v408_v24 = vmul.f32 %v4433_v16, %v5351_v5  ;;  %v409_v25 = vmul.f32 %v4436_v17, %v5351_v5  ;;  %v410_v26 = vmul.f32 %v4437_v18, %v5351_v5 }
  0x1e   : > { %v442_v27 = vadd.f32 %v5360_v14, %v403_v19  ;;  %v443_v28 = vadd.f32 %v5360_v14, %v404_v20  ;;  %v444_v29 = vadd.f32 %v5360_v14, %v405_v21  ;;  %v445_v30 = vadd.f32 %v5360_v14, %v406_v22  ;;  %v4494_v20 = vld [vmem:[%s5346_s16 + $0x48] sm:$0xff]   ;;  %p5169_p12 = pnand %p5168_p11, %p5321_p5 }
  0x1f   : > { %v446_v31 = vadd.f32 %v5360_v14, %v407_v23  ;;  %v447_v32 = vadd.f32 %v5360_v14, %v408_v24  ;;  %v448_v41 = vadd.f32 %v5360_v14, %v409_v25  ;;  %v449_v42 = vadd.f32 %v5360_v14, %v410_v26  ;;  %v4495_v25 = vld [vmem:[%s5346_s16 + $0x50] sm:$0xff]  }
  0x20   : > { %v474_v34 = vmax.f32 %v442_v27, 0.0  ;;  %v475_v35 = vmax.f32 %v443_v28, 0.0  ;;  %v476_v36 = vmax.f32 %v444_v29, 0.0  ;;  %v477_v37 = vmax.f32 %v445_v30, 0.0  ;;  %p5170_p13 = pneg %p5169_p12 }
  0x21   : > { %v478_v39 = vmax.f32 %v446_v31, 0.0  ;;  %v479_v40 = vmax.f32 %v447_v32, 0.0  ;;  %v4440_v46 = vunpack.c.l.bf16 %v4489_v33  ;;  %v4441_v47 = vunpack.c.h.bf16 %v4489_v33 }
  0x22   : > { %v506_v44 = vpack.c.bf16 %v475_v35, %v474_v34  ;;  %v507_v45 = vpack.c.bf16 %v477_v37, %v476_v36  ;;  %v4444_v49 = vunpack.c.l.bf16 %v4490_v38  ;;  %v4445_v50 = vunpack.c.h.bf16 %v4490_v38 }
  0x23   : > { %v508_v48 = vpack.c.bf16 %v479_v40, %v478_v39  ;;  %v411_v52 = vmul.f32 %v4440_v46, %v5351_v5  ;;  %v412_v53 = vmul.f32 %v4441_v47, %v5351_v5  ;;  %v4448_v54 = vunpack.c.l.bf16 %v4491_v43 }
  0x24   : > { %4741 = vmatprep.mubr.msk.bf16.mxu1 %vm523_vm2, %v506_v44  ;;  %v4449_v55 = vunpack.c.h.bf16 %v4491_v43  ;;  %4707 = vmatprep.mubr.msk.bf16.mxu0 %vm523_vm2, %v506_v44  ;;  %v480_v56 = vmax.f32 %v448_v41, 0.0  ;;  %v481_v57 = vmax.f32 %v449_v42, 0.0  ;;  %v413_v58 = vmul.f32 %v4444_v49, %v5351_v5  ;;  %v4496_v42 = vld [vmem:[%s5346_s16 + $0x58] sm:$0xff]  }
  0x25   : > { %4742 = vmatmul.mubr.msk.bf16.vlgmr.msra.gmra.mxu1 %vm523_vm2, %v507_v45  ;;  %v414_v59 = vmul.f32 %v4445_v50, %v5351_v5  ;;  %4708 = vmatmul.mubr.msk.bf16.vlgmr.msra.gmra.mxu0 %vm523_vm2, %v507_v45  ;;  %v450_v61 = vadd.f32 %v5360_v14, %v411_v52  ;;  %v451_v62 = vadd.f32 %v5360_v14, %v412_v53  ;;  %v4452_v4 = vunpack.c.l.bf16 %v4492_v60  ;;  %v4497_v45 = vld [vmem:[%s5346_s16 + $0x60] sm:$0xff]  }
  0x26   : > { %4745 = vmatprep.mubr.msk.bf16.mxu1 %vm523_vm2, %v508_v48  ;;  %v415_v63 = vmul.f32 %v4448_v54, %v5351_v5  ;;  %v416_v0 = vmul.f32 %v4449_v55, %v5351_v5  ;;  %4774 = vmatpush3.bf16.msra.mxu0 %v1169_v51  ;;  %v4453_v6 = vunpack.c.h.bf16 %v4492_v60  ;;  %v509_v7 = vpack.c.bf16 %v481_v57, %v480_v56 }
  0x27   : > { %v482_v2 = vmax.f32 %v450_v61, 0.0  ;;  %v483_v3 = vmax.f32 %v451_v62, 0.0  ;;  %4711 = vmatprep.mubr.msk.bf16.mxu0 %vm523_vm2, %v508_v48  ;;  %v452_v8 = vadd.f32 %v5360_v14, %v413_v58  ;;  %v453_v9 = vadd.f32 %v5360_v14, %v414_v59 }
  0x28   : > { %v454_v11 = vadd.f32 %v5360_v14, %v415_v63  ;;  %v455_v12 = vadd.f32 %v5360_v14, %v416_v0  ;;  %v4456_v13 = vunpack.c.l.bf16 %v4493_v1  ;;  %v4457_v15 = vunpack.c.h.bf16 %v4493_v1  ;;  %v4498_v0 = vld [vmem:[%s5346_s16 + $0x68] sm:$0xff]   ;;  %v4499_v1 = vld [vmem:[%s5346_s16 + $0x70] sm:$0xff]  }
  0x29   : > { %v510_v10 = vpack.c.bf16 %v483_v3, %v482_v2  ;;  %v417_v16 = vmul.f32 %v4452_v4, %v5351_v5  ;;  %v418_v17 = vmul.f32 %v4453_v6, %v5351_v5  ;;  %v484_v18 = vmax.f32 %v452_v8, 0.0 }
  0x2a   : > { %v485_v19 = vmax.f32 %v453_v9, 0.0  ;;  %v486_v21 = vmax.f32 %v454_v11, 0.0  ;;  %v487_v22 = vmax.f32 %v455_v12, 0.0  ;;  %v419_v23 = vmul.f32 %v4456_v13, %v5351_v5 }
  0x2b   : > { %v420_v24 = vmul.f32 %v4457_v15, %v5351_v5  ;;  %v456_v26 = vadd.f32 %v5360_v14, %v417_v16  ;;  %v457_v27 = vadd.f32 %v5360_v14, %v418_v17  ;;  %v4460_v28 = vunpack.c.l.bf16 %v4494_v20 }
  0x2c   : > { %v511_v29 = vpack.c.bf16 %v485_v19, %v484_v18  ;;  %v4461_v30 = vunpack.c.h.bf16 %v4494_v20  ;;  %v4464_v31 = vunpack.c.l.bf16 %v4495_v25  ;;  %v4465_v32 = vunpack.c.h.bf16 %v4495_v25 }
  0x2d   : > { %4746 = vmatmul.mubr.msk.bf16.gmra.mxu1 %vm523_vm2, %v509_v7  ;;  %4712 = vmatmul.mubr.msk.bf16.gmra.mxu0 %vm523_vm2, %v509_v7  ;;  %v512_v33 = vpack.c.bf16 %v487_v22, %v486_v21  ;;  %v458_v34 = vadd.f32 %v5360_v14, %v419_v23  ;;  %v459_v35 = vadd.f32 %v5360_v14, %v420_v24  ;;  %v488_v36 = vmax.f32 %v456_v26, 0.0  ;;  %v4500_v22 = vld [vmem:[%s5346_s16 + $0x78] sm:$0xff]   ;;  %s5230_s16 = smov [#allocation3]  }
  0x2e   : > { %4749 = vmatprep.mubr.msk.bf16.mxu1 %vm523_vm2, %v510_v10  ;;  %4715 = vmatprep.mubr.msk.bf16.mxu0 %vm523_vm2, %v510_v10  ;;  %v489_v37 = vmax.f32 %v457_v27, 0.0  ;;  %v421_v38 = vmul.f32 %v4460_v28, %v5351_v5  ;;  %v422_v39 = vmul.f32 %v4461_v30, %v5351_v5  ;;  %v423_v40 = vmul.f32 %v4464_v31, %v5351_v5  ;;  %s5171_s17 = sshll.u32 %s5230_s16, 4  ;;  %s5172_s17 = int_to_ptr.vmem [resolvable:$false] %s5171_s17 }
  0x2f   : > { %v424_v41 = vmul.f32 %v4465_v32, %v5351_v5  ;;  %v490_v43 = vmax.f32 %v458_v34, 0.0  ;;  %v491_v44 = vmax.f32 %v459_v35, 0.0  ;;  %v4468_v47 = vunpack.c.l.bf16 %v4496_v42  ;;  %s5173_s21 = scalar_lea.vmem %s5172_s17, 4096  ;;  %p5174_p0 = scmp.lt.s32.totalorder %s6739_s26, %s5172_s17 }
  0x30   : > { %v513_v46 = vpack.c.bf16 %v489_v37, %v488_v36  ;;  %v4469_v48 = vunpack.c.h.bf16 %v4496_v42  ;;  %v460_v49 = vadd.f32 %v5360_v14, %v421_v38  ;;  %v461_v50 = vadd.f32 %v5360_v14, %v422_v39  ;;  %p5175_p1 = scmp.lt.s32.totalorder %s5173_s21, %s5167_s14 }
  0x31   : > { %v462_v51 = vadd.f32 %v5360_v14, %v423_v40  ;;  %v463_v52 = vadd.f32 %v5360_v14, %v424_v41  ;;  %v514_v53 = vpack.c.bf16 %v491_v44, %v490_v43  ;;  %v4472_v54 = vunpack.c.l.bf16 %v4497_v45 }
  0x32   : > { %v4473_v55 = vunpack.c.h.bf16 %v4497_v45  ;;  %v425_v56 = vmul.f32 %v4468_v47, %v5351_v5  ;;  %v426_v57 = vmul.f32 %v4469_v48, %v5351_v5  ;;  %v492_v58 = vmax.f32 %v460_v49, 0.0  ;;  %p5176_p2 = por %p5175_p1, %p5174_p0 }
  0x33   : > { %v493_v59 = vmax.f32 %v461_v50, 0.0  ;;  %v494_v60 = vmax.f32 %v462_v51, 0.0  ;;  %v495_v61 = vmax.f32 %v463_v52, 0.0  ;;  %v427_v62 = vmul.f32 %v4472_v54, %v5351_v5  ;;  %v4215_v51 = vld [vmem:[%s6792_s5 + $0x4] sm:$0x3] }
  0x34   : > { %v428_v63 = vmul.f32 %v4473_v55, %v5351_v5  ;;  %v464_v2 = vadd.f32 %v5360_v14, %v425_v56  ;;  %v465_v3 = vadd.f32 %v5360_v14, %v426_v57  ;;  %v4476_v7 = vunpack.c.l.bf16 %v4498_v0  ;;  %5117 = vmatprep.subr.msk.bf16.mxu0 %vm1167_vm1, %v4215_v51  ;;  %v4232_v52 = vld [vmem:[%s6792_s5 + $0x6] sm:$0x3]  ;;  %p5177_p3 = pnand %p5176_p2, %p5170_p13 }
  0x35   : > { %4750 = vmatmul.mubr.msk.bf16.gmra.mxu1 %vm523_vm2, %v511_v29  ;;  %4716 = vmatmul.mubr.msk.bf16.gmra.mxu0 %vm523_vm2, %v511_v29  ;;  %v515_v4 = vpack.c.bf16 %v493_v59, %v492_v58  ;;  %v516_v6 = vpack.c.bf16 %v495_v61, %v494_v60  ;;  %v4477_v8 = vunpack.c.h.bf16 %v4498_v0  ;;  %v466_v9 = vadd.f32 %v5360_v14, %v427_v62 }
  0x36   : > { %4753 = vmatprep.mubr.msk.bf16.mxu1 %vm523_vm2, %v512_v33  ;;  %4719 = vmatprep.mubr.msk.bf16.mxu0 %vm523_vm2, %v512_v33  ;;  %v467_v10 = vadd.f32 %v5360_v14, %v428_v63  ;;  %v4480_v11 = vunpack.c.l.bf16 %v4499_v1  ;;  %v4481_v12 = vunpack.c.h.bf16 %v4499_v1  ;;  %v496_v13 = vmax.f32 %v464_v2, 0.0 }
  0x37   : > { %v497_v15 = vmax.f32 %v465_v3, 0.0  ;;  %v429_v16 = vmul.f32 %v4476_v7, %v5351_v5  ;;  %v430_v17 = vmul.f32 %v4477_v8, %v5351_v5  ;;  %v498_v18 = vmax.f32 %v466_v9, 0.0 }
  0x38   : > { %v499_v19 = vmax.f32 %v467_v10, 0.0  ;;  %v431_v20 = vmul.f32 %v4480_v11, %v5351_v5  ;;  %v432_v21 = vmul.f32 %v4481_v12, %v5351_v5  ;;  %v4484_v26 = vunpack.c.l.bf16 %v4500_v22 }
  0x39   : > { %v517_v23 = vpack.c.bf16 %v497_v15, %v496_v13  ;;  %v468_v24 = vadd.f32 %v5360_v14, %v429_v16  ;;  %v469_v25 = vadd.f32 %v5360_v14, %v430_v17  ;;  %v4485_v27 = vunpack.c.h.bf16 %v4500_v22 }
  0x3a   : > { %v518_v28 = vpack.c.bf16 %v499_v19, %v498_v18  ;;  %v470_v29 = vadd.f32 %v5360_v14, %v431_v20  ;;  %v471_v30 = vadd.f32 %v5360_v14, %v432_v21  ;;  %v433_v33 = vmul.f32 %v4484_v26, %v5351_v5 }
  0x3b   : > { %v500_v31 = vmax.f32 %v468_v24, 0.0  ;;  %v501_v32 = vmax.f32 %v469_v25, 0.0  ;;  %v434_v34 = vmul.f32 %v4485_v27, %v5351_v5  ;;  %v5229_v43 = vmov 0.0  }
  0x3c   : > { %v502_v35 = vmax.f32 %v470_v29, 0.0  ;;  %v503_v36 = vmax.f32 %v471_v30, 0.0  ;;  %v472_v38 = vadd.f32 %v5360_v14, %v433_v33  ;;  %942 = vst.msk [vmem:[#allocation2] sm:$0xff] %vm941_vm3, %v5229_v43  ;;  %943 = vst.msk [vmem:[#allocation2 + $0x8] sm:$0xff] %vm941_vm3, %v5229_v43  ;;  %v1643_v24 = vsel %vm1167_vm1, %v4215_v51, 0 }
  0x3d   : > { %4754 = vmatmul.mubr.msk.bf16.gmra.mxu1 %vm523_vm2, %v513_v46  ;;  %4720 = vmatmul.mubr.msk.bf16.gmra.mxu0 %vm523_vm2, %v513_v46  ;;  %v519_v37 = vpack.c.bf16 %v501_v32, %v500_v31  ;;  %v473_v39 = vadd.f32 %v5360_v14, %v434_v34  ;;  %947 = vst.msk [vmem:[#allocation2 + $0x198] sm:$0xff] %vm941_vm3, %v5229_v43  ;;  %948 = vst.msk [vmem:[#allocation2 + $0x1a0] sm:$0xff] %vm941_vm3, %v5229_v43  ;;  %v1068_v14 = vld [vmem:[%s6792_s5] sm:$0x3]  ;;  %v1937_v34 = vsel %vm1167_vm1, %v4232_v52, 0 }
  0x3e   : > { %4757 = vmatprep.mubr.msk.bf16.mxu1 %vm523_vm2, %v514_v53  ;;  %4723 = vmatprep.mubr.msk.bf16.mxu0 %vm523_vm2, %v514_v53  ;;  %v520_v40 = vpack.c.bf16 %v503_v36, %v502_v35  ;;  %v504_v41 = vmax.f32 %v472_v38, 0.0  ;;  %952 = vst.msk [vmem:[#allocation2 + $0x18] sm:$0x1] %vm950_vm4, %v5229_v43  ;;  %953 = vst.msk [vmem:[#allocation2 + $0x30] sm:$0x1] %vm950_vm4, %v5229_v43  ;;  %v1381_v44 = vsel %vm1167_vm1, %v1068_v14, 0 }
  0x3f   : > { %v505_v42 = vmax.f32 %v473_v39, 0.0  ;;  %954 = vst.msk [vmem:[#allocation2 + $0x48] sm:$0x1] %vm950_vm4, %v5229_v43  ;;  %955 = vst.msk [vmem:[#allocation2 + $0x60] sm:$0x1] %vm950_vm4, %v5229_v43  ;;  %5116 = vmatprep.subr.msk.bf16.mxu1 %vm1167_vm1, %v1068_v14 }
  0x40   : > { %956 = vst.msk [vmem:[#allocation2 + $0x78] sm:$0x1] %vm950_vm4, %v5229_v43  ;;  %957 = vst.msk [vmem:[#allocation2 + $0x90] sm:$0x1] %vm950_vm4, %v5229_v43  ;;  %4808 = vmatpush3.bf16.msra.mxu1 %v1381_v44  ;;  %v5529_v53 = vld [vmem:[%s6791_s4] ss:$0 sm:$0xff] }
  0x41   : > { %v521_v5 = vpack.c.bf16 %v505_v42, %v504_v41  ;;  %958 = vst.msk [vmem:[#allocation2 + $0xa8] sm:$0x1] %vm950_vm4, %v5229_v43  ;;  %959 = vst.msk [vmem:[#allocation2 + $0xc0] sm:$0x1] %vm950_vm4, %v5229_v43  ;;  %5118 = vmatprep.subr.msk.bf16.mxu1 %vm1167_vm1, %v4232_v52  ;;  %v5568_v38 = vld [vmem:[%s6792_s5 + $0x8] sm:$0x3] }
  0x42   : > { %960 = vst.msk [vmem:[#allocation2 + $0xd8] sm:$0x1] %vm950_vm4, %v5229_v43  ;;  %961 = vst.msk [vmem:[#allocation2 + $0xf0] sm:$0x1] %vm950_vm4, %v5229_v43  ;;  %v5573_v39 = vld [vmem:[%s6792_s5 + $0xa] sm:$0x3] }
  0x43   : > { %962 = vst.msk [vmem:[#allocation2 + $0x108] sm:$0x1] %vm950_vm4, %v5229_v43  ;;  %963 = vst.msk [vmem:[#allocation2 + $0x120] sm:$0x1] %vm950_vm4, %v5229_v43  ;;  %v1069_v45 = vld [vmem:[#allocation2 + $0x1] sm:$0xff] }
  0x44   : > { %964 = vst.msk [vmem:[#allocation2 + $0x138] sm:$0x1] %vm950_vm4, %v5229_v43  ;;  %965 = vst.msk [vmem:[#allocation2 + $0x150] sm:$0x1] %vm950_vm4, %v5229_v43  ;;  %v1021_v49 = vld [vmem:[#allocation2 + $0x8] sm:$0xff] }
  0x45   : > { %4758 = vmatmul.mubr.msk.bf16.gmra.mxu1 %vm523_vm2, %v515_v4  ;;  %4724 = vmatmul.mubr.msk.bf16.gmra.mxu0 %vm523_vm2, %v515_v4  ;;  %966 = vst.msk [vmem:[#allocation2 + $0x168] sm:$0x1] %vm950_vm4, %v5229_v43  ;;  %967 = vst.msk [vmem:[#allocation2 + $0x180] sm:$0x1] %vm950_vm4, %v5229_v43 }
  0x46   : > { %4761 = vmatprep.mubr.msk.bf16.mxu1 %vm523_vm2, %v516_v6  ;;  %4727 = vmatprep.mubr.msk.bf16.mxu0 %vm523_vm2, %v516_v6  ;;  %970 = vst.msk [vmem:[#allocation2 + $0x29] sm:$0x1] %vm950_vm4, %v5229_v43  ;;  %971 = vst.msk [vmem:[#allocation2 + $0x41] sm:$0x1] %vm950_vm4, %v5229_v43 }
  0x47   : > { %972 = vst.msk [vmem:[#allocation2 + $0x59] sm:$0x1] %vm950_vm4, %v5229_v43  ;;  %973 = vst.msk [vmem:[#allocation2 + $0x71] sm:$0x1] %vm950_vm4, %v5229_v43 }
  0x48   : > { %974 = vst.msk [vmem:[#allocation2 + $0x89] sm:$0x1] %vm950_vm4, %v5229_v43  ;;  %975 = vst.msk [vmem:[#allocation2 + $0xa1] sm:$0x1] %vm950_vm4, %v5229_v43 }
  0x49   : > { %976 = vst.msk [vmem:[#allocation2 + $0xb9] sm:$0x1] %vm950_vm4, %v5229_v43  ;;  %977 = vst.msk [vmem:[#allocation2 + $0xd1] sm:$0x1] %vm950_vm4, %v5229_v43 }
  0x4a   : > { %978 = vst.msk [vmem:[#allocation2 + $0xe9] sm:$0x1] %vm950_vm4, %v5229_v43  ;;  %979 = vst.msk [vmem:[#allocation2 + $0x101] sm:$0x1] %vm950_vm4, %v5229_v43 }
  0x4b   : > { %980 = vst.msk [vmem:[#allocation2 + $0x119] sm:$0x1] %vm950_vm4, %v5229_v43  ;;  %981 = vst.msk [vmem:[#allocation2 + $0x131] sm:$0x1] %vm950_vm4, %v5229_v43 }
  0x4c   : > { %982 = vst.msk [vmem:[#allocation2 + $0x149] sm:$0x1] %vm950_vm4, %v5229_v43  ;;  %983 = vst.msk [vmem:[#allocation2 + $0x161] sm:$0x1] %vm950_vm4, %v5229_v43 }
  0x4d   : > { %4762 = vmatmul.mubr.msk.bf16.gmra.mxu1 %vm523_vm2, %v517_v23  ;;  %4728 = vmatmul.mubr.msk.bf16.gmra.mxu0 %vm523_vm2, %v517_v23  ;;  %984 = vst.msk [vmem:[#allocation2 + $0x179] sm:$0x1] %vm950_vm4, %v5229_v43  ;;  %985 = vst.msk [vmem:[#allocation2 + $0x191] sm:$0x1] %vm950_vm4, %v5229_v43 }
  0x4e   : > { %4765 = vmatprep.mubr.msk.bf16.mxu1 %vm523_vm2, %v518_v28  ;;  %4731 = vmatprep.mubr.msk.bf16.mxu0 %vm523_vm2, %v518_v28  ;;  %951 = vst.msk [vmem:[#allocation2] sm:$0x1] %vm950_vm4, %v5229_v43  ;;  %968 = vst.msk [vmem:[#allocation2 + $0x198] sm:$0x1] %vm950_vm4, %v5229_v43 }
  0x4f   : > { %945 = vst.msk [vmem:[#allocation2 + $0x10] sm:$0x3] %vm944_vm5, %v5229_v43  ;;  %949 = vst.msk [vmem:[#allocation2 + $0x1a8] sm:$0x3] %vm944_vm5, %v5229_v43 }
  0x50   : > { %986 = vst.msk [vmem:[#allocation2 + $0x1a9] sm:$0x1] %vm950_vm4, %v5229_v43  ;;  %969 = vst.msk [vmem:[#allocation2 + $0x11] sm:$0x1] %vm950_vm4, %v5229_v43 }
  0x55   : > { %4766 = vmatmul.mubr.msk.bf16.gmra.mxu1 %vm523_vm2, %v519_v37  ;;  %4732 = vmatmul.mubr.msk.bf16.gmra.mxu0 %vm523_vm2, %v519_v37  ;;  %v1020_v47 = vld [vmem:[#allocation2] sm:$0xff] }
  0x56   : > { %4769 = vmatprep.mubr.msk.bf16.mxu1 %vm523_vm2, %v520_v40  ;;  %4735 = vmatprep.mubr.msk.bf16.mxu0 %vm523_vm2, %v520_v40  ;;  %v1070_v46 = vld [vmem:[#allocation2 + $0x9] sm:$0xff]  ;;  %v1052_v50 = vpack.c.bf16 %v1021_v49, %v1020_v47 }
  0x57   : > { %v1101_v48 = vpack.c.bf16 %v1070_v46, %v1069_v45 }
  0x5d   : > { %4770 = vmatmul.mubr.msk.bf16.gmra.mxu1 %vm523_vm2, %v521_v5  ;;  %4736 = vmatmul.mubr.msk.bf16.gmra.mxu0 %vm523_vm2, %v521_v5 }
  0x5e   : > { %4775 = vmatprep.mubr.msk.bf16.mxu0 %vm941_vm3, %v1101_v48  ;;  %4809 = vmatprep.mubr.msk.bf16.mxu1 %vm941_vm3, %v1052_v50 }
  0xe5   : > { %v4743_v54 = vpop.f32.mrf.mxu1 }
  0xe6   : > { %v791_v55 = vadd.f32 %v4743_v54, %v5529_v53 }
  0xe7   : > { %v782_v56 = vpop.f32.mrf.mxu1 }
  0xe8   : > { %v911_v57 = vmax.f32 %v791_v55, 0.0  ;;  %v783_v58 = vadd.f32 %v5529_v53, %v782_v56 }
  0xe9   : > { %v4744_v59 = vpop.f32.mrf.mxu1 }
  0xea   : > { %990 = vst.msk [vmem:[#allocation2 + $0x31] sm:$0xff] %vm941_vm3, %v911_v57  ;;  %v909_v60 = vmax.f32 %v783_v58, 0.0  ;;  %v794_v61 = vadd.f32 %v4744_v59, %v5529_v53 }
  0xeb   : > { %v785_v62 = vpop.f32.mrf.mxu1 }
  0xec   : > { %988 = vst.msk [vmem:[#allocation2 + $0x19] sm:$0xff] %vm941_vm3, %v909_v60  ;;  %v912_v63 = vmax.f32 %v794_v61, 0.0  ;;  %v786_v0 = vadd.f32 %v5529_v53, %v785_v62 }
  0xed   : > { %v4747_v1 = vpop.f32.mrf.mxu1 }
  0xee   : > { %991 = vst.msk [vmem:[#allocation2 + $0x39] sm:$0xff] %vm941_vm3, %v912_v63  ;;  %v910_v2 = vmax.f32 %v786_v0, 0.0  ;;  %v807_v3 = vadd.f32 %v4747_v1, %v5529_v53 }
  0xef   : > { %v798_v4 = vpop.f32.mrf.mxu1 }
  0xf0   : > { %989 = vst.msk [vmem:[#allocation2 + $0x21] sm:$0xff] %vm941_vm3, %v910_v2  ;;  %v915_v6 = vmax.f32 %v807_v3, 0.0  ;;  %v799_v7 = vadd.f32 %v5529_v53, %v798_v4 }
  0xf1   : > { %v4748_v8 = vpop.f32.mrf.mxu1  ;;  %v1073_v30 = vld [vmem:[#allocation2 + $0x31] sm:$0xff] }
  0xf2   : > { %994 = vst.msk [vmem:[#allocation2 + $0x61] sm:$0xff] %vm941_vm3, %v915_v6  ;;  %v913_v9 = vmax.f32 %v799_v7, 0.0  ;;  %v810_v10 = vadd.f32 %v4748_v8, %v5529_v53  ;;  %v1024_v33 = vld [vmem:[#allocation2 + $0x30] sm:$0xff] }
  0xf3   : > { %v801_v11 = vpop.f32.mrf.mxu1  ;;  %v1071_v18 = vld [vmem:[#allocation2 + $0x19] sm:$0xff] }
  0xf4   : > { %992 = vst.msk [vmem:[#allocation2 + $0x49] sm:$0xff] %vm941_vm3, %v913_v9  ;;  %v916_v12 = vmax.f32 %v810_v10, 0.0  ;;  %v802_v13 = vadd.f32 %v5529_v53, %v801_v11  ;;  %v1022_v19 = vld [vmem:[#allocation2 + $0x18] sm:$0xff] }
  0xf5   : > { %v4751_v15 = vpop.f32.mrf.mxu1  ;;  %v1074_v20 = vld [vmem:[#allocation2 + $0x39] sm:$0xff] }
  0xf6   : > { %995 = vst.msk [vmem:[#allocation2 + $0x69] sm:$0xff] %vm941_vm3, %v916_v12  ;;  %v914_v16 = vmax.f32 %v802_v13, 0.0  ;;  %v823_v17 = vadd.f32 %v4751_v15, %v5529_v53  ;;  %v1025_v25 = vld [vmem:[#allocation2 + $0x38] sm:$0xff]  ;;  %v5554_v32 = vpack.c.bf16 %v1074_v20, %v1073_v30 }
  0xf7   : > { %v814_v21 = vpop.f32.mrf.mxu1  ;;  %v1072_v22 = vld [vmem:[#allocation2 + $0x21] sm:$0xff]  ;;  %v5563_v37 = vpack.c.bf16 %v1025_v25, %v1024_v33 }
  0xf8   : > { %v1023_v23 = vld [vmem:[#allocation2 + $0x20] sm:$0xff]  ;;  %993 = vst.msk [vmem:[#allocation2 + $0x51] sm:$0xff] %vm941_vm3, %v914_v16  ;;  %v919_v26 = vmax.f32 %v823_v17, 0.0  ;;  %v815_v27 = vadd.f32 %v5529_v53, %v814_v21  ;;  %v5550_v28 = vpack.c.bf16 %v1072_v22, %v1071_v18 }
  0xf9   : > { %v5552_v29 = vpack.c.bf16 %v1023_v23, %v1022_v19  ;;  %v4752_v31 = vpop.f32.mrf.mxu1  ;;  %v1077_v56 = vld [vmem:[#allocation2 + $0x61] sm:$0xff] }
  0xfa   : > { %998 = vst.msk [vmem:[#allocation2 + $0x91] sm:$0xff] %vm941_vm3, %v919_v26  ;;  %v917_v35 = vmax.f32 %v815_v27, 0.0  ;;  %v826_v36 = vadd.f32 %v4752_v31, %v5529_v53  ;;  %4776 = vmatmul.mubr.msk.bf16.vlgmr.msra.gmra.mxu0 %vm941_vm3, %v5550_v28  ;;  %v1028_v57 = vld [vmem:[#allocation2 + $0x60] sm:$0xff] }
  0xfb   : > { %4810 = vmatmul.mubr.msk.bf16.vlgmr.msra.gmra.mxu1 %vm941_vm3, %v5552_v29  ;;  %4842 = vmatpush3.bf16.msra.mxu0 %v1643_v24  ;;  %v817_v40 = vpop.f32.mrf.mxu1  ;;  %v1075_v44 = vld [vmem:[#allocation2 + $0x49] sm:$0xff] }
  0xfc   : > { %4779 = vmatprep.mubr.msk.bf16.mxu0 %vm941_vm3, %v5554_v32  ;;  %996 = vst.msk [vmem:[#allocation2 + $0x79] sm:$0xff] %vm941_vm3, %v917_v35  ;;  %v920_v41 = vmax.f32 %v826_v36, 0.0  ;;  %v818_v42 = vadd.f32 %v5529_v53, %v817_v40  ;;  %4813 = vmatprep.mubr.msk.bf16.mxu1 %vm941_vm3, %v5563_v37  ;;  %v1026_v49 = vld [vmem:[#allocation2 + $0x48] sm:$0xff] }
  0xfd   : > { %4876 = vmatpush3.bf16.msra.mxu1 %v1937_v34  ;;  %v4755_v5 = vpop.f32.mrf.mxu1  ;;  %5119 = vmatprep.subr.msk.bf16.mxu0 %vm1167_vm1, %v5568_v38  ;;  %v1078_v45 = vld [vmem:[#allocation2 + $0x69] sm:$0xff] }
  0xfe   : > { %5120 = vmatprep.subr.msk.bf16.mxu1 %vm1167_vm1, %v5573_v39  ;;  %999 = vst.msk [vmem:[#allocation2 + $0x99] sm:$0xff] %vm941_vm3, %v920_v41  ;;  %v918_v43 = vmax.f32 %v818_v42, 0.0  ;;  %v839_v14 = vadd.f32 %v4755_v5, %v5529_v53  ;;  %v1029_v46 = vld [vmem:[#allocation2 + $0x68] sm:$0xff]  ;;  %v5593_v59 = vpack.c.bf16 %v1078_v45, %v1077_v56 }
  0xff   : > { %v830_v47 = vpop.f32.mrf.mxu1  ;;  %v1076_v48 = vld [vmem:[#allocation2 + $0x51] sm:$0xff]  ;;  %v5595_v60 = vpack.c.bf16 %v1029_v46, %v1028_v57 }
 0x100   : > { %v1027_v50 = vld [vmem:[#allocation2 + $0x50] sm:$0xff]  ;;  %997 = vst.msk [vmem:[#allocation2 + $0x81] sm:$0xff] %vm941_vm3, %v918_v43  ;;  %v923_v51 = vmax.f32 %v839_v14, 0.0  ;;  %v831_v52 = vadd.f32 %v5529_v53, %v830_v47  ;;  %v5589_v54 = vpack.c.bf16 %v1076_v48, %v1075_v44 }
 0x101   : > { %v5591_v55 = vpack.c.bf16 %v1027_v50, %v1026_v49  ;;  %v4756_v58 = vpop.f32.mrf.mxu1  ;;  %v1081_v18 = vld [vmem:[#allocation2 + $0x91] sm:$0xff] }
 0x102   : > { %1002 = vst.msk [vmem:[#allocation2 + $0xc1] sm:$0xff] %vm941_vm3, %v923_v51  ;;  %v921_v61 = vmax.f32 %v831_v52, 0.0  ;;  %v842_v62 = vadd.f32 %v4756_v58, %v5529_v53  ;;  %4780 = vmatmul.mubr.msk.bf16.gmra.mxu0 %vm941_vm3, %v5589_v54  ;;  %v1032_v19 = vld [vmem:[#allocation2 + $0x90] sm:$0xff] }
 0x103   : > { %4814 = vmatmul.mubr.msk.bf16.gmra.mxu1 %vm941_vm3, %v5591_v55  ;;  %v833_v63 = vpop.f32.mrf.mxu1  ;;  %4783 = vmatprep.mubr.msk.bf16.mxu0 %vm941_vm3, %v5593_v59  ;;  %v1079_v6 = vld [vmem:[#allocation2 + $0x79] sm:$0xff] }
 0x104   : > { %4817 = vmatprep.mubr.msk.bf16.mxu1 %vm941_vm3, %v5595_v60  ;;  %1000 = vst.msk [vmem:[#allocation2 + $0xa9] sm:$0xff] %vm941_vm3, %v921_v61  ;;  %v924_v0 = vmax.f32 %v842_v62, 0.0  ;;  %v834_v1 = vadd.f32 %v5529_v53, %v833_v63  ;;  %v1030_v11 = vld [vmem:[#allocation2 + $0x78] sm:$0xff] }
 0x105   : > { %v4759_v2 = vpop.f32.mrf.mxu1  ;;  %v1082_v7 = vld [vmem:[#allocation2 + $0x99] sm:$0xff] }
 0x106   : > { %1003 = vst.msk [vmem:[#allocation2 + $0xc9] sm:$0xff] %vm941_vm3, %v924_v0  ;;  %v922_v3 = vmax.f32 %v834_v1, 0.0  ;;  %v855_v4 = vadd.f32 %v4759_v2, %v5529_v53  ;;  %v1033_v8 = vld [vmem:[#allocation2 + $0x98] sm:$0xff]  ;;  %v5617_v21 = vpack.c.bf16 %v1082_v7, %v1081_v18 }
 0x107   : > { %v846_v9 = vpop.f32.mrf.mxu1  ;;  %v1080_v10 = vld [vmem:[#allocation2 + $0x81] sm:$0xff]  ;;  %v5619_v22 = vpack.c.bf16 %v1033_v8, %v1032_v19 }
 0x108   : > { %v1031_v12 = vld [vmem:[#allocation2 + $0x80] sm:$0xff]  ;;  %1001 = vst.msk [vmem:[#allocation2 + $0xb1] sm:$0xff] %vm941_vm3, %v922_v3  ;;  %v927_v13 = vmax.f32 %v855_v4, 0.0  ;;  %v847_v15 = vadd.f32 %v5529_v53, %v846_v9  ;;  %v5613_v16 = vpack.c.bf16 %v1080_v10, %v1079_v6 }
 0x109   : > { %v5615_v17 = vpack.c.bf16 %v1031_v12, %v1030_v11  ;;  %v4760_v20 = vpop.f32.mrf.mxu1  ;;  %v1085_v46 = vld [vmem:[#allocation2 + $0xc1] sm:$0xff] }
 0x10a   : > { %1006 = vst.msk [vmem:[#allocation2 + $0xf1] sm:$0xff] %vm941_vm3, %v927_v13  ;;  %v925_v23 = vmax.f32 %v847_v15, 0.0  ;;  %v858_v24 = vadd.f32 %v4760_v20, %v5529_v53  ;;  %4784 = vmatmul.mubr.msk.bf16.gmra.mxu0 %vm941_vm3, %v5613_v16  ;;  %v1036_v47 = vld [vmem:[#allocation2 + $0xc0] sm:$0xff] }
 0x10b   : > { %4818 = vmatmul.mubr.msk.bf16.gmra.mxu1 %vm941_vm3, %v5615_v17  ;;  %v849_v25 = vpop.f32.mrf.mxu1  ;;  %4787 = vmatprep.mubr.msk.bf16.mxu0 %vm941_vm3, %v5617_v21  ;;  %v1083_v34 = vld [vmem:[#allocation2 + $0xa9] sm:$0xff] }
 0x10c   : > { %4821 = vmatprep.mubr.msk.bf16.mxu1 %vm941_vm3, %v5619_v22  ;;  %1004 = vst.msk [vmem:[#allocation2 + $0xd9] sm:$0xff] %vm941_vm3, %v925_v23  ;;  %v928_v26 = vmax.f32 %v858_v24, 0.0  ;;  %v850_v27 = vadd.f32 %v5529_v53, %v849_v25  ;;  %v1034_v42 = vld [vmem:[#allocation2 + $0xa8] sm:$0xff] }
 0x10d   : > { %v4763_v30 = vpop.f32.mrf.mxu1  ;;  %v1086_v35 = vld [vmem:[#allocation2 + $0xc9] sm:$0xff] }
 0x10e   : > { %1007 = vst.msk [vmem:[#allocation2 + $0xf9] sm:$0xff] %vm941_vm3, %v928_v26  ;;  %v926_v31 = vmax.f32 %v850_v27, 0.0  ;;  %v871_v33 = vadd.f32 %v4763_v30, %v5529_v53  ;;  %v1037_v36 = vld [vmem:[#allocation2 + $0xc8] sm:$0xff]  ;;  %v5641_v49 = vpack.c.bf16 %v1086_v35, %v1085_v46 }
 0x10f   : > { %v862_v40 = vpop.f32.mrf.mxu1  ;;  %v1084_v41 = vld [vmem:[#allocation2 + $0xb1] sm:$0xff]  ;;  %v5643_v50 = vpack.c.bf16 %v1037_v36, %v1036_v47 }
 0x110   : > { %v1035_v5 = vld [vmem:[#allocation2 + $0xb0] sm:$0xff]  ;;  %1005 = vst.msk [vmem:[#allocation2 + $0xe1] sm:$0xff] %vm941_vm3, %v926_v31  ;;  %v931_v43 = vmax.f32 %v871_v33, 0.0  ;;  %v863_v14 = vadd.f32 %v5529_v53, %v862_v40  ;;  %v5637_v44 = vpack.c.bf16 %v1084_v41, %v1083_v34 }
 0x111   : > { %v5639_v45 = vpack.c.bf16 %v1035_v5, %v1034_v42  ;;  %v4764_v48 = vpop.f32.mrf.mxu1  ;;  %v1089_v12 = vld [vmem:[#allocation2 + $0xf1] sm:$0xff] }
 0x112   : > { %1010 = vst.msk [vmem:[#allocation2 + $0x121] sm:$0xff] %vm941_vm3, %v931_v43  ;;  %v929_v51 = vmax.f32 %v863_v14, 0.0  ;;  %v874_v52 = vadd.f32 %v4764_v48, %v5529_v53  ;;  %4788 = vmatmul.mubr.msk.bf16.gmra.mxu0 %vm941_vm3, %v5637_v44  ;;  %v1040_v13 = vld [vmem:[#allocation2 + $0xf0] sm:$0xff] }
 0x113   : > { %4822 = vmatmul.mubr.msk.bf16.gmra.mxu1 %vm941_vm3, %v5639_v45  ;;  %v865_v56 = vpop.f32.mrf.mxu1  ;;  %4791 = vmatprep.mubr.msk.bf16.mxu0 %vm941_vm3, %v5641_v49  ;;  %v1087_v0 = vld [vmem:[#allocation2 + $0xd9] sm:$0xff] }
 0x114   : > { %4825 = vmatprep.mubr.msk.bf16.mxu1 %vm941_vm3, %v5643_v50  ;;  %1008 = vst.msk [vmem:[#allocation2 + $0x109] sm:$0xff] %vm941_vm3, %v929_v51  ;;  %v932_v57 = vmax.f32 %v874_v52, 0.0  ;;  %v866_v58 = vadd.f32 %v5529_v53, %v865_v56  ;;  %v1038_v6 = vld [vmem:[#allocation2 + $0xd8] sm:$0xff] }
 0x115   : > { %v4767_v61 = vpop.f32.mrf.mxu1  ;;  %v1090_v1 = vld [vmem:[#allocation2 + $0xf9] sm:$0xff] }
 0x116   : > { %1011 = vst.msk [vmem:[#allocation2 + $0x129] sm:$0xff] %vm941_vm3, %v932_v57  ;;  %v930_v62 = vmax.f32 %v866_v58, 0.0  ;;  %v887_v63 = vadd.f32 %v4767_v61, %v5529_v53  ;;  %v1041_v2 = vld [vmem:[#allocation2 + $0xf8] sm:$0xff]  ;;  %v5665_v18 = vpack.c.bf16 %v1090_v1, %v1089_v12 }
 0x117   : > { %v878_v3 = vpop.f32.mrf.mxu1  ;;  %v1088_v4 = vld [vmem:[#allocation2 + $0xe1] sm:$0xff]  ;;  %v5667_v19 = vpack.c.bf16 %v1041_v2, %v1040_v13 }
 0x118   : > { %v1039_v7 = vld [vmem:[#allocation2 + $0xe0] sm:$0xff]  ;;  %1009 = vst.msk [vmem:[#allocation2 + $0x111] sm:$0xff] %vm941_vm3, %v930_v62  ;;  %v935_v8 = vmax.f32 %v887_v63, 0.0  ;;  %v879_v9 = vadd.f32 %v5529_v53, %v878_v3  ;;  %v5661_v10 = vpack.c.bf16 %v1088_v4, %v1087_v0 }
 0x119   : > { %v5663_v11 = vpack.c.bf16 %v1039_v7, %v1038_v6  ;;  %v4768_v15 = vpop.f32.mrf.mxu1  ;;  %v1093_v47 = vld [vmem:[#allocation2 + $0x121] sm:$0xff] }
 0x11a   : > { %1014 = vst.msk [vmem:[#allocation2 + $0x151] sm:$0xff] %vm941_vm3, %v935_v8  ;;  %v933_v20 = vmax.f32 %v879_v9, 0.0  ;;  %v890_v23 = vadd.f32 %v4768_v15, %v5529_v53  ;;  %4792 = vmatmul.mubr.msk.bf16.gmra.mxu0 %vm941_vm3, %v5661_v10  ;;  %v1044_v48 = vld [vmem:[#allocation2 + $0x120] sm:$0xff] }
 0x11b   : > { %4826 = vmatmul.mubr.msk.bf16.gmra.mxu1 %vm941_vm3, %v5663_v11  ;;  %v881_v24 = vpop.f32.mrf.mxu1  ;;  %4795 = vmatprep.mubr.msk.bf16.mxu0 %vm941_vm3, %v5665_v18  ;;  %v1091_v33 = vld [vmem:[#allocation2 + $0x109] sm:$0xff] }
 0x11c   : > { %4829 = vmatprep.mubr.msk.bf16.mxu1 %vm941_vm3, %v5667_v19  ;;  %1012 = vst.msk [vmem:[#allocation2 + $0x139] sm:$0xff] %vm941_vm3, %v933_v20  ;;  %v936_v25 = vmax.f32 %v890_v23, 0.0  ;;  %v882_v26 = vadd.f32 %v5529_v53, %v881_v24  ;;  %v1042_v41 = vld [vmem:[#allocation2 + $0x108] sm:$0xff] }
 0x11d   : > { %v4771_v27 = vpop.f32.mrf.mxu1  ;;  %v1094_v34 = vld [vmem:[#allocation2 + $0x129] sm:$0xff] }
 0x11e   : > { %1015 = vst.msk [vmem:[#allocation2 + $0x159] sm:$0xff] %vm941_vm3, %v936_v25  ;;  %v934_v30 = vmax.f32 %v882_v26, 0.0  ;;  %v903_v31 = vadd.f32 %v4771_v27, %v5529_v53  ;;  %v1045_v35 = vld [vmem:[#allocation2 + $0x128] sm:$0xff]  ;;  %v5689_v52 = vpack.c.bf16 %v1094_v34, %v1093_v47  ;;  %v1546_v34 = vld [vmem:[#allocation2 + $0x1a] sm:$0xff] }
 0x11f   : > { %v894_v36 = vpop.f32.mrf.mxu1  ;;  %v1092_v40 = vld [vmem:[#allocation2 + $0x111] sm:$0xff]  ;;  %v5691_v56 = vpack.c.bf16 %v1045_v35, %v1044_v48  ;;  %v1544_v20 = vld [vmem:[#allocation2 + $0x2] sm:$0xff] }
 0x120   : > { %v1043_v42 = vld [vmem:[#allocation2 + $0x110] sm:$0xff]  ;;  %1013 = vst.msk [vmem:[#allocation2 + $0x141] sm:$0xff] %vm941_vm3, %v934_v30  ;;  %v939_v5 = vmax.f32 %v903_v31, 0.0  ;;  %v895_v43 = vadd.f32 %v5529_v53, %v894_v36  ;;  %v5685_v14 = vpack.c.bf16 %v1092_v40, %v1091_v33  ;;  %v1547_v35 = vld [vmem:[#allocation2 + $0x22] sm:$0xff]  ;;  %v1549_v40 = vld [vmem:[#allocation2 + $0x3a] sm:$0xff] }
 0x121   : > { %v5687_v46 = vpack.c.bf16 %v1043_v42, %v1042_v41  ;;  %v4772_v51 = vpop.f32.mrf.mxu1  ;;  %v1097_v12 = vld [vmem:[#allocation2 + $0x151] sm:$0xff]  ;;  %v5734_v41 = vpack.c.bf16 %v1547_v35, %v1546_v34  ;;  %v2231_v42 = vsel %vm1167_vm1, %v5568_v38, 0  ;;  %v5754_v38 = vld [vmem:[%s6792_s5 + $0xe] sm:$0x3]  ;;  %v1562_v34 = vld [vmem:[#allocation2 + $0xda] sm:$0xff] }
 0x122   : > { %1018 = vst.msk [vmem:[#allocation2 + $0x181] sm:$0xff] %vm941_vm3, %v939_v5  ;;  %v937_v57 = vmax.f32 %v895_v43, 0.0  ;;  %v906_v58 = vadd.f32 %v4772_v51, %v5529_v53  ;;  %4796 = vmatmul.mubr.msk.bf16.gmra.mxu0 %vm941_vm3, %v5685_v14  ;;  %v1048_v13 = vld [vmem:[#allocation2 + $0x150] sm:$0xff]  ;;  %v2525_v43 = vsel %vm1167_vm1, %v5573_v39, 0  ;;  %v5760_v39 = vpop.f32.mrf.mxu0  ;;  %v1552_v51 = vld [vmem:[#allocation2 + $0x62] sm:$0xff] }
 0x123   : > { %4830 = vmatmul.mubr.msk.bf16.gmra.mxu1 %vm941_vm3, %v5687_v46  ;;  %v897_v61 = vpop.f32.mrf.mxu1  ;;  %4799 = vmatprep.mubr.msk.bf16.mxu0 %vm941_vm3, %v5689_v52  ;;  %v1095_v1 = vld [vmem:[#allocation2 + $0x139] sm:$0xff]  ;;  %v1545_v23 = vld [vmem:[#allocation2 + $0xa] sm:$0xff]  ;;  %6799 = vst [vmem:[#allocation6_spill] sm:$0xff] %v5760_v39  ;;  %v1563_v35 = vld [vmem:[#allocation2 + $0xe2] sm:$0xff] }
 0x124   : > { %4833 = vmatprep.mubr.msk.bf16.mxu1 %vm941_vm3, %v5691_v56  ;;  %1016 = vst.msk [vmem:[#allocation2 + $0x169] sm:$0xff] %vm941_vm3, %v937_v57  ;;  %v940_v62 = vmax.f32 %v906_v58, 0.0  ;;  %v898_v63 = vadd.f32 %v5529_v53, %v897_v61  ;;  %v1046_v6 = vld [vmem:[#allocation2 + $0x138] sm:$0xff]  ;;  %v1576_v30 = vpack.c.bf16 %v1545_v23, %v1544_v20  ;;  %v1550_v47 = vld [vmem:[#allocation2 + $0x4a] sm:$0xff]  ;;  %v5768_v61 = vpop.f32.mrf.mxu0  ;;  %v1560_v23 = vld [vmem:[#allocation2 + $0xc2] sm:$0xff] }
 0x125   : > { %v1098_v2 = vld [vmem:[#allocation2 + $0x159] sm:$0xff]  ;;  %v1553_v57 = vld [vmem:[#allocation2 + $0x6a] sm:$0xff]  ;;  %6800 = vst [vmem:[#allocation7_spill] sm:$0xff] %v5768_v61 }
 0x126   : > { %1019 = vst.msk [vmem:[#allocation2 + $0x189] sm:$0xff] %vm941_vm3, %v940_v62  ;;  %v938_v0 = vmax.f32 %v898_v63, 0.0  ;;  %v1049_v3 = vld [vmem:[#allocation2 + $0x158] sm:$0xff]  ;;  %v5711_v15 = vpack.c.bf16 %v1098_v2, %v1097_v12  ;;  %v5770_v62 = vpack.c.bf16 %v1553_v57, %v1552_v51  ;;  %v5780_v63 = vpop.f32.mrf.mxu0  ;;  %v1566_v51 = vld [vmem:[#allocation2 + $0x10a] sm:$0xff] }
 0x127   : > { %v1096_v4 = vld [vmem:[#allocation2 + $0x141] sm:$0xff]  ;;  %v5713_v53 = vpack.c.bf16 %v1049_v3, %v1048_v13  ;;  %v1548_v36 = vld [vmem:[#allocation2 + $0x32] sm:$0xff]  ;;  %6801 = vst [vmem:[#allocation8_spill] sm:$0xff] %v5780_v63  ;;  %v1558_v13 = vld [vmem:[#allocation2 + $0xaa] sm:$0xff] }
 0x128   : > { %v1047_v7 = vld [vmem:[#allocation2 + $0x140] sm:$0xff]  ;;  %1017 = vst.msk [vmem:[#allocation2 + $0x171] sm:$0xff] %vm941_vm3, %v938_v0  ;;  %v5707_v8 = vpack.c.bf16 %v1096_v4, %v1095_v1  ;;  %v5738_v5 = vpack.c.bf16 %v1549_v40, %v1548_v36  ;;  %v1551_v48 = vld [vmem:[#allocation2 + $0x52] sm:$0xff] }
 0x129   : > { %v5709_v9 = vpack.c.bf16 %v1047_v7, %v1046_v6  ;;  %v5766_v58 = vpack.c.bf16 %v1551_v48, %v1550_v47  ;;  %v1554_v0 = vld [vmem:[#allocation2 + $0x7a] sm:$0xff]  ;;  %v1555_v1 = vld [vmem:[#allocation2 + $0x82] sm:$0xff]  ;;  %v1556_v2 = vld [vmem:[#allocation2 + $0x92] sm:$0xff]  ;;  %v5784_v6 = vpop.f32.mrf.mxu0 }
 0x12a   : > { %4800 = vmatmul.mubr.msk.bf16.gmra.mxu0 %vm941_vm3, %v5707_v8  ;;  %v1557_v3 = vld [vmem:[#allocation2 + $0x9a] sm:$0xff]  ;;  %v5782_v4 = vpack.c.bf16 %v1555_v1, %v1554_v0  ;;  %6802 = vst [vmem:[#allocation9_spill] sm:$0xff] %v5784_v6  ;;  %v1559_v20 = vld [vmem:[#allocation2 + $0xb2] sm:$0xff]  ;;  %v1568_v0 = vld [vmem:[#allocation2 + $0x122] sm:$0xff] }
 0x12b   : > { %4834 = vmatmul.mubr.msk.bf16.gmra.mxu1 %vm941_vm3, %v5709_v9  ;;  %4803 = vmatprep.mubr.msk.bf16.mxu0 %vm941_vm3, %v5711_v15  ;;  %v1099_v24 = vld [vmem:[#allocation2 + $0x169] sm:$0xff]  ;;  %v5786_v7 = vpack.c.bf16 %v1557_v3, %v1556_v2  ;;  %v5796_v12 = vpop.f32.mrf.mxu0  ;;  %v1564_v36 = vld [vmem:[#allocation2 + $0xf2] sm:$0xff]  ;;  %v1565_v40 = vld [vmem:[#allocation2 + $0xfa] sm:$0xff] }
 0x12c   : > { %4837 = vmatprep.mubr.msk.bf16.mxu1 %vm941_vm3, %v5713_v53  ;;  %v1050_v26 = vld [vmem:[#allocation2 + $0x168] sm:$0xff]  ;;  %6803 = vst [vmem:[#allocation10_spill] sm:$0xff] %v5796_v12  ;;  %v5818_v47 = vpack.c.bf16 %v1565_v40, %v1564_v36  ;;  %v1567_v57 = vld [vmem:[#allocation2 + $0x112] sm:$0xff] }
 0x12d   : > { %v1569_v1 = vld [vmem:[#allocation2 + $0x12a] sm:$0xff]  ;;  %v5830_v2 = vpack.c.bf16 %v1567_v57, %v1566_v51 }
 0x12f   : > { %v1100_v25 = vld [vmem:[#allocation2 + $0x171] sm:$0xff] }
 0x130   : > { %v1051_v27 = vld [vmem:[#allocation2 + $0x170] sm:$0xff]  ;;  %v5723_v31 = vpack.c.bf16 %v1100_v25, %v1099_v24  ;;  %v5798_v25 = vpack.c.bf16 %v1559_v20, %v1558_v13  ;;  %v5834_v13 = vpack.c.bf16 %v1569_v1, %v1568_v0 }
 0x131   : > { %v5725_v33 = vpack.c.bf16 %v1051_v27, %v1050_v26  ;;  %v1561_v24 = vld [vmem:[#allocation2 + $0xca] sm:$0xff]  ;;  %v5800_v26 = vpop.f32.mrf.mxu0  ;;  %v1575_v1 = vld [vmem:[#allocation2 + $0x172] sm:$0xff] }
 0x132   : > { %4804 = vmatmul.mubr.msk.bf16.gmra.mxu0 %vm941_vm3, %v5723_v31  ;;  %6804 = vst [vmem:[#allocation11_spill] sm:$0xff] %v5800_v26  ;;  %v5802_v27 = vpack.c.bf16 %v1561_v24, %v1560_v23  ;;  %v1570_v23 = vld [vmem:[#allocation2 + $0x13a] sm:$0xff]  ;;  %v1571_v24 = vld [vmem:[#allocation2 + $0x142] sm:$0xff]  ;;  %v1574_v0 = vld [vmem:[#allocation2 + $0x16a] sm:$0xff] }
 0x133   : > { %4838 = vmatmul.mubr.msk.bf16.gmra.mxu1 %vm941_vm3, %v5725_v33  ;;  %4843 = vmatprep.mubr.msk.bf16.mxu0 %vm941_vm3, %v1576_v30  ;;  %v5812_v30 = vpop.f32.mrf.mxu0  ;;  %v1589_v36 = vpack.c.bf16 %v1571_v24, %v1570_v23  ;;  %v1591_v23 = vpack.c.bf16 %v1575_v1, %v1574_v0 }
 0x134   : > { %4877 = vmatprep.mubr.msk.bf16.mxu1 %vm941_vm3, %v5552_v29  ;;  %v5749_v29 = vld [vmem:[%s6792_s5 + $0xc] sm:$0x3]  ;;  %6805 = vst [vmem:[#allocation12_spill] sm:$0xff] %v5812_v30 }
 0x135   : > { %v2820_v0 = vsel %vm1167_vm1, %v5749_v29, 0 }
 0x13a   : > { %4844 = vmatmul.mubr.msk.bf16.vlgmr.msra.gmra.mxu0 %vm941_vm3, %v5734_v41 }
 0x13b   : > { %4878 = vmatmul.mubr.msk.bf16.vlgmr.msra.gmra.mxu1 %vm941_vm3, %v5563_v37  ;;  %4910 = vmatpush3.bf16.msra.mxu0 %v2231_v42  ;;  %v5814_v42 = vpack.c.bf16 %v1563_v35, %v1562_v34  ;;  %v1572_v34 = vld [vmem:[#allocation2 + $0x152] sm:$0xff]  ;;  %v1573_v35 = vld [vmem:[#allocation2 + $0x15a] sm:$0xff] }
 0x13c   : > { %4847 = vmatprep.mubr.msk.bf16.mxu0 %vm941_vm3, %v5738_v5  ;;  %4881 = vmatprep.mubr.msk.bf16.mxu1 %vm941_vm3, %v5591_v55  ;;  %v1590_v51 = vpack.c.bf16 %v1573_v35, %v1572_v34 }
 0x13d   : > { %4944 = vmatpush3.bf16.msra.mxu1 %v2525_v43  ;;  %5121 = vmatprep.subr.msk.bf16.mxu0 %vm1167_vm1, %v5749_v29  ;;  %v5816_v43 = vpop.f32.mrf.mxu0 }
 0x13e   : > { %5122 = vmatprep.subr.msk.bf16.mxu1 %vm1167_vm1, %v5754_v38  ;;  %6806 = vst [vmem:[#allocation13_spill] sm:$0xff] %v5816_v43 }
 0x13f   : > { %v5828_v48 = vpop.f32.mrf.mxu0 }
 0x140   : > { %6807 = vst [vmem:[#allocation14_spill] sm:$0xff] %v5828_v48 }
 0x141   : > { %v5832_v3 = vpop.f32.mrf.mxu0 }
 0x142   : > { %4848 = vmatmul.mubr.msk.bf16.gmra.mxu0 %vm941_vm3, %v5766_v58  ;;  %6808 = vst [vmem:[#allocation15_spill] sm:$0xff] %v5832_v3  ;;  %v1868_v3 = vld [vmem:[#allocation2 + $0x180] sm:$0xff] }
 0x143   : > { %4882 = vmatmul.mubr.msk.bf16.gmra.mxu1 %vm941_vm3, %v5595_v60  ;;  %4851 = vmatprep.mubr.msk.bf16.mxu0 %vm941_vm3, %v5770_v62  ;;  %v5844_v20 = vpop.f32.mrf.mxu0 }
 0x144   : > { %4885 = vmatprep.mubr.msk.bf16.mxu1 %vm941_vm3, %v5615_v17  ;;  %6809 = vst [vmem:[#allocation16_spill] sm:$0xff] %v5844_v20  ;;  %v1869_v20 = vld [vmem:[#allocation2 + $0x188] sm:$0xff] }
 0x145   : > { %v5846_v40 = vpop.f32.mrf.mxu0  ;;  %v5856_v24 = vpack.c.bf16 %v1869_v20, %v1868_v3  ;;  %v3114_v20 = vsel %vm1167_vm1, %v5754_v38, 0 }
 0x146   : > { %6810 = vst [vmem:[#allocation17_spill] sm:$0xff] %v5846_v40 }
 0x147   : > { %v5854_v57 = vpop.f32.mrf.mxu0 }
 0x148   : > { %6811 = vst [vmem:[#allocation18_spill] sm:$0xff] %v5854_v57 }
 0x149   : > { %v5858_v34 = vpop.f32.mrf.mxu0 }
 0x14a   : > { %4852 = vmatmul.mubr.msk.bf16.gmra.mxu0 %vm941_vm3, %v5782_v4  ;;  %6812 = vst [vmem:[#allocation19_spill] sm:$0xff] %v5858_v34 }
 0x14b   : > { %4886 = vmatmul.mubr.msk.bf16.gmra.mxu1 %vm941_vm3, %v5619_v22  ;;  %4855 = vmatprep.mubr.msk.bf16.mxu0 %vm941_vm3, %v5786_v7  ;;  %v5867_v35 = vpop.f32.mrf.mxu0 }
 0x14c   : > { %4889 = vmatprep.mubr.msk.bf16.mxu1 %vm941_vm3, %v5639_v45  ;;  %6813 = vst [vmem:[#allocation20_spill] sm:$0xff] %v5867_v35  ;;  %v3318_v35 = vld [vmem:[#allocation2 + $0x9a] sm:$0xff] }
 0x14d   : > { %v5871_v3 = vpop.f32.mrf.mxu0 }
 0x14e   : > { %6814 = vst [vmem:[#allocation21_spill] sm:$0xff] %v5871_v3  ;;  %v3317_v3 = vld [vmem:[#allocation2 + $0x92] sm:$0xff] }
 0x152   : > { %4856 = vmatmul.mubr.msk.bf16.gmra.mxu0 %vm941_vm3, %v5798_v25 }
 0x153   : > { %4890 = vmatmul.mubr.msk.bf16.gmra.mxu1 %vm941_vm3, %v5643_v50  ;;  %4859 = vmatprep.mubr.msk.bf16.mxu0 %vm941_vm3, %v5802_v27 }
 0x154   : > { %4893 = vmatprep.mubr.msk.bf16.mxu1 %vm941_vm3, %v5663_v11 }
 0x15a   : > { %4860 = vmatmul.mubr.msk.bf16.gmra.mxu0 %vm941_vm3, %v5814_v42 }
 0x15b   : > { %4894 = vmatmul.mubr.msk.bf16.gmra.mxu1 %vm941_vm3, %v5667_v19  ;;  %4863 = vmatprep.mubr.msk.bf16.mxu0 %vm941_vm3, %v5818_v47 }
 0x15c   : > { %4897 = vmatprep.mubr.msk.bf16.mxu1 %vm941_vm3, %v5687_v46 }
 0x162   : > { %4864 = vmatmul.mubr.msk.bf16.gmra.mxu0 %vm941_vm3, %v5830_v2 }
 0x163   : > { %4898 = vmatmul.mubr.msk.bf16.gmra.mxu1 %vm941_vm3, %v5691_v56  ;;  %4867 = vmatprep.mubr.msk.bf16.mxu0 %vm941_vm3, %v5834_v13 }
 0x164   : > { %4901 = vmatprep.mubr.msk.bf16.mxu1 %vm941_vm3, %v5709_v9 }
 0x16a   : > { %4868 = vmatmul.mubr.msk.bf16.gmra.mxu0 %vm941_vm3, %v1589_v36 }
 0x16b   : > { %4902 = vmatmul.mubr.msk.bf16.gmra.mxu1 %vm941_vm3, %v5713_v53  ;;  %4871 = vmatprep.mubr.msk.bf16.mxu0 %vm941_vm3, %v1590_v51 }
 0x16c   : > { %4905 = vmatprep.mubr.msk.bf16.mxu1 %vm941_vm3, %v5725_v33 }
 0x172   : > { %4872 = vmatmul.mubr.msk.bf16.gmra.mxu0 %vm941_vm3, %v1591_v23 }
 0x173   : > { %4906 = vmatmul.mubr.msk.bf16.gmra.mxu1 %vm941_vm3, %v5856_v24  ;;  %4911 = vmatprep.mubr.msk.bf16.mxu0 %vm941_vm3, %v5550_v28  ;;  %v4317_v28 = vld [vmem:[%s6792_s5 + $0x10] sm:$0x3] }
 0x174   : > { %4945 = vmatprep.mubr.msk.bf16.mxu1 %vm941_vm3, %v5734_v41  ;;  %v5886_v41 = vpop.f32.mrf.mxu0 }
 0x175   : > { %6815 = vst [vmem:[#allocation22_spill] sm:$0xff] %v5886_v41 }
 0x176   : > { %v5889_v29 = vpop.f32.mrf.mxu0 }
 0x177   : > { %6816 = vst [vmem:[#allocation23_spill] sm:$0xff] %v5889_v29 }
 0x178   : > { %v5899_v38 = vpop.f32.mrf.mxu0 }
 0x179   : > { %6817 = vst [vmem:[#allocation24_spill] sm:$0xff] %v5899_v38 }
 0x17a   : > { %4912 = vmatmul.mubr.msk.bf16.vlgmr.msra.gmra.mxu0 %vm941_vm3, %v5554_v32  ;;  %v5901_v1 = vpop.f32.mrf.mxu0 }
 0x17b   : > { %4946 = vmatmul.mubr.msk.bf16.vlgmr.msra.gmra.mxu1 %vm941_vm3, %v5738_v5  ;;  %4978 = vmatpush3.bf16.msra.mxu0 %v2820_v0  ;;  %6818 = vst [vmem:[#allocation25_spill] sm:$0xff] %v5901_v1 }
 0x17c   : > { %4915 = vmatprep.mubr.msk.bf16.mxu0 %vm941_vm3, %v5589_v54  ;;  %4949 = vmatprep.mubr.msk.bf16.mxu1 %vm941_vm3, %v5766_v58  ;;  %v5911_v0 = vpop.f32.mrf.mxu0 }
 0x17d   : > { %5012 = vmatpush3.bf16.msra.mxu1 %v3114_v20  ;;  %5123 = vmatprep.subr.msk.bf16.mxu0 %vm1167_vm1, %v4317_v28  ;;  %6819 = vst [vmem:[#allocation26_spill] sm:$0xff] %v5911_v0 }
 0x17e   : > { %v5913_v20 = vpop.f32.mrf.mxu0 }
 0x17f   : > { %6820 = vst [vmem:[#allocation27_spill] sm:$0xff] %v5913_v20 }
 0x182   : > { %4916 = vmatmul.mubr.msk.bf16.gmra.mxu0 %vm941_vm3, %v5593_v59 }
 0x183   : > { %4950 = vmatmul.mubr.msk.bf16.gmra.mxu1 %vm941_vm3, %v5770_v62  ;;  %4919 = vmatprep.mubr.msk.bf16.mxu0 %vm941_vm3, %v5613_v16 }
 0x184   : > { %4953 = vmatprep.mubr.msk.bf16.mxu1 %vm941_vm3, %v5782_v4  ;;  %v5923_v4 = vpop.f32.mrf.mxu0 }
 0x185   : > { %6821 = vst [vmem:[#allocation28_spill] sm:$0xff] %v5923_v4 }
 0x18a   : > { %4920 = vmatmul.mubr.msk.bf16.gmra.mxu0 %vm941_vm3, %v5617_v21 }
 0x18b   : > { %4954 = vmatmul.mubr.msk.bf16.gmra.mxu1 %vm941_vm3, %v5786_v7  ;;  %4923 = vmatprep.mubr.msk.bf16.mxu0 %vm941_vm3, %v5637_v44  ;;  %v5925_v7 = vpop.f32.mrf.mxu0 }
 0x18c   : > { %4957 = vmatprep.mubr.msk.bf16.mxu1 %vm941_vm3, %v5798_v25  ;;  %6822 = vst [vmem:[#allocation29_spill] sm:$0xff] %v5925_v7 }
 0x18d   : > { %v5935_v25 = vpop.f32.mrf.mxu0 }
 0x18e   : > { %6823 = vst [vmem:[#allocation30_spill] sm:$0xff] %v5935_v25  ;;  %v2457_v25 = vld [vmem:[#allocation2 + $0x18a] sm:$0xff] }
 0x192   : > { %4924 = vmatmul.mubr.msk.bf16.gmra.mxu0 %vm941_vm3, %v5641_v49 }
 0x193   : > { %4958 = vmatmul.mubr.msk.bf16.gmra.mxu1 %vm941_vm3, %v5802_v27  ;;  %4927 = vmatprep.mubr.msk.bf16.mxu0 %vm941_vm3, %v5661_v10  ;;  %v5937_v27 = vpop.f32.mrf.mxu0 }
 0x194   : > { %4961 = vmatprep.mubr.msk.bf16.mxu1 %vm941_vm3, %v5814_v42  ;;  %6824 = vst [vmem:[#allocation31_spill] sm:$0xff] %v5937_v27  ;;  %v2456_v27 = vld [vmem:[#allocation2 + $0x182] sm:$0xff] }
 0x195   : > { %v5946_v42 = vpop.f32.mrf.mxu0 }
 0x196   : > { %6825 = vst [vmem:[#allocation32_spill] sm:$0xff] %v5946_v42 }
 0x19a   : > { %4928 = vmatmul.mubr.msk.bf16.gmra.mxu0 %vm941_vm3, %v5665_v18 }
 0x19b   : > { %4962 = vmatmul.mubr.msk.bf16.gmra.mxu1 %vm941_vm3, %v5818_v47  ;;  %4931 = vmatprep.mubr.msk.bf16.mxu0 %vm941_vm3, %v5685_v14  ;;  %v5948_v47 = vpop.f32.mrf.mxu0 }
 0x19c   : > { %4965 = vmatprep.mubr.msk.bf16.mxu1 %vm941_vm3, %v5830_v2  ;;  %6826 = vst [vmem:[#allocation33_spill] sm:$0xff] %v5948_v47  ;;  %v5962_v47 = vpack.c.bf16 %v2457_v25, %v2456_v27 }
 0x19d   : > { %v5956_v2 = vpop.f32.mrf.mxu0 }
 0x19e   : > { %6827 = vst [vmem:[#allocation34_spill] sm:$0xff] %v5956_v2 }
 0x19f   : > { %v5958_v7 = vpop.f32.mrf.mxu0 }
 0x1a0   : > { %6828 = vst [vmem:[#allocation35_spill] sm:$0xff] %v5958_v7 }
 0x1a2   : > { %4932 = vmatmul.mubr.msk.bf16.gmra.mxu0 %vm941_vm3, %v5689_v52 }
 0x1a3   : > { %4966 = vmatmul.mubr.msk.bf16.gmra.mxu1 %vm941_vm3, %v5834_v13  ;;  %4935 = vmatprep.mubr.msk.bf16.mxu0 %vm941_vm3, %v5707_v8  ;;  %v2163_v13 = vld [vmem:[#allocation2 + $0x189] sm:$0xff] }
 0x1a4   : > { %4969 = vmatprep.mubr.msk.bf16.mxu1 %vm941_vm3, %v1589_v36  ;;  %v2162_v36 = vld [vmem:[#allocation2 + $0x181] sm:$0xff] }
 0x1a5   : > { %v5960_v42 = vpack.c.bf16 %v2163_v13, %v2162_v36  ;;  %v3408_v13 = vsel %vm1167_vm1, %v4317_v28, 0 }
 0x1aa   : > { %4936 = vmatmul.mubr.msk.bf16.gmra.mxu0 %vm941_vm3, %v5711_v15 }
 0x1ab   : > { %4970 = vmatmul.mubr.msk.bf16.gmra.mxu1 %vm941_vm3, %v1590_v51  ;;  %4939 = vmatprep.mubr.msk.bf16.mxu0 %vm941_vm3, %v5723_v31  ;;  %v5972_v51 = vpop.f32.mrf.mxu0 }
 0x1ac   : > { %4973 = vmatprep.mubr.msk.bf16.mxu1 %vm941_vm3, %v1591_v23  ;;  %6829 = vst [vmem:[#allocation36_spill] sm:$0xff] %v5972_v51 }
 0x1ad   : > { %v5974_v23 = vpop.f32.mrf.mxu0 }
 0x1ae   : > { %6830 = vst [vmem:[#allocation37_spill] sm:$0xff] %v5974_v23 }
 0x1b2   : > { %4940 = vmatmul.mubr.msk.bf16.gmra.mxu0 %vm941_vm3, %v5960_v42 }
 0x1b3   : > { %4974 = vmatmul.mubr.msk.bf16.gmra.mxu1 %vm941_vm3, %v5962_v47  ;;  %4979 = vmatprep.mubr.msk.bf16.mxu0 %vm941_vm3, %v5563_v37 }
 0x1b4   : > { %5013 = vmatprep.mubr.msk.bf16.mxu1 %vm941_vm3, %v5554_v32 }
 0x1ba   : > { %v4777_v25 = vpop.f32.mrf.mxu0  ;;  %4980 = vmatmul.mubr.msk.bf16.vlgmr.msra.gmra.mxu0 %vm941_vm3, %v5591_v55 }
 0x1bb   : > { %v4811_v27 = vpop.f32.mrf.mxu1  ;;  %5014 = vmatmul.mubr.msk.bf16.vlgmr.msra.gmra.mxu1 %vm941_vm3, %v5589_v54  ;;  %5046 = vmatpush3.bf16.msra.mxu0 %v3408_v13 }
 0x1bc   : > { %v5981_v36 = vadd.f32 %v4811_v27, %v4777_v25  ;;  %4983 = vmatprep.mubr.msk.bf16.mxu0 %vm941_vm3, %v5595_v60  ;;  %5017 = vmatprep.mubr.msk.bf16.mxu1 %vm941_vm3, %v5593_v59  ;;  %v1205_v32 = vpop.f32.mrf.mxu0 }
 0x1bd   : > { %v1417_v37 = vpop.f32.mrf.mxu1 }
 0x1be   : > { %v5987_v28 = vadd.f32 %v1417_v37, %v1205_v32  ;;  %v4778_v23 = vpop.f32.mrf.mxu0 }
 0x1bf   : > { %v4812_v51 = vpop.f32.mrf.mxu1 }
 0x1c0   : > { %v5989_v7 = vadd.f32 %v4812_v51, %v4778_v23  ;;  %v1208_v55 = vpop.f32.mrf.mxu0 }
 0x1c1   : > { %v1420_v2 = vpop.f32.mrf.mxu1 }
 0x1c2   : > { %v5991_v54 = vadd.f32 %v1420_v2, %v1208_v55  ;;  %v4781_v25 = vpop.f32.mrf.mxu0  ;;  %4984 = vmatmul.mubr.msk.bf16.gmra.mxu0 %vm941_vm3, %v5615_v17 }
 0x1c3   : > { %v4815_v13 = vpop.f32.mrf.mxu1  ;;  %5018 = vmatmul.mubr.msk.bf16.gmra.mxu1 %vm941_vm3, %v5613_v16  ;;  %4987 = vmatprep.mubr.msk.bf16.mxu0 %vm941_vm3, %v5619_v22 }
 0x1c4   : > { %v5997_v59 = vadd.f32 %v4815_v13, %v4781_v25  ;;  %5021 = vmatprep.mubr.msk.bf16.mxu1 %vm941_vm3, %v5617_v21  ;;  %v1221_v60 = vpop.f32.mrf.mxu0 }
 0x1c5   : > { %v1433_v51 = vpop.f32.mrf.mxu1 }
 0x1c6   : > { %v6003_v2 = vadd.f32 %v1433_v51, %v1221_v60  ;;  %v4782_v23 = vpop.f32.mrf.mxu0 }
 0x1c7   : > { %v4816_v27 = vpop.f32.mrf.mxu1 }
 0x1c8   : > { %v6005_v32 = vadd.f32 %v4816_v27, %v4782_v23  ;;  %v1224_v17 = vpop.f32.mrf.mxu0 }
 0x1c9   : > { %v1436_v37 = vpop.f32.mrf.mxu1 }
 0x1ca   : > { %v6007_v55 = vadd.f32 %v1436_v37, %v1224_v17  ;;  %v4785_v16 = vpop.f32.mrf.mxu0  ;;  %4988 = vmatmul.mubr.msk.bf16.gmra.mxu0 %vm941_vm3, %v5639_v45 }
 0x1cb   : > { %v4819_v25 = vpop.f32.mrf.mxu1  ;;  %5022 = vmatmul.mubr.msk.bf16.gmra.mxu1 %vm941_vm3, %v5637_v44  ;;  %4991 = vmatprep.mubr.msk.bf16.mxu0 %vm941_vm3, %v5643_v50 }
 0x1cc   : > { %v6013_v21 = vadd.f32 %v4819_v25, %v4785_v16  ;;  %5025 = vmatprep.mubr.msk.bf16.mxu1 %vm941_vm3, %v5641_v49  ;;  %v1237_v22 = vpop.f32.mrf.mxu0 }
 0x1cd   : > { %v1449_v13 = vpop.f32.mrf.mxu1 }
 0x1ce   : > { %v6019_v60 = vadd.f32 %v1449_v13, %v1237_v22  ;;  %v4786_v51 = vpop.f32.mrf.mxu0 }
 0x1cf   : > { %v4820_v23 = vpop.f32.mrf.mxu1 }
 0x1d0   : > { %v6021_v27 = vadd.f32 %v4820_v23, %v4786_v51  ;;  %v1240_v45 = vpop.f32.mrf.mxu0 }
 0x1d1   : > { %v1452_v17 = vpop.f32.mrf.mxu1 }
 0x1d2   : > { %v6023_v37 = vadd.f32 %v1452_v17, %v1240_v45  ;;  %v4789_v44 = vpop.f32.mrf.mxu0  ;;  %4992 = vmatmul.mubr.msk.bf16.gmra.mxu0 %vm941_vm3, %v5663_v11 }
 0x1d3   : > { %v4823_v16 = vpop.f32.mrf.mxu1  ;;  %5026 = vmatmul.mubr.msk.bf16.gmra.mxu1 %vm941_vm3, %v5661_v10  ;;  %4995 = vmatprep.mubr.msk.bf16.mxu0 %vm941_vm3, %v5667_v19 }
 0x1d4   : > { %v6029_v49 = vadd.f32 %v4823_v16, %v4789_v44  ;;  %5029 = vmatprep.mubr.msk.bf16.mxu1 %vm941_vm3, %v5665_v18  ;;  %v1253_v50 = vpop.f32.mrf.mxu0 }
 0x1d5   : > { %v1465_v25 = vpop.f32.mrf.mxu1 }
 0x1d6   : > { %v6035_v22 = vadd.f32 %v1465_v25, %v1253_v50  ;;  %v4790_v13 = vpop.f32.mrf.mxu0 }
 0x1d7   : > { %v4824_v51 = vpop.f32.mrf.mxu1 }
 0x1d8   : > { %v6037_v23 = vadd.f32 %v4824_v51, %v4790_v13  ;;  %v1256_v11 = vpop.f32.mrf.mxu0 }
 0x1d9   : > { %v1468_v45 = vpop.f32.mrf.mxu1 }
 0x1da   : > { %v6039_v17 = vadd.f32 %v1468_v45, %v1256_v11  ;;  %v4793_v10 = vpop.f32.mrf.mxu0  ;;  %4996 = vmatmul.mubr.msk.bf16.gmra.mxu0 %vm941_vm3, %v5687_v46 }
 0x1db   : > { %v4827_v44 = vpop.f32.mrf.mxu1  ;;  %5030 = vmatmul.mubr.msk.bf16.gmra.mxu1 %vm941_vm3, %v5685_v14  ;;  %4999 = vmatprep.mubr.msk.bf16.mxu0 %vm941_vm3, %v5691_v56 }
 0x1dc   : > { %v6045_v18 = vadd.f32 %v4827_v44, %v4793_v10  ;;  %5033 = vmatprep.mubr.msk.bf16.mxu1 %vm941_vm3, %v5689_v52  ;;  %v1269_v19 = vpop.f32.mrf.mxu0 }
 0x1dd   : > { %v1481_v16 = vpop.f32.mrf.mxu1 }
 0x1de   : > { %v6051_v50 = vadd.f32 %v1481_v16, %v1269_v19  ;;  %v4794_v25 = vpop.f32.mrf.mxu0 }
 0x1df   : > { %v4828_v13 = vpop.f32.mrf.mxu1 }
 0x1e0   : > { %v6053_v51 = vadd.f32 %v4828_v13, %v4794_v25  ;;  %v6055_v46 = vpop.f32.mrf.mxu0 }
 0x1e1   : > { %v6057_v11 = vpop.f32.mrf.mxu1 }
 0x1e2   : > { %v4797_v14 = vpop.f32.mrf.mxu0  ;;  %5000 = vmatmul.mubr.msk.bf16.gmra.mxu0 %vm941_vm3, %v5709_v9 }
 0x1e3   : > { %v4831_v45 = vpop.f32.mrf.mxu1  ;;  %5034 = vmatmul.mubr.msk.bf16.gmra.mxu1 %vm941_vm3, %v5707_v8  ;;  %5003 = vmatprep.mubr.msk.bf16.mxu0 %vm941_vm3, %v5713_v53 }
 0x1e4   : > { %v6063_v52 = vadd.f32 %v4831_v45, %v4797_v14  ;;  %5037 = vmatprep.mubr.msk.bf16.mxu1 %vm941_vm3, %v5711_v15  ;;  %v1285_v56 = vpop.f32.mrf.mxu0  ;;  %v2751_v15 = vld [vmem:[#allocation2 + $0x198] sm:$0xff]  ;;  %v2752_v45 = vld [vmem:[#allocation2 + $0x1a0] sm:$0xff] }
 0x1e5   : > { %v1497_v10 = vpop.f32.mrf.mxu1  ;;  %v2768_v0 = vpack.c.bf16 %v2752_v45, %v2751_v15 }
 0x1e6   : > { %v6069_v44 = vadd.f32 %v1497_v10, %v1285_v56  ;;  %v4798_v19 = vpop.f32.mrf.mxu0  ;;  %v3045_v56 = vld [vmem:[#allocation2 + $0x199] sm:$0xff]  ;;  %v3046_v10 = vld [vmem:[#allocation2 + $0x1a1] sm:$0xff] }
 0x1e7   : > { %v4832_v16 = vpop.f32.mrf.mxu1 }
 0x1e8   : > { %v6071_v25 = vadd.f32 %v4832_v16, %v4798_v19  ;;  %v6073_v9 = vpop.f32.mrf.mxu0 }
 0x1e9   : > { %v6075_v13 = vpop.f32.mrf.mxu1 }
 0x1ea   : > { %v4801_v8 = vpop.f32.mrf.mxu0  ;;  %5004 = vmatmul.mubr.msk.bf16.gmra.mxu0 %vm941_vm3, %v5725_v33 }
 0x1eb   : > { %v4835_v14 = vpop.f32.mrf.mxu1  ;;  %5038 = vmatmul.mubr.msk.bf16.gmra.mxu1 %vm941_vm3, %v5723_v31  ;;  %5007 = vmatprep.mubr.msk.bf16.mxu0 %vm941_vm3, %v5856_v24  ;;  %v3062_v31 = vpack.c.bf16 %v3046_v10, %v3045_v56 }
 0x1ec   : > { %v6081_v53 = vadd.f32 %v4835_v14, %v4801_v8  ;;  %5041 = vmatprep.mubr.msk.bf16.mxu1 %vm941_vm3, %v5960_v42  ;;  %v1301_v19 = vpop.f32.mrf.mxu0 }
 0x1ed   : > { %v1513_v16 = vpop.f32.mrf.mxu1 }
 0x1ee   : > { %v6087_v4 = vadd.f32 %v1513_v16, %v1301_v19  ;;  %v4802_v33 = vpop.f32.mrf.mxu0 }
 0x1ef   : > { %v4836_v20 = vpop.f32.mrf.mxu1 }
 0x1f0   : > { %v6089_v1 = vadd.f32 %v4836_v20, %v4802_v33  ;;  %v6091_v8 = vpop.f32.mrf.mxu0 }
 0x1f1   : > { %v6093_v14 = vpop.f32.mrf.mxu1 }
 0x1f2   : > { %v4805_v24 = vpop.f32.mrf.mxu0  ;;  %5008 = vmatmul.mubr.msk.bf16.gmra.mxu0 %vm941_vm3, %v2768_v0 }
 0x1f3   : > { %v4839_v38 = vpop.f32.mrf.mxu1  ;;  %5042 = vmatmul.mubr.msk.bf16.gmra.mxu1 %vm941_vm3, %v3062_v31  ;;  %5047 = vmatprep.mubr.msk.bf16.mxu0 %vm941_vm3, %v5738_v5 }
 0x1f4   : > { %v6097_v42 = vadd.f32 %v4839_v38, %v4805_v24  ;;  %v1317_v19 = vpop.f32.mrf.mxu0 }
 0x1f5   : > { %v1529_v15 = vpop.f32.mrf.mxu1 }
 0x1f6   : > { %v6101_v45 = vadd.f32 %v1529_v15, %v1317_v19  ;;  %v4806_v20 = vpop.f32.mrf.mxu0  ;;  %v3315_v15 = vld [vmem:[#allocation2 + $0x7a] sm:$0xff] }
 0x1f7   : > { %v4840_v56 = vpop.f32.mrf.mxu1 }
 0x1f8   : > { %v6103_v10 = vadd.f32 %v4840_v56, %v4806_v20  ;;  %v6105_v16 = vpop.f32.mrf.mxu0  ;;  %v3316_v20 = vld [vmem:[#allocation2 + $0x82] sm:$0xff] }
 0x1f9   : > { %v6107_v33 = vpop.f32.mrf.mxu1 }
 0x1fa   : > { %v4845_v0 = vpop.f32.mrf.mxu0  ;;  %5048 = vmatmul.mubr.msk.bf16.vlgmr.msra.gmra.mxu0 %vm941_vm3, %v5766_v58 }
 0x1fb   : > { %v4879_v29 = vpop.f32.mrf.mxu1  ;;  %v1808_v38 = vadd.f32 %v4845_v0, %v5981_v36  ;;  %5051 = vmatprep.mubr.msk.bf16.mxu0 %vm941_vm3, %v5770_v62  ;;  %v3344_v62 = vpack.c.bf16 %v3316_v20, %v3315_v15  ;;  %v3320_v20 = vld [vmem:[#allocation2 + $0xb2] sm:$0xff] }
 0x1fc   : > { %v1679_v5 = vpop.f32.mrf.mxu0 }
 0x1fd   : > { %v1973_v31 = vpop.f32.mrf.mxu1  ;;  %v6114_v24 = vadd.f32 %v4879_v29, %v1808_v38  ;;  %v1806_v19 = vadd.f32 %v1679_v5, %v5987_v28  ;;  %v3345_v28 = vpack.c.bf16 %v3318_v35, %v3317_v3  ;;  %v3322_v35 = vld [vmem:[#allocation2 + $0xca] sm:$0xff] }
 0x1fe   : > { %v4846_v56 = vpop.f32.mrf.mxu0 }
 0x1ff   : > { %v4880_v41 = vpop.f32.mrf.mxu1  ;;  %v6117_v34 = vadd.f32 %v1973_v31, %v1806_v19  ;;  %v1809_v58 = vadd.f32 %v4846_v56, %v5989_v7 }
 0x200   : > { %v1682_v36 = vpop.f32.mrf.mxu0 }
 0x201   : > { %v6120_v0 = vpop.f32.mrf.mxu1  ;;  %v6122_v57 = vadd.f32 %v4880_v41, %v1809_v58  ;;  %v6125_v29 = vadd.f32 %v1682_v36, %v5991_v54  ;;  %v3319_v41 = vld [vmem:[#allocation2 + $0xaa] sm:$0xff]  ;;  %v3321_v58 = vld [vmem:[#allocation2 + $0xc2] sm:$0xff] }
 0x202   : > { %v4849_v38 = vpop.f32.mrf.mxu0  ;;  %5052 = vmatmul.mubr.msk.bf16.gmra.mxu0 %vm941_vm3, %v3344_v62 }
 0x203   : > { %v4883_v5 = vpop.f32.mrf.mxu1  ;;  %v1812_v40 = vadd.f32 %v4849_v38, %v5997_v59  ;;  %5055 = vmatprep.mubr.msk.bf16.mxu0 %vm941_vm3, %v3345_v28  ;;  %v3346_v28 = vpack.c.bf16 %v3320_v20, %v3319_v41  ;;  %v3323_v20 = vld [vmem:[#allocation2 + $0xda] sm:$0xff] }
 0x204   : > { %v1695_v31 = vpop.f32.mrf.mxu0 }
 0x205   : > { %v1989_v7 = vpop.f32.mrf.mxu1  ;;  %v6130_v19 = vadd.f32 %v4883_v5, %v1812_v40  ;;  %v1810_v15 = vadd.f32 %v1695_v31, %v6003_v2  ;;  %v3347_v2 = vpack.c.bf16 %v3322_v35, %v3321_v58  ;;  %v3325_v35 = vld [vmem:[#allocation2 + $0xf2] sm:$0xff] }
 0x206   : > { %v4850_v56 = vpop.f32.mrf.mxu0 }
 0x207   : > { %v4884_v54 = vpop.f32.mrf.mxu1  ;;  %v6133_v3 = vadd.f32 %v1989_v7, %v1810_v15  ;;  %v1813_v36 = vadd.f32 %v4850_v56, %v6005_v32  ;;  %v3690_v32 = vld [vmem:[%s6794_s7] sm:$0x3]  ;;  %v3324_v56 = vld [vmem:[#allocation2 + $0xe2] sm:$0xff] }
 0x208   : > { %v1698_v62 = vpop.f32.mrf.mxu0  ;;  %5124 = vmatprep.subr.msk.bf16.mxu1 %vm1167_vm1, %v3690_v32 }
 0x209   : > { %v6136_v59 = vpop.f32.mrf.mxu1  ;;  %v6138_v38 = vadd.f32 %v4884_v54, %v1813_v36  ;;  %v6141_v40 = vadd.f32 %v1698_v62, %v6007_v55  ;;  %v3740_v54 = vsel %vm1167_vm1, %v3690_v32, 0  ;;  %v3326_v36 = vld [vmem:[#allocation2 + $0xfa] sm:$0xff] }
 0x20a   : > { %v4853_v5 = vpop.f32.mrf.mxu0  ;;  %5056 = vmatmul.mubr.msk.bf16.gmra.mxu0 %vm941_vm3, %v3346_v28  ;;  %5080 = vmatpush3.bf16.msra.mxu1 %v3740_v54 }
 0x20b   : > { %v4887_v31 = vpop.f32.mrf.mxu1  ;;  %v1816_v48 = vadd.f32 %v4853_v5, %v6013_v21  ;;  %5059 = vmatprep.mubr.msk.bf16.mxu0 %vm941_vm3, %v3347_v2 }
 0x20c   : > { %v1711_v7 = vpop.f32.mrf.mxu0 }
 0x20d   : > { %v2005_v15 = vpop.f32.mrf.mxu1  ;;  %v6150_v41 = vadd.f32 %v4887_v31, %v1816_v48  ;;  %v1814_v55 = vadd.f32 %v1711_v7, %v6019_v60  ;;  %v3348_v48 = vpack.c.bf16 %v3324_v56, %v3323_v20  ;;  %v3349_v7 = vpack.c.bf16 %v3326_v36, %v3325_v35  ;;  %v3327_v56 = vld [vmem:[#allocation2 + $0x10a] sm:$0xff] }
 0x20e   : > { %v4854_v58 = vpop.f32.mrf.mxu0  ;;  %v3330_v35 = vld [vmem:[#allocation2 + $0x12a] sm:$0xff] }
 0x20f   : > { %v4888_v21 = vpop.f32.mrf.mxu1  ;;  %v6154_v62 = vadd.f32 %v2005_v15, %v1814_v55  ;;  %v1817_v28 = vadd.f32 %v4854_v58, %v6021_v27  ;;  %v3328_v58 = vld [vmem:[#allocation2 + $0x112] sm:$0xff] }
 0x210   : > { %v1714_v2 = vpop.f32.mrf.mxu0 }
 0x211   : > { %v6157_v5 = vpop.f32.mrf.mxu1  ;;  %v6159_v31 = vadd.f32 %v4888_v21, %v1817_v28  ;;  %v6162_v60 = vadd.f32 %v1714_v2, %v6023_v37  ;;  %v3329_v28 = vld [vmem:[#allocation2 + $0x122] sm:$0xff] }
 0x212   : > { %v4857_v32 = vpop.f32.mrf.mxu0  ;;  %5060 = vmatmul.mubr.msk.bf16.gmra.mxu0 %vm941_vm3, %v3348_v48 }
 0x213   : > { %v4891_v43 = vpop.f32.mrf.mxu1  ;;  %v1820_v54 = vadd.f32 %v4857_v32, %v6029_v49  ;;  %5063 = vmatprep.mubr.msk.bf16.mxu0 %vm941_vm3, %v3349_v7  ;;  %v3350_v7 = vpack.c.bf16 %v3328_v58, %v3327_v56  ;;  %v3331_v58 = vld [vmem:[#allocation2 + $0x13a] sm:$0xff] }
 0x214   : > { %v1727_v15 = vpop.f32.mrf.mxu0 }
 0x215   : > { %v2021_v27 = vpop.f32.mrf.mxu1  ;;  %v6167_v55 = vadd.f32 %v4891_v43, %v1820_v54  ;;  %v1818_v20 = vadd.f32 %v1727_v15, %v6035_v22  ;;  %v3351_v22 = vpack.c.bf16 %v3330_v35, %v3329_v28  ;;  %v3334_v28 = vld [vmem:[#allocation2 + $0x15a] sm:$0xff]  ;;  %v1485_v35 = vadd.f32 %v6057_v11, %v6055_v46 }
 0x216   : > { %v4858_v21 = vpop.f32.mrf.mxu0 }
 0x217   : > { %v4892_v37 = vpop.f32.mrf.mxu1  ;;  %v6170_v36 = vadd.f32 %v2021_v27, %v1818_v20  ;;  %v1821_v2 = vadd.f32 %v4858_v21, %v6037_v23  ;;  %v3332_v21 = vld [vmem:[#allocation2 + $0x142] sm:$0xff] }
 0x218   : > { %v1730_v48 = vpop.f32.mrf.mxu0 }
 0x219   : > { %v6173_v49 = vpop.f32.mrf.mxu1  ;;  %v6175_v32 = vadd.f32 %v4892_v37, %v1821_v2  ;;  %v6178_v43 = vadd.f32 %v1730_v48, %v6039_v17  ;;  %v3333_v2 = vld [vmem:[#allocation2 + $0x152] sm:$0xff] }
 0x21a   : > { %v4861_v54 = vpop.f32.mrf.mxu0  ;;  %5064 = vmatmul.mubr.msk.bf16.gmra.mxu0 %vm941_vm3, %v3350_v7 }
 0x21b   : > { %v4895_v15 = vpop.f32.mrf.mxu1  ;;  %v1824_v30 = vadd.f32 %v4861_v54, %v6045_v18  ;;  %5067 = vmatprep.mubr.msk.bf16.mxu0 %vm941_vm3, %v3351_v22  ;;  %v3352_v54 = vpack.c.bf16 %v3332_v21, %v3331_v58  ;;  %v3336_v58 = vld [vmem:[#allocation2 + $0x172] sm:$0xff] }
 0x21c   : > { %v1743_v27 = vpop.f32.mrf.mxu0 }
 0x21d   : > { %v2037_v23 = vpop.f32.mrf.mxu1  ;;  %v6183_v20 = vadd.f32 %v4895_v15, %v1824_v30  ;;  %v1822_v56 = vadd.f32 %v1743_v27, %v6051_v50  ;;  %v3353_v50 = vpack.c.bf16 %v3334_v28, %v3333_v2 }
 0x21e   : > { %v4862_v37 = vpop.f32.mrf.mxu0 }
 0x21f   : > { %v4896_v17 = vpop.f32.mrf.mxu1  ;;  %v6188_v48 = vadd.f32 %v2037_v23, %v1822_v56  ;;  %v1825_v18 = vadd.f32 %v4862_v37, %v6053_v51  ;;  %v3335_v56 = vld [vmem:[#allocation2 + $0x16a] sm:$0xff] }
 0x220   : > { %v1746_v7 = vpop.f32.mrf.mxu0 }
 0x221   : > { %v2040_v22 = vpop.f32.mrf.mxu1  ;;  %v6191_v30 = vadd.f32 %v4896_v17, %v1825_v18  ;;  %v1823_v15 = vadd.f32 %v1746_v7, %v1485_v35  ;;  %v1501_v17 = vadd.f32 %v6075_v13, %v6073_v9  ;;  %v3354_v18 = vpack.c.bf16 %v3336_v58, %v3335_v56  ;;  %v3339_v9 = vld [vmem:[#allocation2 + $0x19a] sm:$0xff]  ;;  %v3340_v13 = vld [vmem:[#allocation2 + $0x1a2] sm:$0xff] }
 0x222   : > { %v4865_v27 = vpop.f32.mrf.mxu0  ;;  %5068 = vmatmul.mubr.msk.bf16.gmra.mxu0 %vm941_vm3, %v3352_v54  ;;  %v1517_v56 = vadd.f32 %v6093_v14, %v6091_v8 }
 0x223   : > { %v4899_v26 = vpop.f32.mrf.mxu1  ;;  %v6194_v12 = vadd.f32 %v2040_v22, %v1823_v15  ;;  %v1828_v6 = vadd.f32 %v4865_v27, %v6063_v52  ;;  %5071 = vmatprep.mubr.msk.bf16.mxu0 %vm941_vm3, %v3353_v50 }
 0x224   : > { %v1759_v46 = vpop.f32.mrf.mxu0 }
 0x225   : > { %v2053_v11 = vpop.f32.mrf.mxu1  ;;  %v6198_v51 = vadd.f32 %v4899_v26, %v1828_v6  ;;  %v1826_v23 = vadd.f32 %v1759_v46, %v6069_v44 }
 0x226   : > { %v4866_v21 = vpop.f32.mrf.mxu0 }
 0x227   : > { %v4900_v37 = vpop.f32.mrf.mxu1  ;;  %v6203_v2 = vadd.f32 %v2053_v11, %v1826_v23  ;;  %v1829_v28 = vadd.f32 %v4866_v21, %v6071_v25  ;;  %v3356_v23 = vpack.c.bf16 %v3340_v13, %v3339_v9 }
 0x228   : > { %v1762_v52 = vpop.f32.mrf.mxu0 }
 0x229   : > { %v2056_v35 = vpop.f32.mrf.mxu1  ;;  %v6206_v7 = vadd.f32 %v4900_v37, %v1829_v28  ;;  %v1827_v6 = vadd.f32 %v1762_v52, %v1501_v17 }
 0x22a   : > { %v4869_v26 = vpop.f32.mrf.mxu0  ;;  %5072 = vmatmul.mubr.msk.bf16.gmra.mxu0 %vm941_vm3, %v3354_v18 }
 0x22b   : > { %v4903_v22 = vpop.f32.mrf.mxu1  ;;  %v6209_v44 = vadd.f32 %v2056_v35, %v1827_v6  ;;  %v1832_v54 = vadd.f32 %v4869_v26, %v6081_v53  ;;  %5075 = vmatprep.mubr.msk.bf16.mxu0 %vm941_vm3, %v5962_v47 }
 0x22c   : > { %v1775_v25 = vpop.f32.mrf.mxu0 }
 0x22d   : > { %v2069_v15 = vpop.f32.mrf.mxu1  ;;  %v6214_v50 = vadd.f32 %v4903_v22, %v1832_v54  ;;  %v1830_v27 = vadd.f32 %v1775_v25, %v6087_v4  ;;  %v1533_v22 = vadd.f32 %v6107_v33, %v6105_v16 }
 0x22e   : > { %v4870_v46 = vpop.f32.mrf.mxu0 }
 0x22f   : > { %v4904_v11 = vpop.f32.mrf.mxu1  ;;  %v6219_v58 = vadd.f32 %v2069_v15, %v1830_v27  ;;  %v1833_v53 = vadd.f32 %v4870_v46, %v6089_v1 }
 0x230   : > { %v1778_v21 = vpop.f32.mrf.mxu0 }
 0x231   : > { %v2072_v47 = vpop.f32.mrf.mxu1  ;;  %v6222_v37 = vadd.f32 %v4904_v11, %v1833_v53  ;;  %v1831_v17 = vadd.f32 %v1778_v21, %v1517_v56 }
 0x232   : > { %v4873_v28 = vpop.f32.mrf.mxu0  ;;  %5076 = vmatmul.mubr.msk.bf16.gmra.mxu0 %vm941_vm3, %v3356_v23 }
 0x233   : > { %v4907_v52 = vpop.f32.mrf.mxu1  ;;  %v6225_v4 = vadd.f32 %v2072_v47, %v1831_v17  ;;  %v1836_v35 = vadd.f32 %v4873_v28, %v6097_v42 }
 0x234   : > { %v1791_v18 = vpop.f32.mrf.mxu0 }
 0x235   : > { %v2085_v6 = vpop.f32.mrf.mxu1  ;;  %v6228_v8 = vadd.f32 %v4907_v52, %v1836_v35  ;;  %v1834_v14 = vadd.f32 %v1791_v18, %v6101_v45 }
 0x236   : > { %v4874_v1 = vpop.f32.mrf.mxu0 }
 0x237   : > { %v4908_v26 = vpop.f32.mrf.mxu1  ;;  %v6233_v54 = vadd.f32 %v2085_v6, %v1834_v14  ;;  %v1837_v9 = vadd.f32 %v4874_v1, %v6103_v10  ;;  %v2101_v10 = vadd.f32 %v6120_v0, %v6125_v29 }
 0x238   : > { %v1794_v13 = vpop.f32.mrf.mxu0 }
 0x239   : > { %v2088_v25 = vpop.f32.mrf.mxu1  ;;  %v6236_v15 = vadd.f32 %v4908_v26, %v1837_v9  ;;  %v1835_v42 = vadd.f32 %v1794_v13, %v1533_v22 }
 0x23a   : > { %v4913_v27 = vpop.f32.mrf.mxu0 }
 0x23b   : > { %v4947_v46 = vpop.f32.mrf.mxu1  ;;  %v6238_v11 = vadd.f32 %v2088_v25, %v1835_v42  ;;  %v2396_v45 = vadd.f32 %v4913_v27, %v6114_v24 }
 0x23c   : > { %v2267_v23 = vpop.f32.mrf.mxu0 }
 0x23d   : > { %v2561_v56 = vpop.f32.mrf.mxu1  ;;  %v6241_v53 = vadd.f32 %v4947_v46, %v2396_v45  ;;  %v2394_v16 = vadd.f32 %v2267_v23, %v6117_v34 }
 0x23e   : > { %v4914_v33 = vpop.f32.mrf.mxu0 }
 0x23f   : > { %v6244_v21 = vpop.f32.mrf.mxu1  ;;  %v6248_v47 = vadd.f32 %v2561_v56, %v2394_v16  ;;  %v6251_v17 = vadd.f32 %v4914_v33, %v6122_v57  ;;  %v2105_v57 = vadd.f32 %v6136_v59, %v6141_v40 }
 0x240   : > { %v2270_v28 = vpop.f32.mrf.mxu0 }
 0x241   : > { %v6253_v52 = vpop.f32.mrf.mxu1  ;;  %v6255_v24 = vadd.f32 %v2270_v28, %v2101_v10 }
 0x242   : > { %v4917_v35 = vpop.f32.mrf.mxu0 }
 0x243   : > { %v4951_v18 = vpop.f32.mrf.mxu1  ;;  %v2400_v34 = vadd.f32 %v4917_v35, %v6130_v19 }
 0x244   : > { %v2283_v6 = vpop.f32.mrf.mxu0 }
 0x245   : > { %v2577_v14 = vpop.f32.mrf.mxu1  ;;  %v6258_v1 = vadd.f32 %v4951_v18, %v2400_v34  ;;  %v2398_v0 = vadd.f32 %v2283_v6, %v6133_v3 }
 0x246   : > { %v4918_v29 = vpop.f32.mrf.mxu0 }
 0x247   : > { %v6261_v26 = vpop.f32.mrf.mxu1  ;;  %v6265_v22 = vadd.f32 %v2577_v14, %v2398_v0  ;;  %v6268_v9 = vadd.f32 %v4918_v29, %v6138_v38  ;;  %v2109_v38 = vadd.f32 %v6157_v5, %v6162_v60 }
 0x248   : > { %v2286_v13 = vpop.f32.mrf.mxu0 }
 0x249   : > { %v6270_v25 = vpop.f32.mrf.mxu1  ;;  %v6272_v19 = vadd.f32 %v2286_v13, %v2105_v57 }
 0x24a   : > { %v4921_v42 = vpop.f32.mrf.mxu0 }
 0x24b   : > { %v4955_v27 = vpop.f32.mrf.mxu1  ;;  %v2404_v3 = vadd.f32 %v4921_v42, %v6150_v41 }
 0x24c   : > { %v2299_v46 = vpop.f32.mrf.mxu0 }
 0x24d   : > { %v2593_v45 = vpop.f32.mrf.mxu1  ;;  %v6275_v23 = vadd.f32 %v4955_v27, %v2404_v3  ;;  %v2402_v59 = vadd.f32 %v2299_v46, %v6154_v62 }
 0x24e   : > { %v4922_v40 = vpop.f32.mrf.mxu0 }
 0x24f   : > { %v6278_v56 = vpop.f32.mrf.mxu1  ;;  %v6282_v16 = vadd.f32 %v2593_v45, %v2402_v59  ;;  %v6285_v33 = vadd.f32 %v4922_v40, %v6159_v31  ;;  %v2113_v31 = vadd.f32 %v6173_v49, %v6178_v43 }
 0x250   : > { %v2302_v10 = vpop.f32.mrf.mxu0 }
 0x251   : > { %v6287_v28 = vpop.f32.mrf.mxu1  ;;  %v6289_v41 = vadd.f32 %v2302_v10, %v2109_v38 }
 0x252   : > { %v4925_v35 = vpop.f32.mrf.mxu0 }
 0x253   : > { %v4959_v18 = vpop.f32.mrf.mxu1  ;;  %v2408_v62 = vadd.f32 %v4925_v35, %v6167_v55 }
 0x254   : > { %v2315_v34 = vpop.f32.mrf.mxu0 }
 0x255   : > { %v2609_v6 = vpop.f32.mrf.mxu1  ;;  %v6292_v14 = vadd.f32 %v4959_v18, %v2408_v62  ;;  %v2406_v5 = vadd.f32 %v2315_v34, %v6170_v36 }
 0x256   : > { %v4926_v60 = vpop.f32.mrf.mxu0 }
 0x257   : > { %v6295_v0 = vpop.f32.mrf.mxu1  ;;  %v6299_v29 = vadd.f32 %v2609_v6, %v2406_v5  ;;  %v6302_v57 = vadd.f32 %v4926_v60, %v6175_v32 }
 0x258   : > { %v2318_v13 = vpop.f32.mrf.mxu0 }
 0x259   : > { %v6304_v42 = vpop.f32.mrf.mxu1  ;;  %v6306_v55 = vadd.f32 %v2318_v13, %v2113_v31 }
 0x25a   : > { %v4929_v27 = vpop.f32.mrf.mxu0 }
 0x25b   : > { %v4963_v3 = vpop.f32.mrf.mxu1  ;;  %v2412_v36 = vadd.f32 %v4929_v27, %v6183_v20 }
 0x25c   : > { %v2331_v46 = vpop.f32.mrf.mxu0 }
 0x25d   : > { %v2625_v45 = vpop.f32.mrf.mxu1  ;;  %v6309_v59 = vadd.f32 %v4963_v3, %v2412_v36  ;;  %v2410_v49 = vadd.f32 %v2331_v46, %v6188_v48 }
 0x25e   : > { %v4930_v43 = vpop.f32.mrf.mxu0 }
 0x25f   : > { %v6312_v40 = vpop.f32.mrf.mxu1  ;;  %v6314_v32 = vadd.f32 %v2625_v45, %v2410_v49  ;;  %v6317_v38 = vadd.f32 %v4930_v43, %v6191_v30 }
 0x260   : > { %v2334_v10 = vpop.f32.mrf.mxu0 }
 0x261   : > { %v6319_v35 = vpop.f32.mrf.mxu1  ;;  %v6322_v18 = vadd.f32 %v2334_v10, %v6194_v12 }
 0x262   : > { %v4933_v20 = vpop.f32.mrf.mxu0 }
 0x263   : > { %v4967_v62 = vpop.f32.mrf.mxu1  ;;  %v2416_v34 = vadd.f32 %v4933_v20, %v6198_v51 }
 0x264   : > { %v2347_v6 = vpop.f32.mrf.mxu0 }
 0x265   : > { %v2641_v48 = vpop.f32.mrf.mxu1  ;;  %v6325_v5 = vadd.f32 %v4967_v62, %v2416_v34  ;;  %v2414_v60 = vadd.f32 %v2347_v6, %v6203_v2 }
 0x266   : > { %v4934_v31 = vpop.f32.mrf.mxu0 }
 0x267   : > { %v6328_v13 = vpop.f32.mrf.mxu1  ;;  %v6330_v30 = vadd.f32 %v2641_v48, %v2414_v60  ;;  %v6333_v27 = vadd.f32 %v4934_v31, %v6206_v7 }
 0x268   : > { %6831 = vst [vmem:[#allocation38_spill] sm:$0xff] %v6328_v13  ;;  %v2350_v12 = vpop.f32.mrf.mxu0 }
 0x269   : > { %6832 = vst [vmem:[#allocation39_spill] sm:$0xff] %v6333_v27  ;;  %v6335_v3 = vpop.f32.mrf.mxu1  ;;  %v6338_v36 = vadd.f32 %v2350_v12, %v6209_v44 }
 0x26a   : > { %6833 = vst [vmem:[#allocation40_spill] sm:$0xff] %v6335_v3  ;;  %v4937_v51 = vpop.f32.mrf.mxu0 }
 0x26b   : > { %6834 = vst [vmem:[#allocation41_spill] sm:$0xff] %v6338_v36  ;;  %v4971_v46 = vpop.f32.mrf.mxu1  ;;  %v2420_v45 = vadd.f32 %v4937_v51, %v6214_v50 }
 0x26c   : > { %v2363_v49 = vpop.f32.mrf.mxu0 }
 0x26d   : > { %v2657_v2 = vpop.f32.mrf.mxu1  ;;  %v6341_v43 = vadd.f32 %v4971_v46, %v2420_v45  ;;  %v2418_v10 = vadd.f32 %v2363_v49, %v6219_v58 }
 0x26e   : > { %v4938_v20 = vpop.f32.mrf.mxu0 }
 0x26f   : > { %v6344_v62 = vpop.f32.mrf.mxu1  ;;  %v6346_v7 = vadd.f32 %v2657_v2, %v2418_v10  ;;  %v6349_v34 = vadd.f32 %v4938_v20, %v6222_v37 }
 0x270   : > { %6835 = vst [vmem:[#allocation42_spill] sm:$0xff] %v6344_v62  ;;  %v2366_v44 = vpop.f32.mrf.mxu0 }
 0x271   : > { %6836 = vst [vmem:[#allocation43_spill] sm:$0xff] %v6349_v34  ;;  %v6351_v6 = vpop.f32.mrf.mxu1  ;;  %v6354_v48 = vadd.f32 %v2366_v44, %v6225_v4 }
 0x272   : > { %6837 = vst [vmem:[#allocation44_spill] sm:$0xff] %v6351_v6  ;;  %v4941_v50 = vpop.f32.mrf.mxu0 }
 0x273   : > { %6838 = vst [vmem:[#allocation45_spill] sm:$0xff] %v6354_v48  ;;  %v4975_v60 = vpop.f32.mrf.mxu1  ;;  %v2424_v31 = vadd.f32 %v4941_v50, %v6228_v8 }
 0x274   : > { %v2379_v12 = vpop.f32.mrf.mxu0 }
 0x275   : > { %v2673_v58 = vpop.f32.mrf.mxu1  ;;  %v6357_v51 = vadd.f32 %v4975_v60, %v2424_v31  ;;  %v2422_v46 = vadd.f32 %v2379_v12, %v6233_v54 }
 0x276   : > { %v4942_v45 = vpop.f32.mrf.mxu0 }
 0x277   : > { %v6360_v49 = vpop.f32.mrf.mxu1  ;;  %v6362_v37 = vadd.f32 %v2673_v58, %v2422_v46  ;;  %v6365_v2 = vadd.f32 %v4942_v45, %v6236_v15 }
 0x278   : > { %6839 = vst [vmem:[#allocation46_spill] sm:$0xff] %v6360_v49  ;;  %v2382_v4 = vpop.f32.mrf.mxu0 }
 0x279   : > { %6840 = vst [vmem:[#allocation47_spill] sm:$0xff] %v6365_v2  ;;  %v6367_v10 = vpop.f32.mrf.mxu1  ;;  %v6370_v20 = vadd.f32 %v2382_v4, %v6238_v11 }
 0x27a   : > { %6841 = vst [vmem:[#allocation48_spill] sm:$0xff] %v6367_v10  ;;  %v4981_v8 = vpop.f32.mrf.mxu0 }
 0x27b   : > { %6842 = vst [vmem:[#allocation49_spill] sm:$0xff] %v6370_v20  ;;  %v6372_v44 = vpop.f32.mrf.mxu1  ;;  %v6375_v50 = vadd.f32 %v4981_v8, %v6241_v53 }
 0x27c   : > { %v2856_v54 = vpop.f32.mrf.mxu0 }
 0x27d   : > { %v6378_v60 = vadd.f32 %v2856_v54, %v6248_v47  ;;  %v6380_v31 = vpop.f32.mrf.mxu1 }
 0x27e   : > { %v4982_v15 = vpop.f32.mrf.mxu0 }
 0x27f   : > { %v6384_v58 = vpop.f32.mrf.mxu1 }
 0x280   : > { %v6382_v12 = vpop.f32.mrf.mxu0 }
 0x281   : > { %v6392_v53 = vpop.f32.mrf.mxu1 }
 0x282   : > { %v4985_v46 = vpop.f32.mrf.mxu0 }
 0x283   : > { %v6387_v11 = vadd.f32 %v4985_v46, %v6258_v1  ;;  %v6398_v54 = vpop.f32.mrf.mxu1 }
 0x284   : > { %v2872_v45 = vpop.f32.mrf.mxu0 }
 0x285   : > { %v6390_v4 = vadd.f32 %v2872_v45, %v6265_v22  ;;  %v6406_v46 = vpop.f32.mrf.mxu1 }
 0x286   : > { %v6394_v8 = vpop.f32.mrf.mxu0 }
 0x287   : > { %v6412_v10 = vpop.f32.mrf.mxu1 }
 0x288   : > { %v6396_v47 = vpop.f32.mrf.mxu0 }
 0x28a   : > { %v4989_v63 = vpop.f32.mrf.mxu0 }
 0x28b   : > { %v6401_v61 = vadd.f32 %v4989_v63, %v6275_v23  ;;  %v6420_v23 = vpop.f32.mrf.mxu1 }
 0x28c   : > { %v2888_v39 = vpop.f32.mrf.mxu0 }
 0x28d   : > { %v6404_v1 = vadd.f32 %v2888_v39, %v6282_v16  ;;  %v6426_v6 = vpop.f32.mrf.mxu1 }
 0x28e   : > { %v6408_v22 = vpop.f32.mrf.mxu0 }
 0x290   : > { %v6410_v45 = vpop.f32.mrf.mxu0 }
 0x292   : > { %v4993_v20 = vpop.f32.mrf.mxu0 }
 0x293   : > { %v6415_v49 = vadd.f32 %v4993_v20, %v6292_v14  ;;  %v6434_v20 = vpop.f32.mrf.mxu1 }
 0x294   : > { %v2904_v2 = vpop.f32.mrf.mxu0 }
 0x295   : > { %v6418_v63 = vadd.f32 %v2904_v2, %v6299_v29  ;;  %v6440_v3 = vpop.f32.mrf.mxu1 }
 0x296   : > { %v6422_v39 = vpop.f32.mrf.mxu0 }
 0x298   : > { %v6424_v16 = vpop.f32.mrf.mxu0 }
 0x29a   : > { %v4997_v48 = vpop.f32.mrf.mxu0 }
 0x29b   : > { %v6429_v62 = vadd.f32 %v4997_v48, %v6309_v59  ;;  %v6448_v48 = vpop.f32.mrf.mxu1 }
 0x29c   : > { %v2920_v34 = vpop.f32.mrf.mxu0 }
 0x29d   : > { %6843 = vst [vmem:[#allocation50_spill] sm:$0xff] %v6429_v62  ;;  %v6432_v14 = vadd.f32 %v2920_v34, %v6314_v32 }
 0x29e   : > { %v6436_v29 = vpop.f32.mrf.mxu0 }
 0x29f   : > { %6844 = vst [vmem:[#allocation51_spill] sm:$0xff] %v6432_v14  ;;  %6845 = vst [vmem:[#allocation52_spill] sm:$0xff] %v6436_v29  ;;  %v6454_v14 = vpop.f32.mrf.mxu1 }
 0x2a0   : > { %v6438_v2 = vpop.f32.mrf.mxu0 }
 0x2a1   : > { %6846 = vst [vmem:[#allocation53_spill] sm:$0xff] %v6438_v2 }
 0x2a2   : > { %v5001_v36 = vpop.f32.mrf.mxu0 }
 0x2a3   : > { %v6443_v13 = vadd.f32 %v5001_v36, %v6325_v5  ;;  %v6462_v36 = vpop.f32.mrf.mxu1 }
 0x2a4   : > { %v2936_v27 = vpop.f32.mrf.mxu0 }
 0x2a5   : > { %6847 = vst [vmem:[#allocation54_spill] sm:$0xff] %v6443_v13  ;;  %v6446_v59 = vadd.f32 %v2936_v27, %v6330_v30 }
 0x2a6   : > { %v6450_v32 = vpop.f32.mrf.mxu0 }
 0x2a7   : > { %6848 = vst [vmem:[#allocation55_spill] sm:$0xff] %v6446_v59  ;;  %6849 = vst [vmem:[#allocation56_spill] sm:$0xff] %v6450_v32  ;;  %v6468_v59 = vpop.f32.mrf.mxu1 }
 0x2a8   : > { %v6452_v34 = vpop.f32.mrf.mxu0 }
 0x2a9   : > { %6850 = vst [vmem:[#allocation57_spill] sm:$0xff] %v6452_v34 }
 0x2aa   : > { %v5005_v62 = vpop.f32.mrf.mxu0 }
 0x2ab   : > { %v6457_v2 = vadd.f32 %v5005_v62, %v6341_v43  ;;  %v6476_v62 = vpop.f32.mrf.mxu1 }
 0x2ac   : > { %v2952_v29 = vpop.f32.mrf.mxu0 }
 0x2ad   : > { %v6460_v5 = vadd.f32 %v2952_v29, %v6346_v7  ;;  %v2691_v29 = vadd.f32 %v6244_v21, %v6251_v17  ;;  %v6496_v21 = vld [vmem:[%s6793_s6] ss:$0 sm:$0xff] }
 0x2ae   : > { %v6464_v30 = vpop.f32.mrf.mxu0 }
 0x2af   : > { %6851 = vst [vmem:[#allocation58_spill] sm:$0xff] %v6460_v5 }
 0x2b0   : > { %v6466_v27 = vpop.f32.mrf.mxu0 }
 0x2b1   : > { %6852 = vst [vmem:[#allocation59_spill] sm:$0xff] %v6466_v27  ;;  %v2689_v27 = vadd.f32 %v6253_v52, %v6255_v24 }
 0x2b2   : > { %v5009_v13 = vpop.f32.mrf.mxu0 }
 0x2b3   : > { %v6471_v34 = vadd.f32 %v5009_v13, %v6357_v51  ;;  %v3279_v13 = vadd.f32 %v6372_v44, %v6375_v50  ;;  %v2986_v51 = vadd.f32 %v4982_v15, %v2691_v29  ;;  %v2695_v44 = vadd.f32 %v6261_v26, %v6268_v9 }
 0x2b4   : > { %v2968_v32 = vpop.f32.mrf.mxu0 }
 0x2b5   : > { %6853 = vst [vmem:[#allocation60_spill] sm:$0xff] %v6471_v34  ;;  %v6474_v43 = vadd.f32 %v2968_v32, %v6362_v37  ;;  %v6488_v34 = vpop.f32.mrf.mxu1  ;;  %v3277_v32 = vadd.f32 %v6380_v31, %v6378_v60  ;;  %v3280_v52 = vadd.f32 %v6384_v58, %v2986_v51  ;;  %v2990_v29 = vadd.f32 %v6394_v8, %v2695_v44 }
 0x2b6   : > { %v6478_v7 = vpop.f32.mrf.mxu0  ;;  %v3283_v58 = vadd.f32 %v6398_v54, %v6387_v11 }
 0x2b7   : > { %6854 = vst [vmem:[#allocation61_spill] sm:$0xff] %v6474_v43  ;;  %6855 = vst [vmem:[#allocation62_spill] sm:$0xff] %v6478_v7  ;;  %v2984_v43 = vadd.f32 %v6382_v12, %v2689_v27  ;;  %v6501_v50 = vpop.f32.mrf.mxu1  ;;  %v2693_v27 = vadd.f32 %v6270_v25, %v6272_v19  ;;  %v3284_v11 = vadd.f32 %v6412_v10, %v2990_v29 }
 0x2b8   : > { %v6482_v5 = vpop.f32.mrf.mxu0  ;;  %v2697_v10 = vadd.f32 %v6287_v28, %v6289_v41 }
 0x2b9   : > { %v3278_v60 = vadd.f32 %v6392_v53, %v2984_v43  ;;  %v3281_v53 = vadd.f32 %v6406_v46, %v6390_v4  ;;  %v2988_v43 = vadd.f32 %v6396_v47, %v2693_v27  ;;  %v2699_v4 = vadd.f32 %v6278_v56, %v6285_v33 }
 0x2ba   : > { %v5049_v37 = vpop.f32.mrf.mxu0 }
 0x2bb   : > { %v3573_v7 = vadd.f32 %v5049_v37, %v3279_v13  ;;  %v2994_v27 = vadd.f32 %v6408_v22, %v2699_v4 }
 0x2bc   : > { %v3444_v17 = vpop.f32.mrf.mxu0 }
 0x2bd   : > { %v3571_v24 = vadd.f32 %v3444_v17, %v3277_v32  ;;  %v3612_v31 = vadd.f32 %v6496_v21, %v3573_v7  ;;  %v6515_v7 = vpop.f32.mrf.mxu1 }
 0x2be   : > { %v5050_v15 = vpop.f32.mrf.mxu0 }
 0x2bf   : > { %v3574_v12 = vadd.f32 %v5050_v15, %v3280_v52  ;;  %v3610_v51 = vadd.f32 %v6496_v21, %v3571_v24  ;;  %v3644_v25 = vmax.f32 %v3612_v31, 0.0  ;;  %v6521_v46 = vpop.f32.mrf.mxu1  ;;  %v3282_v15 = vadd.f32 %v6420_v23, %v2988_v43 }
 0x2c0   : > { %v3447_v13 = vpop.f32.mrf.mxu0  ;;  %v3285_v23 = vadd.f32 %v6434_v20, %v6404_v1  ;;  %v2703_v1 = vadd.f32 %v6295_v0, %v6302_v57 }
 0x2c1   : > { %v3613_v26 = vadd.f32 %v6496_v21, %v3574_v12  ;;  %v3572_v9 = vadd.f32 %v3447_v13, %v3278_v60  ;;  %v3642_v17 = vmax.f32 %v3610_v51, 0.0  ;;  %v3287_v13 = vadd.f32 %v6426_v6, %v6401_v61 }
 0x2c2   : > { %v5053_v37 = vpop.f32.mrf.mxu0  ;;  %v2992_v51 = vadd.f32 %v6410_v45, %v2697_v10 }
 0x2c3   : > { %v3645_v19 = vmax.f32 %v3613_v26, 0.0  ;;  %v3611_v8 = vadd.f32 %v6496_v21, %v3572_v9  ;;  %v3577_v32 = vadd.f32 %v5053_v37, %v3283_v58  ;;  %v6536_v26 = vpop.f32.mrf.mxu1  ;;  %v3288_v9 = vadd.f32 %v6440_v3, %v2994_v27 }
 0x2c4   : > { %v3460_v54 = vpop.f32.mrf.mxu0  ;;  %v2701_v3 = vadd.f32 %v6304_v42, %v6306_v55 }
 0x2c5   : > { %v3675_v52 = vpack.c.bf16 %v3645_v19, %v3644_v25  ;;  %v3643_v24 = vmax.f32 %v3611_v8, 0.0  ;;  %v3575_v44 = vadd.f32 %v3460_v54, %v3281_v53  ;;  %v3616_v31 = vadd.f32 %v6496_v21, %v3577_v32  ;;  %v6543_v45 = vpop.f32.mrf.mxu1 }
 0x2c6   : > { %v5054_v47 = vpop.f32.mrf.mxu0  ;;  %v3286_v8 = vadd.f32 %v6448_v48, %v2992_v51  ;;  %v3289_v48 = vadd.f32 %v6462_v36, %v6418_v63  ;;  %v2996_v4 = vadd.f32 %v6424_v16, %v2701_v3  ;;  %v2707_v63 = vadd.f32 %v6312_v40, %v6317_v38 }
 0x2c7   : > { %v3674_v60 = vpack.c.bf16 %v3643_v24, %v3642_v17  ;;  %v3578_v12 = vadd.f32 %v5054_v47, %v3284_v11  ;;  %v3614_v56 = vadd.f32 %v6496_v21, %v3575_v44  ;;  %v3648_v41 = vmax.f32 %v3616_v31, 0.0  ;;  %v6558_v47 = vpop.f32.mrf.mxu1 }
 0x2c8   : > { %v3463_v29 = vpop.f32.mrf.mxu0  ;;  %v2998_v17 = vadd.f32 %v6422_v39, %v2703_v1  ;;  %v3291_v24 = vadd.f32 %v6454_v14, %v6415_v49 }
 0x2c9   : > { %v3617_v33 = vadd.f32 %v6496_v21, %v3578_v12  ;;  %v3576_v58 = vadd.f32 %v3463_v29, %v3282_v15  ;;  %5081 = vmatprep.mubr.msk.bf16.mxu1 %vm941_vm3, %v3674_v60  ;;  %v3646_v43 = vmax.f32 %v3614_v56, 0.0  ;;  %v3233_v16 = vpop.f32.mrf.mxu1  ;;  %v3290_v29 = vadd.f32 %v6476_v62, %v2996_v4  ;;  %v6858_v62 = vld [vmem:[#allocation51_spill] sm:$0xff] }
 0x2ca   : > { %v5057_v28 = vpop.f32.mrf.mxu0  ;;  %5082 = vmatmul.mubr.msk.bf16.vlgmr.msra.gmra.mxu1 %vm941_vm3, %v3675_v52  ;;  %v3292_v15 = vadd.f32 %v6468_v59, %v2998_v17  ;;  %v6856_v59 = vld [vmem:[#allocation52_spill] sm:$0xff] }
 0x2cb   : > { %v3649_v22 = vmax.f32 %v3617_v33, 0.0  ;;  %v3615_v61 = vadd.f32 %v6496_v21, %v3576_v58  ;;  %v3581_v6 = vadd.f32 %v5057_v28, %v3287_v13  ;;  %v2705_v58 = vadd.f32 %v6319_v35, %v6322_v18  ;;  %v6857_v28 = vld [vmem:[#allocation50_spill] sm:$0xff] }
 0x2cc   : > { %v3476_v53 = vpop.f32.mrf.mxu0 }
 0x2cd   : > { %v3677_v37 = vpack.c.bf16 %v3649_v22, %v3648_v41  ;;  %v3647_v25 = vmax.f32 %v3615_v61, 0.0  ;;  %v3579_v19 = vadd.f32 %v3476_v53, %v3285_v23  ;;  %v3620_v11 = vadd.f32 %v6496_v21, %v3581_v6  ;;  %v6859_v6 = vld [vmem:[#allocation53_spill] sm:$0xff]  ;;  %v5039_v53 = vpop.f32.mrf.mxu1 }
 0x2ce   : > { %v5058_v20 = vpop.f32.mrf.mxu0  ;;  %v3002_v23 = vadd.f32 %v6856_v59, %v2707_v63  ;;  %v3295_v41 = vadd.f32 %v6488_v34, %v6857_v28  ;;  %v3293_v61 = vadd.f32 %v6501_v50, %v6858_v62  ;;  %v6861_v50 = vld [vmem:[#allocation38_spill] sm:$0xff]  ;;  %v6868_v28 = vld [vmem:[#allocation43_spill] sm:$0xff] }
 0x2cf   : > { %v3676_v32 = vpack.c.bf16 %v3647_v25, %v3646_v43  ;;  %v3582_v54 = vadd.f32 %v5058_v20, %v3288_v9  ;;  %v3618_v0 = vadd.f32 %v6496_v21, %v3579_v19  ;;  %v3652_v55 = vmax.f32 %v3620_v11, 0.0  ;;  %v6860_v11 = vld [vmem:[#allocation39_spill] sm:$0xff]  ;;  %v3246_v3 = vpop.f32.mrf.mxu1 }
 0x2d0   : > { %v3479_v52 = vpop.f32.mrf.mxu0  ;;  %v3000_v9 = vadd.f32 %v6859_v6, %v2705_v58  ;;  %v3296_v25 = vadd.f32 %v6515_v7, %v3002_v23  ;;  %v6864_v7 = vld [vmem:[#allocation56_spill] sm:$0xff] }
 0x2d1   : > { %v3621_v57 = vadd.f32 %v6496_v21, %v3582_v54  ;;  %v3580_v44 = vadd.f32 %v3479_v52, %v3286_v8  ;;  %5085 = vmatprep.mubr.msk.bf16.mxu1 %vm941_vm3, %v3676_v32  ;;  %v3650_v31 = vmax.f32 %v3618_v0, 0.0  ;;  %v2711_v54 = vadd.f32 %v6861_v50, %v6860_v11 }
 0x2d2   : > { %v5061_v42 = vpop.f32.mrf.mxu0  ;;  %5086 = vmatmul.mubr.msk.bf16.gmra.mxu1 %vm941_vm3, %v3677_v37  ;;  %v3294_v52 = vadd.f32 %v6521_v46, %v3000_v9  ;;  %v6866_v46 = vld [vmem:[#allocation55_spill] sm:$0xff]  ;;  %v6870_v9 = vld [vmem:[#allocation45_spill] sm:$0xff] }
 0x2d3   : > { %v3653_v39 = vmax.f32 %v3621_v57, 0.0  ;;  %v3619_v49 = vadd.f32 %v6496_v21, %v3580_v44  ;;  %v3585_v14 = vadd.f32 %v5061_v42, %v3291_v24  ;;  %v6862_v44 = vld [vmem:[#allocation41_spill] sm:$0xff]  ;;  %v3006_v42 = vadd.f32 %v6864_v7, %v2711_v54 }
 0x2d4   : > { %v3492_v60 = vpop.f32.mrf.mxu0 }
 0x2d5   : > { %v3679_v12 = vpack.c.bf16 %v3653_v39, %v3652_v55  ;;  %v3651_v10 = vmax.f32 %v3619_v49, 0.0  ;;  %v3583_v27 = vadd.f32 %v3492_v60, %v3289_v48  ;;  %v3624_v56 = vadd.f32 %v6496_v21, %v3585_v14  ;;  %v6863_v48 = vld [vmem:[#allocation40_spill] sm:$0xff]  ;;  %v6865_v39 = vld [vmem:[#allocation54_spill] sm:$0xff] }
 0x2d6   : > { %v5062_v36 = vpop.f32.mrf.mxu0  ;;  %v2709_v4 = vadd.f32 %v6863_v48, %v6862_v44  ;;  %v3299_v49 = vadd.f32 %v6536_v26, %v6865_v39  ;;  %v6874_v48 = vld [vmem:[#allocation47_spill] sm:$0xff] }
 0x2d7   : > { %v3678_v13 = vpack.c.bf16 %v3651_v10, %v3650_v31  ;;  %v3586_v33 = vadd.f32 %v5062_v36, %v3292_v15  ;;  %v3622_v22 = vadd.f32 %v6496_v21, %v3583_v27  ;;  %v3656_v18 = vmax.f32 %v3624_v56, 0.0  ;;  %v5040_v27 = vpop.f32.mrf.mxu1 }
 0x2d8   : > { %v3495_v51 = vpop.f32.mrf.mxu0  ;;  %v3297_v31 = vadd.f32 %v6543_v45, %v6866_v46  ;;  %v3300_v56 = vadd.f32 %v6558_v47, %v3006_v42  ;;  %v6869_v45 = vld [vmem:[#allocation42_spill] sm:$0xff] }
 0x2d9   : > { %v3625_v40 = vadd.f32 %v6496_v21, %v3586_v33  ;;  %v3584_v38 = vadd.f32 %v3495_v51, %v3290_v29  ;;  %5089 = vmatprep.mubr.msk.bf16.mxu1 %vm941_vm3, %v3678_v13  ;;  %v3654_v1 = vmax.f32 %v3622_v22, 0.0  ;;  %v3249_v22 = vpop.f32.mrf.mxu1  ;;  %v6878_v46 = vld [vmem:[#allocation62_spill] sm:$0xff] }
 0x2da   : > { %v5065_v35 = vpop.f32.mrf.mxu0  ;;  %5090 = vmatmul.mubr.msk.bf16.gmra.mxu1 %vm941_vm3, %v3679_v12  ;;  %v6867_v12 = vld [vmem:[#allocation57_spill] sm:$0xff] }
 0x2db   : > { %v3657_v43 = vmax.f32 %v3625_v40, 0.0  ;;  %v3623_v34 = vadd.f32 %v6496_v21, %v3584_v38  ;;  %v3589_v37 = vadd.f32 %v5065_v35, %v3295_v41  ;;  %v3004_v10 = vadd.f32 %v6867_v12, %v2709_v4  ;;  %v6871_v35 = vld [vmem:[#allocation44_spill] sm:$0xff]  ;;  %v6875_v4 = vld [vmem:[#allocation46_spill] sm:$0xff] }
 0x2dc   : > { %v3508_v19 = vpop.f32.mrf.mxu0  ;;  %v2715_v41 = vadd.f32 %v6869_v45, %v6868_v28 }
 0x2dd   : > { %v3681_v20 = vpack.c.bf16 %v3657_v43, %v3656_v18  ;;  %v3655_v8 = vmax.f32 %v3623_v34, 0.0  ;;  %v3587_v32 = vadd.f32 %v3508_v19, %v3293_v61  ;;  %v3628_v0 = vadd.f32 %v6496_v21, %v3589_v37  ;;  %v5043_v43 = vpop.f32.mrf.mxu1 }
 0x2de   : > { %v5066_v17 = vpop.f32.mrf.mxu0  ;;  %v3298_v38 = vadd.f32 %v3233_v16, %v3004_v10  ;;  %v2713_v18 = vadd.f32 %v6871_v35, %v6870_v9  ;;  %v3010_v47 = vadd.f32 %v6464_v30, %v2715_v41  ;;  %v3303_v37 = vadd.f32 %v5039_v53, %v6457_v2  ;;  %v6872_v16 = vld [vmem:[#allocation58_spill] sm:$0xff] }
 0x2df   : > { %v3680_v24 = vpack.c.bf16 %v3655_v8, %v3654_v1  ;;  %v3590_v57 = vadd.f32 %v5066_v17, %v3296_v25  ;;  %v3626_v14 = vadd.f32 %v6496_v21, %v3587_v32  ;;  %v3660_v36 = vmax.f32 %v3628_v0, 0.0  ;;  %v6873_v8 = vld [vmem:[#allocation59_spill] sm:$0xff]  ;;  %v3262_v53 = vpop.f32.mrf.mxu1 }
 0x2e0   : > { %v3511_v55 = vpop.f32.mrf.mxu0  ;;  %v3008_v32 = vadd.f32 %v6873_v8, %v2713_v18  ;;  %v3304_v2 = vadd.f32 %v5040_v27, %v3010_v47  ;;  %v6879_v27 = vld [vmem:[#allocation60_spill] sm:$0xff] }
 0x2e1   : > { %v3629_v15 = vadd.f32 %v6496_v21, %v3590_v57  ;;  %v3588_v60 = vadd.f32 %v3511_v55, %v3294_v52  ;;  %5093 = vmatprep.mubr.msk.bf16.mxu1 %vm941_vm3, %v3680_v24  ;;  %v3658_v58 = vmax.f32 %v3626_v14, 0.0  ;;  %v6876_v14 = vld [vmem:[#allocation49_spill] sm:$0xff]  ;;  %v5044_v12 = vpop.f32.mrf.mxu1 }
 0x2e2   : > { %v5069_v63 = vpop.f32.mrf.mxu0  ;;  %5094 = vmatmul.mubr.msk.bf16.gmra.mxu1 %vm941_vm3, %v3681_v20  ;;  %v3301_v20 = vadd.f32 %v3246_v3, %v6872_v16  ;;  %v2719_v3 = vadd.f32 %v6875_v4, %v6874_v48  ;;  %v3302_v42 = vadd.f32 %v3249_v22, %v3008_v32  ;;  %v6884_v48 = vld [vmem:[#allocation9_spill] sm:$0xff] }
 0x2e3   : > { %v3661_v29 = vmax.f32 %v3629_v15, 0.0  ;;  %v3627_v26 = vadd.f32 %v6496_v21, %v3588_v60  ;;  %v3593_v13 = vadd.f32 %v5069_v63, %v3299_v49  ;;  %v6877_v15 = vld [vmem:[#allocation48_spill] sm:$0xff]  ;;  %v3307_v63 = vadd.f32 %v5043_v43, %v6879_v27  ;;  %v3265_v41 = vpop.f32.mrf.mxu1 }
 0x2e4   : > { %v3524_v33 = vpop.f32.mrf.mxu0  ;;  %v2717_v60 = vadd.f32 %v6877_v15, %v6876_v14  ;;  %v6886_v14 = vld [vmem:[#allocation11_spill] sm:$0xff] }
 0x2e5   : > { %v3683_v59 = vpack.c.bf16 %v3661_v29, %v3660_v36  ;;  %v3659_v23 = vmax.f32 %v3627_v26, 0.0  ;;  %v3591_v51 = vadd.f32 %v3524_v33, %v3297_v31  ;;  %v3632_v61 = vadd.f32 %v6496_v21, %v3593_v13  ;;  %v6880_v13 = vld [vmem:[#allocation61_spill] sm:$0xff] }
 0x2e6   : > { %v5070_v40 = vpop.f32.mrf.mxu0  ;;  %v3014_v31 = vadd.f32 %v6878_v46, %v2719_v3  ;;  %v3012_v33 = vadd.f32 %v6482_v5, %v2717_v60 }
 0x2e7   : > { %v3682_v62 = vpack.c.bf16 %v3659_v23, %v3658_v58  ;;  %v3594_v6 = vadd.f32 %v5070_v40, %v3300_v56  ;;  %v3630_v25 = vadd.f32 %v6496_v21, %v3591_v51  ;;  %v3664_v50 = vmax.f32 %v3632_v61, 0.0 }
 0x2e8   : > { %v3527_v34 = vpop.f32.mrf.mxu0  ;;  %v3305_v56 = vadd.f32 %v3262_v53, %v6880_v13  ;;  %v3308_v45 = vadd.f32 %v5044_v12, %v3014_v31  ;;  %v3306_v9 = vadd.f32 %v3265_v41, %v3012_v33  ;;  %v6887_v31 = vld [vmem:[#allocation12_spill] sm:$0xff]  ;;  %v6889_v13 = vld [vmem:[#allocation14_spill] sm:$0xff] }
 0x2e9   : > { %v3633_v19 = vadd.f32 %v6496_v21, %v3594_v6  ;;  %v3592_v1 = vadd.f32 %v3527_v34, %v3298_v38  ;;  %5097 = vmatprep.mubr.msk.bf16.mxu1 %vm941_vm3, %v3682_v62  ;;  %v3662_v24 = vmax.f32 %v3630_v25, 0.0 }
 0x2ea   : > { %v5073_v11 = vpop.f32.mrf.mxu0  ;;  %5098 = vmatmul.mubr.msk.bf16.gmra.mxu1 %vm941_vm3, %v3683_v59 }
 0x2eb   : > { %v3665_v30 = vmax.f32 %v3633_v19, 0.0  ;;  %v3631_v54 = vadd.f32 %v6496_v21, %v3592_v1  ;;  %v3597_v17 = vadd.f32 %v5073_v11, %v3303_v37 }
 0x2ec   : > { %v3540_v52 = vpop.f32.mrf.mxu0 }
 0x2ed   : > { %v3685_v0 = vpack.c.bf16 %v3665_v30, %v3664_v50  ;;  %v3663_v57 = vmax.f32 %v3631_v54, 0.0  ;;  %v3595_v44 = vadd.f32 %v3540_v52, %v3301_v20  ;;  %v3636_v39 = vadd.f32 %v6496_v21, %v3597_v17  ;;  %v6881_v50 = vld [vmem:[#allocation6_spill] sm:$0xff] }
 0x2ee   : > { %v5074_v7 = vpop.f32.mrf.mxu0 }
 0x2ef   : > { %v3684_v55 = vpack.c.bf16 %v3663_v57, %v3662_v24  ;;  %v3598_v49 = vadd.f32 %v5074_v7, %v3304_v2  ;;  %v3634_v36 = vadd.f32 %v6496_v21, %v3595_v44  ;;  %v3668_v59 = vmax.f32 %v3636_v39, 0.0  ;;  %v6882_v2 = vld [vmem:[#allocation7_spill] sm:$0xff]  ;;  %v6883_v24 = vld [vmem:[#allocation8_spill] sm:$0xff] }
 0x2f0   : > { %v3543_v10 = vpop.f32.mrf.mxu0 }
 0x2f1   : > { %v3637_v29 = vadd.f32 %v6496_v21, %v3598_v49  ;;  %v3596_v26 = vadd.f32 %v3543_v10, %v3302_v42  ;;  %5101 = vmatprep.mubr.msk.bf16.mxu1 %vm941_vm3, %v3684_v55  ;;  %v3666_v40 = vmax.f32 %v3634_v36, 0.0  ;;  %v6885_v42 = vld [vmem:[#allocation10_spill] sm:$0xff] }
 0x2f2   : > { %v5077_v58 = vpop.f32.mrf.mxu0  ;;  %5102 = vmatmul.mubr.msk.bf16.gmra.mxu1 %vm941_vm3, %v3685_v0 }
 0x2f3   : > { %v3669_v23 = vmax.f32 %v3637_v29, 0.0  ;;  %v3635_v51 = vadd.f32 %v6496_v21, %v3596_v26  ;;  %v3601_v28 = vadd.f32 %v5077_v58, %v3307_v63  ;;  %v6888_v63 = vld [vmem:[#allocation13_spill] sm:$0xff] }
 0x2f4   : > { %v3556_v22 = vpop.f32.mrf.mxu0 }
 0x2f5   : > { %v3687_v38 = vpack.c.bf16 %v3669_v23, %v3668_v59  ;;  %v3667_v62 = vmax.f32 %v3635_v51, 0.0  ;;  %v3599_v61 = vadd.f32 %v3556_v22, %v3305_v56  ;;  %v3640_v5 = vadd.f32 %v6496_v21, %v3601_v28  ;;  %v6890_v59 = vld [vmem:[#allocation15_spill] sm:$0xff] }
 0x2f6   : > { %v5078_v6 = vpop.f32.mrf.mxu0 }
 0x2f7   : > { %v3686_v35 = vpack.c.bf16 %v3667_v62, %v3666_v40  ;;  %v3602_v18 = vadd.f32 %v5078_v6, %v3308_v45  ;;  %v3638_v43 = vadd.f32 %v6496_v21, %v3599_v61  ;;  %v3672_v25 = vmax.f32 %v3640_v5, 0.0  ;;  %v6891_v45 = vld [vmem:[#allocation16_spill] sm:$0xff] }
 0x2f8   : > { %v3559_v47 = vpop.f32.mrf.mxu0 }
 0x2f9   : > { %v3641_v34 = vadd.f32 %v6496_v21, %v3602_v18  ;;  %v3600_v37 = vadd.f32 %v3559_v47, %v3306_v9  ;;  %5105 = vmatprep.mubr.msk.bf16.mxu1 %vm941_vm3, %v3686_v35  ;;  %v3670_v16 = vmax.f32 %v3638_v43, 0.0  ;;  %v6893_v9 = vld [vmem:[#allocation18_spill] sm:$0xff]  ;;  %v6894_v47 = vld [vmem:[#allocation19_spill] sm:$0xff] }
 0x2fa   : > { %5106 = vmatmul.mubr.msk.bf16.gmra.mxu1 %vm941_vm3, %v3687_v38  ;;  %v6892_v38 = vld [vmem:[#allocation17_spill] sm:$0xff] }
 0x2fb   : > { %v3673_v19 = vmax.f32 %v3641_v34, 0.0  ;;  %v3639_v1 = vadd.f32 %v6496_v21, %v3600_v37 }
 0x2fd   : > { %v3689_v20 = vpack.c.bf16 %v3673_v19, %v3672_v25  ;;  %v3671_v8 = vmax.f32 %v3639_v1, 0.0  ;;  %v6895_v25 = vld [vmem:[#allocation20_spill] sm:$0xff] }
 0x2ff   : > { %v3688_v32 = vpack.c.bf16 %v3671_v8, %v3670_v16 }
 0x301   : > { %5109 = vmatprep.mubr.msk.bf16.mxu1 %vm941_vm3, %v3688_v32 }
 0x302   : > { %5110 = vmatmul.mubr.msk.bf16.gmra.mxu1 %vm941_vm3, %v3689_v20  ;;  %v6896_v20 = vld [vmem:[#allocation21_spill] sm:$0xff] }
 0x38a   : > { %v5083_v11 = vpop.f32.mrf.mxu1 }
 0x38b   : > { %v3785_v30 = vadd.f32 %v5083_v11, %v6881_v50  ;;  %v6897_v50 = vld [vmem:[#allocation22_spill] sm:$0xff] }
 0x38c   : > { %v3776_v54 = vpop.f32.mrf.mxu1 }
 0x38d   : > { %v4391_v17 = vpack.c.bf16 %v3785_v30, %v3785_v30  ;;  %v3777_v53 = vadd.f32 %v3776_v54, %v6882_v2  ;;  %v6898_v2 = vld [vmem:[#allocation23_spill] sm:$0xff] }
 0x38e   : > { %v5084_v21 = vpop.f32.mrf.mxu1 }
 0x38f   : > { %4034 = vst.msk [vmem:[%s6640_s24 + $0x8] sm:$0xf] %vm4031_vm6, %v4391_v17  ;;  %v4389_v52 = vpack.c.bf16 %v3777_v53, %v3777_v53  ;;  %v3788_v0 = vadd.f32 %v5084_v21, %v6883_v24  ;;  %v6899_v24 = vld [vmem:[#allocation24_spill] sm:$0xff] }
 0x390   : > { %v3779_v57 = vpop.f32.mrf.mxu1 }
 0x391   : > { %4032 = vst.msk [vmem:[%s6640_s24] sm:$0xf] %vm4031_vm6, %v4389_v52  ;;  %v4392_v44 = vpack.c.bf16 %v3788_v0, %v3788_v0  ;;  %v3780_v4 = vadd.f32 %v3779_v57, %v6884_v48  ;;  %v6900_v48 = vld [vmem:[#allocation25_spill] sm:$0xff] }
 0x392   : > { %v5087_v3 = vpop.f32.mrf.mxu1 }
 0x393   : > { %4035 = vst.msk [vmem:[%s6640_s24 + $0xc] sm:$0xf] %vm4031_vm6, %v4392_v44  ;;  %v4390_v7 = vpack.c.bf16 %v3780_v4, %v3780_v4  ;;  %v3801_v55 = vadd.f32 %v5087_v3, %v6885_v42  ;;  %v6901_v42 = vld [vmem:[#allocation26_spill] sm:$0xff] }
 0x394   : > { %v3792_v39 = vpop.f32.mrf.mxu1 }
 0x395   : > { %4033 = vst.msk [vmem:[%s6640_s24 + $0x4] sm:$0xf] %vm4031_vm6, %v4390_v7  ;;  %v4395_v49 = vpack.c.bf16 %v3801_v55, %v3801_v55  ;;  %v3793_v15 = vadd.f32 %v3792_v39, %v6886_v14  ;;  %v6902_v14 = vld [vmem:[#allocation27_spill] sm:$0xff] }
 0x396   : > { %v5088_v60 = vpop.f32.mrf.mxu1 }
 0x397   : > { %4038 = vst.msk [vmem:[%s6640_s24 + $0x18] sm:$0xf] %vm4031_vm6, %v4395_v49  ;;  %v4393_v46 = vpack.c.bf16 %v3793_v15, %v3793_v15  ;;  %v3804_v12 = vadd.f32 %v5088_v60, %v6887_v31  ;;  %v6903_v31 = vld [vmem:[#allocation28_spill] sm:$0xff] }
 0x398   : > { %v3795_v10 = vpop.f32.mrf.mxu1 }
 0x399   : > { %4036 = vst.msk [vmem:[%s6640_s24 + $0x10] sm:$0xf] %vm4031_vm6, %v4393_v46  ;;  %v4396_v27 = vpack.c.bf16 %v3804_v12, %v3804_v12  ;;  %v3796_v36 = vadd.f32 %v3795_v10, %v6888_v63  ;;  %v6904_v63 = vld [vmem:[#allocation29_spill] sm:$0xff] }
 0x39a   : > { %v5091_v29 = vpop.f32.mrf.mxu1 }
 0x39b   : > { %4039 = vst.msk [vmem:[%s6640_s24 + $0x1c] sm:$0xf] %vm4031_vm6, %v4396_v27  ;;  %v4394_v26 = vpack.c.bf16 %v3796_v36, %v3796_v36  ;;  %v3817_v56 = vadd.f32 %v5091_v29, %v6889_v13  ;;  %v6905_v13 = vld [vmem:[#allocation30_spill] sm:$0xff] }
 0x39c   : > { %v3808_v33 = vpop.f32.mrf.mxu1 }
 0x39d   : > { %4037 = vst.msk [vmem:[%s6640_s24 + $0x14] sm:$0xf] %vm4031_vm6, %v4394_v26  ;;  %v4399_v58 = vpack.c.bf16 %v3817_v56, %v3817_v56  ;;  %v3809_v23 = vadd.f32 %v3808_v33, %v6890_v59  ;;  %v6906_v59 = vld [vmem:[#allocation31_spill] sm:$0xff] }
 0x39e   : > { %v5092_v51 = vpop.f32.mrf.mxu1 }
 0x39f   : > { %4042 = vst.msk [vmem:[%s6640_s24 + $0x28] sm:$0xf] %vm4031_vm6, %v4399_v58  ;;  %v4397_v28 = vpack.c.bf16 %v3809_v23, %v3809_v23  ;;  %v3820_v41 = vadd.f32 %v5092_v51, %v6891_v45  ;;  %v6907_v45 = vld [vmem:[#allocation32_spill] sm:$0xff] }
 0x3a0   : > { %v3811_v22 = vpop.f32.mrf.mxu1 }
 0x3a1   : > { %4040 = vst.msk [vmem:[%s6640_s24 + $0x20] sm:$0xf] %vm4031_vm6, %v4397_v28  ;;  %v4400_v40 = vpack.c.bf16 %v3820_v41, %v3820_v41  ;;  %v3812_v62 = vadd.f32 %v3811_v22, %v6892_v38  ;;  %v6908_v38 = vld [vmem:[#allocation33_spill] sm:$0xff] }
 0x3a2   : > { %v5095_v61 = vpop.f32.mrf.mxu1 }
 0x3a3   : > { %4043 = vst.msk [vmem:[%s6640_s24 + $0x2c] sm:$0xf] %vm4031_vm6, %v4400_v40  ;;  %v4398_v6 = vpack.c.bf16 %v3812_v62, %v3812_v62  ;;  %v3833_v35 = vadd.f32 %v5095_v61, %v6893_v9  ;;  %v6909_v9 = vld [vmem:[#allocation34_spill] sm:$0xff] }
 0x3a4   : > { %v3824_v5 = vpop.f32.mrf.mxu1 }
 0x3a5   : > { %4041 = vst.msk [vmem:[%s6640_s24 + $0x24] sm:$0xf] %vm4031_vm6, %v4398_v6  ;;  %v4403_v18 = vpack.c.bf16 %v3833_v35, %v3833_v35  ;;  %v3825_v43 = vadd.f32 %v3824_v5, %v6894_v47  ;;  %v6910_v47 = vld [vmem:[#allocation35_spill] sm:$0xff] }
 0x3a6   : > { %v5096_v34 = vpop.f32.mrf.mxu1 }
 0x3a7   : > { %4046 = vst.msk [vmem:[%s6640_s24 + $0x38] sm:$0xf] %vm4031_vm6, %v4403_v18  ;;  %v4401_v37 = vpack.c.bf16 %v3825_v43, %v3825_v43  ;;  %v3836_v19 = vadd.f32 %v5096_v34, %v6895_v25  ;;  %v6911_v25 = vld [vmem:[#allocation36_spill] sm:$0xff] }
 0x3a8   : > { %v3827_v1 = vpop.f32.mrf.mxu1 }
 0x3a9   : > { %4044 = vst.msk [vmem:[%s6640_s24 + $0x30] sm:$0xf] %vm4031_vm6, %v4401_v37  ;;  %v4404_v16 = vpack.c.bf16 %v3836_v19, %v3836_v19  ;;  %v3828_v8 = vadd.f32 %v3827_v1, %v6896_v20  ;;  %v6912_v20 = vld [vmem:[#allocation37_spill] sm:$0xff] }
 0x3aa   : > { %v5099_v32 = vpop.f32.mrf.mxu1 }
 0x3ab   : > { %4047 = vst.msk [vmem:[%s6640_s24 + $0x3c] sm:$0xf] %vm4031_vm6, %v4404_v16  ;;  %v4402_v11 = vpack.c.bf16 %v3828_v8, %v3828_v8  ;;  %v3849_v30 = vadd.f32 %v5099_v32, %v6897_v50 }
 0x3ac   : > { %v3840_v54 = vpop.f32.mrf.mxu1 }
 0x3ad   : > { %4045 = vst.msk [vmem:[%s6640_s24 + $0x34] sm:$0xf] %vm4031_vm6, %v4402_v11  ;;  %v4407_v17 = vpack.c.bf16 %v3849_v30, %v3849_v30  ;;  %v3841_v53 = vadd.f32 %v3840_v54, %v6898_v2 }
 0x3ae   : > { %v5100_v21 = vpop.f32.mrf.mxu1 }
 0x3af   : > { %4050 = vst.msk [vmem:[%s6640_s24 + $0x48] sm:$0xf] %vm4031_vm6, %v4407_v17  ;;  %v4405_v52 = vpack.c.bf16 %v3841_v53, %v3841_v53  ;;  %v3852_v0 = vadd.f32 %v5100_v21, %v6899_v24 }
 0x3b0   : > { %v3843_v57 = vpop.f32.mrf.mxu1 }
 0x3b1   : > { %4048 = vst.msk [vmem:[%s6640_s24 + $0x40] sm:$0xf] %vm4031_vm6, %v4405_v52  ;;  %v4408_v44 = vpack.c.bf16 %v3852_v0, %v3852_v0  ;;  %v3844_v4 = vadd.f32 %v3843_v57, %v6900_v48 }
 0x3b2   : > { %v5103_v3 = vpop.f32.mrf.mxu1 }
 0x3b3   : > { %4051 = vst.msk [vmem:[%s6640_s24 + $0x4c] sm:$0xf] %vm4031_vm6, %v4408_v44  ;;  %v4406_v7 = vpack.c.bf16 %v3844_v4, %v3844_v4  ;;  %v3865_v55 = vadd.f32 %v5103_v3, %v6901_v42 }
 0x3b4   : > { %v3856_v39 = vpop.f32.mrf.mxu1 }
 0x3b5   : > { %4049 = vst.msk [vmem:[%s6640_s24 + $0x44] sm:$0xf] %vm4031_vm6, %v4406_v7  ;;  %v4411_v49 = vpack.c.bf16 %v3865_v55, %v3865_v55  ;;  %v3857_v15 = vadd.f32 %v3856_v39, %v6902_v14 }
 0x3b6   : > { %v5104_v60 = vpop.f32.mrf.mxu1 }
 0x3b7   : > { %4054 = vst.msk [vmem:[%s6640_s24 + $0x58] sm:$0xf] %vm4031_vm6, %v4411_v49  ;;  %v4409_v46 = vpack.c.bf16 %v3857_v15, %v3857_v15  ;;  %v3868_v12 = vadd.f32 %v5104_v60, %v6903_v31 }
 0x3b8   : > { %v3859_v10 = vpop.f32.mrf.mxu1 }
 0x3b9   : > { %4052 = vst.msk [vmem:[%s6640_s24 + $0x50] sm:$0xf] %vm4031_vm6, %v4409_v46  ;;  %v4412_v27 = vpack.c.bf16 %v3868_v12, %v3868_v12  ;;  %v3860_v36 = vadd.f32 %v3859_v10, %v6904_v63 }
 0x3ba   : > { %v5107_v29 = vpop.f32.mrf.mxu1 }
 0x3bb   : > { %4055 = vst.msk [vmem:[%s6640_s24 + $0x5c] sm:$0xf] %vm4031_vm6, %v4412_v27  ;;  %v4410_v26 = vpack.c.bf16 %v3860_v36, %v3860_v36  ;;  %v3881_v56 = vadd.f32 %v5107_v29, %v6905_v13 }
 0x3bc   : > { %v3872_v33 = vpop.f32.mrf.mxu1 }
 0x3bd   : > { %4053 = vst.msk [vmem:[%s6640_s24 + $0x54] sm:$0xf] %vm4031_vm6, %v4410_v26  ;;  %v4415_v58 = vpack.c.bf16 %v3881_v56, %v3881_v56  ;;  %v3873_v23 = vadd.f32 %v3872_v33, %v6906_v59 }
 0x3be   : > { %v5108_v51 = vpop.f32.mrf.mxu1 }
 0x3bf   : > { %4058 = vst.msk [vmem:[%s6640_s24 + $0x68] sm:$0xf] %vm4031_vm6, %v4415_v58  ;;  %v4413_v28 = vpack.c.bf16 %v3873_v23, %v3873_v23  ;;  %v3884_v41 = vadd.f32 %v5108_v51, %v6907_v45 }
 0x3c0   : > { %v3875_v22 = vpop.f32.mrf.mxu1 }
 0x3c1   : > { %4056 = vst.msk [vmem:[%s6640_s24 + $0x60] sm:$0xf] %vm4031_vm6, %v4413_v28  ;;  %v4416_v40 = vpack.c.bf16 %v3884_v41, %v3884_v41  ;;  %v3876_v62 = vadd.f32 %v3875_v22, %v6908_v38 }
 0x3c2   : > { %v5111_v61 = vpop.f32.mrf.mxu1 }
 0x3c3   : > { %4059 = vst.msk [vmem:[%s6640_s24 + $0x6c] sm:$0xf] %vm4031_vm6, %v4416_v40  ;;  %v4414_v6 = vpack.c.bf16 %v3876_v62, %v3876_v62  ;;  %v3897_v35 = vadd.f32 %v5111_v61, %v6909_v9 }
 0x3c4   : > { %v3888_v5 = vpop.f32.mrf.mxu1 }
 0x3c5   : > { %4057 = vst.msk [vmem:[%s6640_s24 + $0x64] sm:$0xf] %vm4031_vm6, %v4414_v6  ;;  %v4419_v18 = vpack.c.bf16 %v3897_v35, %v3897_v35  ;;  %v3889_v43 = vadd.f32 %v3888_v5, %v6910_v47 }
 0x3c6   : > { %v5112_v34 = vpop.f32.mrf.mxu1 }
 0x3c7   : > { %4062 = vst.msk [vmem:[%s6640_s24 + $0x78] sm:$0xf] %vm4031_vm6, %v4419_v18  ;;  %v4417_v37 = vpack.c.bf16 %v3889_v43, %v3889_v43  ;;  %v3900_v19 = vadd.f32 %v5112_v34, %v6911_v25 }
 0x3c8   : > { %v3891_v1 = vpop.f32.mrf.mxu1 }
 0x3c9   : > { %4060 = vst.msk [vmem:[%s6640_s24 + $0x70] sm:$0xf] %vm4031_vm6, %v4417_v37  ;;  %v4420_v16 = vpack.c.bf16 %v3900_v19, %v3900_v19  ;;  %v3892_v8 = vadd.f32 %v3891_v1, %v6912_v20 }
 0x3cb   : > { %4063 = vst.msk [vmem:[%s6640_s24 + $0x7c] sm:$0xf] %vm4031_vm6, %v4420_v16  ;;  %v4418_v32 = vpack.c.bf16 %v3892_v8, %v3892_v8 }
 0x3cd   : > { %4061 = vst.msk [vmem:[%s6640_s24 + $0x74] sm:$0xf] %vm4031_vm6, %v4418_v32 }
 0x3ce   : > { %5180 = shalt.err (!%p5177_p3)
}
 0x3cf   : > { %s5181_s22 = scalar_lea.hbm %s6737_s29, 2048  ;;  %s5185_s25 = scalar_lea.hbm %s6796_s9, 4096 }
 0x3d0   : > { %p5182_p4 = scmp.ne.s32.totalorder %s6737_s29, %s5181_s22  ;;  %p5186_p9 = scmp.lt.s32.totalorder %s6737_s29, %s6796_s9 }
 0x3d1   : > { %p5187_p10 = scmp.lt.s32.totalorder %s5185_s25, %s5181_s22 }
 0x3d2   : > { %p5183_p7 = pnand %p5182_p4, %p5321_p5 }
 0x3d3   : > { %p5188_p11 = por %p5187_p10, %p5186_p9 }
 0x3d4   : > { %p5184_p8 = pneg %p5183_p7 }
 0x3d6   : > { %p5189_p12 = pnand %p5188_p11, %p5184_p8 }
 0x3d8   : > { %5192 = shalt.err (!%p5189_p12)
}
 0x3d9   : > { %s5231_s14 = smov 64   ;;  %s5232_s16 = smov 4  }
 0x3da   : > { %5125 = dma.vmem_to_hbm [thread:$0]  (%p5321_p5), %s6739_s26, 2048, %s6737_s29, %s6747_s13, %s5231_s14, %s5231_s14, %s5232_s16  }
 0x3db PF: > { %p5131_p13 = scmp.ge.s32.totalorder %s5227_s12, 2  ;;  %s4093_s17 = sand.u32 1, %s5215_s30  }
 0x3dc   : > { %s4094_s21 = scalar_lea.sflag [#allocation4], %s4093_s17 }
 0x3dd   : > { %p5128_p0 = pnand %p5131_p13, %p5325_p6 }
 0x3df   : > { %p5129_p1 = pneg %p5128_p0 }
 0x3e1   : > { %5210 = dma.done.wait (%p5129_p1), %s4094_s21, 2048  }
 0x3e2   : > { %5212 = vsyncadd (%p5129_p1), %s4094_s21, 4294965248  ;;  %p19_p2 = scmp.ge.s32.totalorder %s5308_s15, 4   ;;  %s6913_s30 = smov %s5219_s10 }
 0x3e3   : > { %s6914_s10 = smov %s5223_s11  ;;  %s6915_s11 = smov %s5319_s18 }
 0x3e4   : > { %s6916_s12 = smov %s5308_s15  ;;  %21 = sbr.rel (!%p19_p2) target bundleno = 3 (0x3), region = 102 }
 0x3e9   :  { %4099 = vsyncpa [#allocation4], 1 }
 0x3ea   :  { %4101 = vsyncpa [#allocation4 + $0x1], 1 }

</bundles_post_ra>
